<compile_context>
chip_gen: v5e
topology: v5e:2x2
jax: 0.10.0
libtpu: 0.0.40
codegen_flags: <defaults>
</compile_context>

<pallas_src>
import jax
import jax.numpy as jnp
from jax import lax
from jax.experimental import pallas as pl
from jax.experimental.pallas import tpu as pltpu


# ----------------------------------------------------------------------------
# Kernel factory: one grid step = one batch sample through the whole network.
# ----------------------------------------------------------------------------
def build_network_kernel(plan, *, T0, K, C, OUT, n_ds, mx_dtype):
    PAD = (K - 1) // 2
    assert sum(1 for _, _, e in plan if e) == 4, "expect 4 BuildBlocks"

    def kernel(*refs):
        x_ref, w0_ref, b0_ref = refs[0:3]
        s1_ref, t1_ref, w1_ref, s2_ref, t2_ref, w2_ref = refs[3:9]
        pos = 9
        if n_ds:
            wd_ref = refs[pos]
            pos += 1
        else:
            wd_ref = None
        hw_ref, hb_ref, w5_ref, b5_ref = refs[pos:pos + 4]
        pos += 4
        o_refs = refs[pos:pos + 5]
        pbuf = refs[pos + 5]                       # VMEM scratch (T0+2*PAD, C)

        def conv(h, w_flat, t_in, stride):
            """'same'-padded 1-D conv as a single merged-K MXU matmul.

            h: (t_in, C) f32 value; w_flat: (K*C, C) mx_dtype ref-value.
            """
            t_out = (t_in + 2 * PAD - K) // stride + 1
            if PAD:
                zrow = jnp.zeros((PAD, C), jnp.float32)
                pbuf[pl.ds(0, PAD), :] = zrow                    # left pad
                pbuf[pl.ds(PAD + t_in, PAD), :] = zrow           # right pad
            pbuf[pl.ds(PAD, t_in), :] = h
            if stride == 1:
                taps = [pbuf[pl.ds(k, t_out), :] for k in range(K)]
            else:  # not exercised in this script (all strides == 1)
                taps = [pbuf[pl.ds(k, t_out, stride), :] for k in range(K)]
            a = taps[0] if K == 1 else jnp.concatenate(taps, axis=1)
            out = jnp.dot(a.astype(mx_dtype), w_flat,
                          preferred_element_type=jnp.float32)
            return out, t_out

        # --- stem: ConstantPad1d + Conv1d(stride=1, bias=True) --------------
        x = x_ref[0].astype(jnp.float32)                      # (T0, C)
        h, t_cur = conv(x, w0_ref[...], T0, 1)
        h = h + b0_ref[...]

        heads = []
        ds_i = 0
        for si, (stride, has_ds, end_of_block) in enumerate(plan):
            x_in = h
            a1 = jnp.maximum(x_in * s1_ref[si] + t1_ref[si], 0.0)   # BN1+ReLU
            c1, t_nxt = conv(a1, w1_ref[si], t_cur, stride)         # conv1
            a2 = jnp.maximum(c1 * s2_ref[si] + t2_ref[si], 0.0)     # BN2+ReLU
            c2, _ = conv(a2, w2_ref[si], t_nxt, 1)                  # conv2
            if has_ds:
                if stride == 1:
                    xs = x_in
                else:  # not exercised here
                    xs = lax.slice(x_in, (0, 0),
                                   (stride * (t_nxt - 1) + 1, C), (stride, 1))
                res = jnp.dot(xs.astype(mx_dtype), wd_ref[ds_i],
                              preferred_element_type=jnp.float32)
                ds_i += 1
            else:
                res = x_in
            h = c2 + res
            t_cur = t_nxt

            if end_of_block:                      # mean over time + linear_i
                hi = len(heads)
                pooled = jnp.mean(h, axis=0, keepdims=True)        # (1, C)
                heads.append(jnp.dot(pooled, hw_ref[hi],
                                     preferred_element_type=jnp.float32)
                             + hb_ref[hi])

        cat = jnp.concatenate(heads, axis=1)                        # (1, 4*OUT)
        y5 = jnp.dot(cat, w5_ref[...],
                     preferred_element_type=jnp.float32) + b5_ref[...]

        for o_ref, y in zip(o_refs, heads + [y5]):
            o_ref[0] = y.astype(o_ref.dtype)

    return kernel


# ----------------------------------------------------------------------------
# Host-side weight packing: fold BN, merge K into the contraction, pad all
# channel dims to a common width C so the 12 ResTCN stages stack into a few
# resident arrays.
# ----------------------------------------------------------------------------
def pack_network(P, cfg, eps, mx_dtype):
    F = cfg["BLOCK_FILTERS"]
    K = cfg["FILTER_LENGTH"]
    C = max(max(F), cfg["NUM_JOINTS"])

    stages = [P["blocks"][bi][s] for bi in range(4) for s in ("A", "B", "C")]
    plan = [(st["stride"], st["wd"] is not None, (i % 3) == 2)
            for i, st in enumerate(stages)]

    def pad_vec(v):
        return jnp.pad(v, (0, C - v.shape[0]))[None, :]            # (1, C)

    def conv_flat(w_oik):                                          # (O,I,K)->(K*C,C)
        w = jnp.transpose(w_oik, (2, 1, 0))                        # (K, I, O)
        w = jnp.pad(w, ((0, 0), (0, C - w.shape[1]), (0, C - w.shape[2])))
        return w.reshape(K * C, C).astype(mx_dtype)

    def fold(g, b, m, v):
        s = g / jnp.sqrt(v + eps)
        return s, b - m * s

    s1, t1, w1, s2, t2, w2, wd = [], [], [], [], [], [], []
    for st in stages:
        a, b = fold(st["g1"], st["be1"], st["m1"], st["v1"])
        s1.append(pad_vec(a)); t1.append(pad_vec(b))
        w1.append(conv_flat(st["w1"]))
        a, b = fold(st["g2"], st["be2"], st["m2"], st["v2"])
        s2.append(pad_vec(a)); t2.append(pad_vec(b))
        w2.append(conv_flat(st["w2"]))
        if st["wd"] is not None:
            wdm = jnp.transpose(st["wd"][:, :, 0], (1, 0))         # (C_in, C_out)
            wd.append(jnp.pad(wdm, ((0, C - wdm.shape[0]),
                                    (0, C - wdm.shape[1]))).astype(mx_dtype))

    packed = dict(
        w0=conv_flat(P["conv1_w"]),
        b0=pad_vec(P["conv1_b"]).astype(jnp.float32),
        s1=jnp.stack(s1), t1=jnp.stack(t1), w1=jnp.stack(w1),
        s2=jnp.stack(s2), t2=jnp.stack(t2), w2=jnp.stack(w2),
        wd=(jnp.stack(wd) if wd else None),
        hw=jnp.stack([jnp.pad(P["lin_w"][bi].T, ((0, C - F[bi]), (0, 0)))
                      for bi in range(4)]).astype(jnp.float32),
        hb=jnp.stack([P["lin_b"][bi][None, :] for bi in range(4)]),
        w5=P["lin5_w"].T.astype(jnp.float32),
        b5=P["lin5_b"][None, :],
    )
    return packed, plan, C


def network_forward_pallas(x_nct, P, cfg, *, eps=1e-5, mx_dtype=jnp.bfloat16):
    """x_nct: (N, NUM_JOINTS, T) float32 (PyTorch Conv1d layout)."""
    N, Cj, T0 = x_nct.shape
    K = cfg["FILTER_LENGTH"]
    OUT = cfg["OUTPUT_CLASSES"]
    assert K % 2 == 1, "only odd FILTER_LENGTH implemented"
    PAD = (K - 1) // 2

    packed, plan, C = pack_network(P, cfg, eps, mx_dtype)
    n_ds = 0 if packed["wd"] is None else packed["wd"].shape[0]
    S = len(plan)

    # single tiny host-side relayout of the network input: (N,C,T)->(N,T,C_pad)
    x = jnp.transpose(x_nct, (0, 2, 1)).astype(jnp.float32)
    x = jnp.pad(x, ((0, 0), (0, 0), (0, C - Cj)))

    kernel = build_network_kernel(plan, T0=T0, K=K, C=C, OUT=OUT,
                                  n_ds=n_ds, mx_dtype=mx_dtype)

    in_specs = [
        pl.BlockSpec((1, T0, C), lambda n: (n, 0, 0)),        # x (per sample)
        pl.BlockSpec((K * C, C), lambda n: (0, 0)),           # stem conv weight
        pl.BlockSpec((1, C), lambda n: (0, 0)),               # stem conv bias
        pl.BlockSpec((S, 1, C), lambda n: (0, 0, 0)),         # bn1 scale
        pl.BlockSpec((S, 1, C), lambda n: (0, 0, 0)),         # bn1 shift
        pl.BlockSpec((S, K * C, C), lambda n: (0, 0, 0)),     # conv1 weights
        pl.BlockSpec((S, 1, C), lambda n: (0, 0, 0)),         # bn2 scale
        pl.BlockSpec((S, 1, C), lambda n: (0, 0, 0)),         # bn2 shift
        pl.BlockSpec((S, K * C, C), lambda n: (0, 0, 0)),     # conv2 weights
    ]
    args = [x, packed["w0"], packed["b0"], packed["s1"], packed["t1"],
            packed["w1"], packed["s2"], packed["t2"], packed["w2"]]
    if n_ds:
        in_specs.append(pl.BlockSpec((n_ds, C, C), lambda n: (0, 0, 0)))
        args.append(packed["wd"])
    in_specs += [
        pl.BlockSpec((4, C, OUT), lambda n: (0, 0, 0)),       # head linear W^T
        pl.BlockSpec((4, 1, OUT), lambda n: (0, 0, 0)),       # head linear bias
        pl.BlockSpec((4 * OUT, OUT), lambda n: (0, 0)),       # linear5 W^T
        pl.BlockSpec((1, OUT), lambda n: (0, 0)),             # linear5 bias
    ]
    args += [packed["hw"], packed["hb"], packed["w5"], packed["b5"]]

    out_specs = tuple(pl.BlockSpec((1, 1, OUT), lambda n: (n, 0, 0))
                      for _ in range(5))
    out_shape = tuple(jax.ShapeDtypeStruct((N, 1, OUT), jnp.float32)
                      for _ in range(5))

    outs = pl.pallas_call(
        kernel,
        grid=(N,),
        in_specs=in_specs,
        out_specs=out_specs,
        out_shape=out_shape,
        scratch_shapes=[pltpu.VMEM((T0 + 2 * PAD, C), jnp.float32)],
        compiler_params=pltpu.CompilerParams(
            dimension_semantics=("parallel",)),
    )(*args)
    return tuple(o[:, 0, :] for o in outs)                   # 5 x (N, OUT)


# ----------------------------------------------------------------------------
# Pure-JAX reference (f32, full precision) for validation.
# ----------------------------------------------------------------------------
_DN = ("NCH", "OIH", "NCH")
_HI = lax.Precision.HIGHEST


def _bn_ref(x, g, b, m, v, eps):
    return ((x - m[None, :, None]) / jnp.sqrt(v[None, :, None] + eps)
            * g[None, :, None] + b[None, :, None])


def _restcn_ref(x, p, eps):
    K = p["w1"].shape[-1]
    pad = (K - 1) // 2
    s = p["stride"]
    h = jax.nn.relu(_bn_ref(x, p["g1"], p["be1"], p["m1"], p["v1"], eps))
    o1 = lax.conv_general_dilated(h, p["w1"], (s,), [(pad, pad)],
                                  dimension_numbers=_DN, precision=_HI)
    h2 = jax.nn.relu(_bn_ref(o1, p["g2"], p["be2"], p["m2"], p["v2"], eps))
    o2 = lax.conv_general_dilated(h2, p["w2"], (1,), [(pad, pad)],
                                  dimension_numbers=_DN, precision=_HI)
    if p["wd"] is not None:
        res = lax.conv_general_dilated(x, p["wd"], (s,), [(0, 0)],
                                       dimension_numbers=_DN, precision=_HI)
    else:
        res = x
    return o2 + res


def network_ref(x_nct, P, cfg, eps=1e-5):
    K = cfg["FILTER_LENGTH"]
    pad = (K - 1) // 2
    h = jnp.pad(x_nct, ((0, 0), (0, 0), (pad, pad)))
    h = lax.conv_general_dilated(h, P["conv1_w"], (1,), [(0, 0)],
                                 dimension_numbers=_DN, precision=_HI)
    h = h + P["conv1_b"][None, :, None]
    heads = []
    for bi in range(4):
        for sub in ("A", "B", "C"):
            h = _restcn_ref(h, P["blocks"][bi][sub], eps)
        pooled = h.mean(axis=2)
        heads.append(jnp.dot(pooled, P["lin_w"][bi].T, precision=_HI)
                     + P["lin_b"][bi])
    cat = jnp.concatenate(heads, axis=1)
    y5 = jnp.dot(cat, P["lin5_w"].T, precision=_HI) + P["lin5_b"]
    return (*heads, y5)


# ----------------------------------------------------------------------------
# Deterministic synthetic parameters (PyTorch-layout shapes).
# ----------------------------------------------------------------------------
def _init_restcn(key, c_in, c_out, k, stride):
    ks = jax.random.split(key, 11)
    use_ds = (c_in != c_out) or (stride != 1)
    return dict(
        g1=0.5 + jax.random.uniform(ks[0], (c_in,), jnp.float32),
        be1=0.1 * jax.random.normal(ks[1], (c_in,), jnp.float32),
        m1=0.1 * jax.random.normal(ks[2], (c_in,), jnp.float32),
        v1=0.5 + jax.random.uniform(ks[3], (c_in,), jnp.float32),
        w1=0.1 * jax.random.normal(ks[4], (c_out, c_in, k), jnp.float32),
        g2=0.5 + jax.random.uniform(ks[5], (c_out,), jnp.float32),
        be2=0.1 * jax.random.normal(ks[6], (c_out,), jnp.float32),
        m2=0.1 * jax.random.normal(ks[7], (c_out,), jnp.float32),
        v2=0.5 + jax.random.uniform(ks[8], (c_out,), jnp.float32),
        w2=0.1 * jax.random.normal(ks[9], (c_out, c_out, k), jnp.float32),
        wd=(0.1 * jax.random.normal(ks[10], (c_out, c_in, 1), jnp.float32)
            if use_ds else None),
        stride=stride,
    )


def init_network(key, cfg):
    F = cfg["BLOCK_FILTERS"]
    K = cfg["FILTER_LENGTH"]
    Cj = cfg["NUM_JOINTS"]
    OUT = cfg["OUTPUT_CLASSES"]
    keys = iter(jax.random.split(key, 32))
    P = dict(
        conv1_w=0.1 * jax.random.normal(next(keys), (F[0], Cj, K), jnp.float32),
        conv1_b=0.1 * jax.random.normal(next(keys), (F[0],), jnp.float32),
    )
    blocks, in_c = [], F[0]
    for bi in range(4):
        st = cfg["BLOCK_STRIDES"][bi]
        blocks.append(dict(
            A=_init_restcn(next(keys), in_c, F[bi], K, st[0]),
            B=_init_restcn(next(keys), F[bi], F[bi], K, st[1]),
            C=_init_restcn(next(keys), F[bi], F[bi], K, st[2]),
        ))
        in_c = F[bi]
    P["blocks"] = blocks
    P["lin_w"] = [0.1 * jax.random.normal(next(keys), (OUT, F[bi]), jnp.float32)
                  for bi in range(4)]
    P["lin_b"] = [0.1 * jax.random.normal(next(keys), (OUT,), jnp.float32)
                  for bi in range(4)]
    P["lin5_w"] = 0.1 * jax.random.normal(next(keys), (OUT, 4 * OUT), jnp.float32)
    P["lin5_b"] = 0.1 * jax.random.normal(next(keys), (OUT,), jnp.float32)
    return P


if __name__ == "__main__":
    CFG = dict(
        NUM_JOINTS=4,
        FILTER_LENGTH=3,
        OUTPUT_CLASSES=16,
        BLOCK_FILTERS=(8, 16, 32, 64),
        BLOCK_STRIDES=((1, 1, 1),) * 4,
    )
    N, T = 2, 16
    EPS = 1e-5

    root = jax.random.PRNGKey(0)
    kx, kp = jax.random.split(root)
    x_nct = jax.random.normal(kx, (N, CFG["NUM_JOINTS"], T), jnp.float32)
    params = init_network(kp, CFG)

    outs = network_forward_pallas(x_nct, params, CFG, eps=EPS,
                                  mx_dtype=jnp.bfloat16)
    outs = jax.block_until_ready(outs)

    refs = network_ref(x_nct, params, CFG, eps=EPS)
    for o, r in zip(outs, refs):
        assert o.shape == r.shape, (o.shape, r.shape)
        # bf16 MXU operands (f32 accumulation) -> tolerance loosened from 1e-4
        assert jnp.allclose(o, r, rtol=3e-2, atol=3e-2), \
            float(jnp.max(jnp.abs(o - r)))

    print("KERNEL_OK")
</pallas_src>

<mosaic_0001>
module attributes {stable_mosaic.version = 11 : i64} {
  func.func @kernel(%arg0: i32, %arg1: memref<1x16x64xf32, #tpu.memory_space<vmem>>, %arg2: memref<192x64xbf16, #tpu.memory_space<vmem>>, %arg3: memref<1x64xf32, #tpu.memory_space<vmem>>, %arg4: memref<12x1x64xf32, #tpu.memory_space<vmem>>, %arg5: memref<12x1x64xf32, #tpu.memory_space<vmem>>, %arg6: memref<12x192x64xbf16, #tpu.memory_space<vmem>>, %arg7: memref<12x1x64xf32, #tpu.memory_space<vmem>>, %arg8: memref<12x1x64xf32, #tpu.memory_space<vmem>>, %arg9: memref<12x192x64xbf16, #tpu.memory_space<vmem>>, %arg10: memref<3x64x64xbf16, #tpu.memory_space<vmem>>, %arg11: memref<4x64x16xf32, #tpu.memory_space<vmem>>, %arg12: memref<4x1x16xf32, #tpu.memory_space<vmem>>, %arg13: memref<64x16xf32, #tpu.memory_space<vmem>>, %arg14: memref<1x16xf32, #tpu.memory_space<vmem>>, %arg15: memref<1x1x16xf32, #tpu.memory_space<vmem>>, %arg16: memref<1x1x16xf32, #tpu.memory_space<vmem>>, %arg17: memref<1x1x16xf32, #tpu.memory_space<vmem>>, %arg18: memref<1x1x16xf32, #tpu.memory_space<vmem>>, %arg19: memref<1x1x16xf32, #tpu.memory_space<vmem>>, %arg20: memref<18x64xf32, #tpu.memory_space<vmem>>) attributes {dimension_semantics = [#tpu.dimension_semantics<parallel>], iteration_bounds = array<i64: 2>, scalar_prefetch = 0 : i64, scratch_operands = 1 : i64, tpu.core_type = #tpu.core_type<tc>, window_params = [{transform_indices = @transform_0, window_bounds = array<i64: 1, 16, 64>}, {pipeline_mode = #tpu.pipeline_mode<synchronous>, transform_indices = @transform_1, window_bounds = array<i64: 192, 64>}, {pipeline_mode = #tpu.pipeline_mode<synchronous>, transform_indices = @transform_2, window_bounds = array<i64: 1, 64>}, {pipeline_mode = #tpu.pipeline_mode<synchronous>, transform_indices = @transform_3, window_bounds = array<i64: 12, 1, 64>}, {pipeline_mode = #tpu.pipeline_mode<synchronous>, transform_indices = @transform_4, window_bounds = array<i64: 12, 1, 64>}, {pipeline_mode = #tpu.pipeline_mode<synchronous>, transform_indices = @transform_5, window_bounds = array<i64: 12, 192, 64>}, {pipeline_mode = #tpu.pipeline_mode<synchronous>, transform_indices = @transform_6, window_bounds = array<i64: 12, 1, 64>}, {pipeline_mode = #tpu.pipeline_mode<synchronous>, transform_indices = @transform_7, window_bounds = array<i64: 12, 1, 64>}, {pipeline_mode = #tpu.pipeline_mode<synchronous>, transform_indices = @transform_8, window_bounds = array<i64: 12, 192, 64>}, {pipeline_mode = #tpu.pipeline_mode<synchronous>, transform_indices = @transform_9, window_bounds = array<i64: 3, 64, 64>}, {pipeline_mode = #tpu.pipeline_mode<synchronous>, transform_indices = @transform_10, window_bounds = array<i64: 4, 64, 16>}, {pipeline_mode = #tpu.pipeline_mode<synchronous>, transform_indices = @transform_11, window_bounds = array<i64: 4, 1, 16>}, {pipeline_mode = #tpu.pipeline_mode<synchronous>, transform_indices = @transform_12, window_bounds = array<i64: 64, 16>}, {pipeline_mode = #tpu.pipeline_mode<synchronous>, transform_indices = @transform_13, window_bounds = array<i64: 1, 16>}, {transform_indices = @transform_14, window_bounds = array<i64: 1, 1, 16>}, {transform_indices = @transform_15, window_bounds = array<i64: 1, 1, 16>}, {transform_indices = @transform_16, window_bounds = array<i64: 1, 1, 16>}, {transform_indices = @transform_17, window_bounds = array<i64: 1, 1, 16>}, {transform_indices = @transform_18, window_bounds = array<i64: 1, 1, 16>}]} {
    %c0 = arith.constant 0 : index
    %c0_0 = arith.constant 0 : index
    %c0_1 = arith.constant 0 : index
    %0 = vector.load %arg1[%c0, %c0_0, %c0_1] : memref<1x16x64xf32, #tpu.memory_space<vmem>>, vector<1x16x64xf32>
    %1 = vector.shape_cast %0 : vector<1x16x64xf32> to vector<16x64xf32>
    %c0_2 = arith.constant 0 : index
    %c0_3 = arith.constant 0 : index
    %2 = vector.load %arg2[%c0_2, %c0_3] : memref<192x64xbf16, #tpu.memory_space<vmem>>, vector<192x64xbf16>
    %cst = arith.constant 0.000000e+00 : f32
    %3 = vector.broadcast %cst : f32 to vector<1x64xf32>
    %c0_4 = arith.constant 0 : index
    %c0_5 = arith.constant 0 : index
    %4 = vector.load %arg20[%c0_4, %c0_5] : memref<18x64xf32, #tpu.memory_space<vmem>>, vector<1x64xf32>
    tpu.vector_store %arg20[%c0_4, %c0_5], %3 {strides = array<i32>} : memref<18x64xf32, #tpu.memory_space<vmem>>, vector<1x64xf32>,
    %c17 = arith.constant 17 : index
    %c0_6 = arith.constant 0 : index
    %5 = vector.load %arg20[%c17, %c0_6] : memref<18x64xf32, #tpu.memory_space<vmem>>, vector<1x64xf32>
    tpu.vector_store %arg20[%c17, %c0_6], %3 {strides = array<i32>} : memref<18x64xf32, #tpu.memory_space<vmem>>, vector<1x64xf32>,
    %c1 = arith.constant 1 : index
    %c0_7 = arith.constant 0 : index
    %6 = vector.load %arg20[%c1, %c0_7] : memref<18x64xf32, #tpu.memory_space<vmem>>, vector<16x64xf32>
    tpu.vector_store %arg20[%c1, %c0_7], %1 {strides = array<i32>} : memref<18x64xf32, #tpu.memory_space<vmem>>, vector<16x64xf32>,
    %c0_8 = arith.constant 0 : index
    %c0_9 = arith.constant 0 : index
    %7 = vector.load %arg20[%c0_8, %c0_9] : memref<18x64xf32, #tpu.memory_space<vmem>>, vector<16x64xf32>
    %c1_10 = arith.constant 1 : index
    %c0_11 = arith.constant 0 : index
    %8 = vector.load %arg20[%c1_10, %c0_11] : memref<18x64xf32, #tpu.memory_space<vmem>>, vector<16x64xf32>
    %c2 = arith.constant 2 : index
    %c0_12 = arith.constant 0 : index
    %9 = vector.load %arg20[%c2, %c0_12] : memref<18x64xf32, #tpu.memory_space<vmem>>, vector<16x64xf32>
    %10 = tpu.concatenate %7, %8, %9 in 1 : vector<16x64xf32>, vector<16x64xf32>, vector<16x64xf32> -> vector<16x192xf32>
    %11 = arith.truncf %10 : vector<16x192xf32> to vector<16x192xbf16>
    %cst_13 = arith.constant dense<0.000000e+00> : vector<16x64xf32>
    %12 = tpu.matmul %11, %2, %cst_13 {dimension_numbers = #tpu.dot_dimension_numbers<[1], [0], [0], [1], [0, 0, 1, 1], [], []>} : vector<16x192xbf16>, vector<192x64xbf16>, vector<16x64xf32> -> vector<16x64xf32>
    %c0_14 = arith.constant 0 : index
    %c0_15 = arith.constant 0 : index
    %13 = vector.load %arg3[%c0_14, %c0_15] : memref<1x64xf32, #tpu.memory_space<vmem>>, vector<1x64xf32>
    %14 = vector.broadcast %13 : vector<1x64xf32> to vector<16x64xf32>
    %15 = arith.addf %12, %14 : vector<16x64xf32>
    %c0_16 = arith.constant 0 : index
    %c0_17 = arith.constant 0 : index
    %c0_18 = arith.constant 0 : index
    %16 = vector.load %arg4[%c0_16, %c0_17, %c0_18] : memref<12x1x64xf32, #tpu.memory_space<vmem>>, vector<1x1x64xf32>
    %17 = vector.shape_cast %16 : vector<1x1x64xf32> to vector<1x64xf32>
    %18 = vector.broadcast %17 : vector<1x64xf32> to vector<16x64xf32>
    %19 = arith.mulf %15, %18 : vector<16x64xf32>
    %c0_19 = arith.constant 0 : index
    %c0_20 = arith.constant 0 : index
    %c0_21 = arith.constant 0 : index
    %20 = vector.load %arg5[%c0_19, %c0_20, %c0_21] : memref<12x1x64xf32, #tpu.memory_space<vmem>>, vector<1x1x64xf32>
    %21 = vector.shape_cast %20 : vector<1x1x64xf32> to vector<1x64xf32>
    %22 = vector.broadcast %21 : vector<1x64xf32> to vector<16x64xf32>
    %23 = arith.addf %19, %22 : vector<16x64xf32>
    %cst_22 = arith.constant 0.000000e+00 : f32
    %24 = vector.broadcast %cst_22 : f32 to vector<16x64xf32>
    %25 = arith.maximumf %23, %24 : vector<16x64xf32>
    %c0_23 = arith.constant 0 : index
    %c0_24 = arith.constant 0 : index
    %c0_25 = arith.constant 0 : index
    %26 = vector.load %arg6[%c0_23, %c0_24, %c0_25] : memref<12x192x64xbf16, #tpu.memory_space<vmem>>, vector<1x192x64xbf16>
    %27 = vector.shape_cast %26 : vector<1x192x64xbf16> to vector<192x64xbf16>
    %cst_26 = arith.constant 0.000000e+00 : f32
    %28 = vector.broadcast %cst_26 : f32 to vector<1x64xf32>
    %c0_27 = arith.constant 0 : index
    %c0_28 = arith.constant 0 : index
    %29 = vector.load %arg20[%c0_27, %c0_28] : memref<18x64xf32, #tpu.memory_space<vmem>>, vector<1x64xf32>
    tpu.vector_store %arg20[%c0_27, %c0_28], %28 {strides = array<i32>} : memref<18x64xf32, #tpu.memory_space<vmem>>, vector<1x64xf32>,
    %c17_29 = arith.constant 17 : index
    %c0_30 = arith.constant 0 : index
    %30 = vector.load %arg20[%c17_29, %c0_30] : memref<18x64xf32, #tpu.memory_space<vmem>>, vector<1x64xf32>
    tpu.vector_store %arg20[%c17_29, %c0_30], %28 {strides = array<i32>} : memref<18x64xf32, #tpu.memory_space<vmem>>, vector<1x64xf32>,
    %c1_31 = arith.constant 1 : index
    %c0_32 = arith.constant 0 : index
    %31 = vector.load %arg20[%c1_31, %c0_32] : memref<18x64xf32, #tpu.memory_space<vmem>>, vector<16x64xf32>
    tpu.vector_store %arg20[%c1_31, %c0_32], %25 {strides = array<i32>} : memref<18x64xf32, #tpu.memory_space<vmem>>, vector<16x64xf32>,
    %c0_33 = arith.constant 0 : index
    %c0_34 = arith.constant 0 : index
    %32 = vector.load %arg20[%c0_33, %c0_34] : memref<18x64xf32, #tpu.memory_space<vmem>>, vector<16x64xf32>
    %c1_35 = arith.constant 1 : index
    %c0_36 = arith.constant 0 : index
    %33 = vector.load %arg20[%c1_35, %c0_36] : memref<18x64xf32, #tpu.memory_space<vmem>>, vector<16x64xf32>
    %c2_37 = arith.constant 2 : index
    %c0_38 = arith.constant 0 : index
    %34 = vector.load %arg20[%c2_37, %c0_38] : memref<18x64xf32, #tpu.memory_space<vmem>>, vector<16x64xf32>
    %35 = tpu.concatenate %32, %33, %34 in 1 : vector<16x64xf32>, vector<16x64xf32>, vector<16x64xf32> -> vector<16x192xf32>
    %36 = arith.truncf %35 : vector<16x192xf32> to vector<16x192xbf16>
    %cst_39 = arith.constant dense<0.000000e+00> : vector<16x64xf32>
    %37 = tpu.matmul %36, %27, %cst_39 {dimension_numbers = #tpu.dot_dimension_numbers<[1], [0], [0], [1], [0, 0, 1, 1], [], []>} : vector<16x192xbf16>, vector<192x64xbf16>, vector<16x64xf32> -> vector<16x64xf32>
    %c0_40 = arith.constant 0 : index
    %c0_41 = arith.constant 0 : index
    %c0_42 = arith.constant 0 : index
    %38 = vector.load %arg7[%c0_40, %c0_41, %c0_42] : memref<12x1x64xf32, #tpu.memory_space<vmem>>, vector<1x1x64xf32>
    %39 = vector.shape_cast %38 : vector<1x1x64xf32> to vector<1x64xf32>
    %40 = vector.broadcast %39 : vector<1x64xf32> to vector<16x64xf32>
    %41 = arith.mulf %37, %40 : vector<16x64xf32>
    %c0_43 = arith.constant 0 : index
    %c0_44 = arith.constant 0 : index
    %c0_45 = arith.constant 0 : index
    %42 = vector.load %arg8[%c0_43, %c0_44, %c0_45] : memref<12x1x64xf32, #tpu.memory_space<vmem>>, vector<1x1x64xf32>
    %43 = vector.shape_cast %42 : vector<1x1x64xf32> to vector<1x64xf32>
    %44 = vector.broadcast %43 : vector<1x64xf32> to vector<16x64xf32>
    %45 = arith.addf %41, %44 : vector<16x64xf32>
    %cst_46 = arith.constant 0.000000e+00 : f32
    %46 = vector.broadcast %cst_46 : f32 to vector<16x64xf32>
    %47 = arith.maximumf %45, %46 : vector<16x64xf32>
    %c0_47 = arith.constant 0 : index
    %c0_48 = arith.constant 0 : index
    %c0_49 = arith.constant 0 : index
    %48 = vector.load %arg9[%c0_47, %c0_48, %c0_49] : memref<12x192x64xbf16, #tpu.memory_space<vmem>>, vector<1x192x64xbf16>
    %49 = vector.shape_cast %48 : vector<1x192x64xbf16> to vector<192x64xbf16>
    %cst_50 = arith.constant 0.000000e+00 : f32
    %50 = vector.broadcast %cst_50 : f32 to vector<1x64xf32>
    %c0_51 = arith.constant 0 : index
    %c0_52 = arith.constant 0 : index
    %51 = vector.load %arg20[%c0_51, %c0_52] : memref<18x64xf32, #tpu.memory_space<vmem>>, vector<1x64xf32>
    tpu.vector_store %arg20[%c0_51, %c0_52], %50 {strides = array<i32>} : memref<18x64xf32, #tpu.memory_space<vmem>>, vector<1x64xf32>,
    %c17_53 = arith.constant 17 : index
    %c0_54 = arith.constant 0 : index
    %52 = vector.load %arg20[%c17_53, %c0_54] : memref<18x64xf32, #tpu.memory_space<vmem>>, vector<1x64xf32>
    tpu.vector_store %arg20[%c17_53, %c0_54], %50 {strides = array<i32>} : memref<18x64xf32, #tpu.memory_space<vmem>>, vector<1x64xf32>,
    %c1_55 = arith.constant 1 : index
    %c0_56 = arith.constant 0 : index
    %53 = vector.load %arg20[%c1_55, %c0_56] : memref<18x64xf32, #tpu.memory_space<vmem>>, vector<16x64xf32>
    tpu.vector_store %arg20[%c1_55, %c0_56], %47 {strides = array<i32>} : memref<18x64xf32, #tpu.memory_space<vmem>>, vector<16x64xf32>,
    %c0_57 = arith.constant 0 : index
    %c0_58 = arith.constant 0 : index
    %54 = vector.load %arg20[%c0_57, %c0_58] : memref<18x64xf32, #tpu.memory_space<vmem>>, vector<16x64xf32>
    %c1_59 = arith.constant 1 : index
    %c0_60 = arith.constant 0 : index
    %55 = vector.load %arg20[%c1_59, %c0_60] : memref<18x64xf32, #tpu.memory_space<vmem>>, vector<16x64xf32>
    %c2_61 = arith.constant 2 : index
    %c0_62 = arith.constant 0 : index
    %56 = vector.load %arg20[%c2_61, %c0_62] : memref<18x64xf32, #tpu.memory_space<vmem>>, vector<16x64xf32>
    %57 = tpu.concatenate %54, %55, %56 in 1 : vector<16x64xf32>, vector<16x64xf32>, vector<16x64xf32> -> vector<16x192xf32>
    %58 = arith.truncf %57 : vector<16x192xf32> to vector<16x192xbf16>
    %cst_63 = arith.constant dense<0.000000e+00> : vector<16x64xf32>
    %59 = tpu.matmul %58, %49, %cst_63 {dimension_numbers = #tpu.dot_dimension_numbers<[1], [0], [0], [1], [0, 0, 1, 1], [], []>} : vector<16x192xbf16>, vector<192x64xbf16>, vector<16x64xf32> -> vector<16x64xf32>
    %60 = arith.addf %59, %15 : vector<16x64xf32>
    %c1_64 = arith.constant 1 : index
    %c0_65 = arith.constant 0 : index
    %c0_66 = arith.constant 0 : index
    %61 = vector.load %arg4[%c1_64, %c0_65, %c0_66] : memref<12x1x64xf32, #tpu.memory_space<vmem>>, vector<1x1x64xf32>
    %62 = vector.shape_cast %61 : vector<1x1x64xf32> to vector<1x64xf32>
    %63 = vector.broadcast %62 : vector<1x64xf32> to vector<16x64xf32>
    %64 = arith.mulf %60, %63 : vector<16x64xf32>
    %c1_67 = arith.constant 1 : index
    %c0_68 = arith.constant 0 : index
    %c0_69 = arith.constant 0 : index
    %65 = vector.load %arg5[%c1_67, %c0_68, %c0_69] : memref<12x1x64xf32, #tpu.memory_space<vmem>>, vector<1x1x64xf32>
    %66 = vector.shape_cast %65 : vector<1x1x64xf32> to vector<1x64xf32>
    %67 = vector.broadcast %66 : vector<1x64xf32> to vector<16x64xf32>
    %68 = arith.addf %64, %67 : vector<16x64xf32>
    %cst_70 = arith.constant 0.000000e+00 : f32
    %69 = vector.broadcast %cst_70 : f32 to vector<16x64xf32>
    %70 = arith.maximumf %68, %69 : vector<16x64xf32>
    %c1_71 = arith.constant 1 : index
    %c0_72 = arith.constant 0 : index
    %c0_73 = arith.constant 0 : index
    %71 = vector.load %arg6[%c1_71, %c0_72, %c0_73] : memref<12x192x64xbf16, #tpu.memory_space<vmem>>, vector<1x192x64xbf16>
    %72 = vector.shape_cast %71 : vector<1x192x64xbf16> to vector<192x64xbf16>
    %cst_74 = arith.constant 0.000000e+00 : f32
    %73 = vector.broadcast %cst_74 : f32 to vector<1x64xf32>
    %c0_75 = arith.constant 0 : index
    %c0_76 = arith.constant 0 : index
    %74 = vector.load %arg20[%c0_75, %c0_76] : memref<18x64xf32, #tpu.memory_space<vmem>>, vector<1x64xf32>
    tpu.vector_store %arg20[%c0_75, %c0_76], %73 {strides = array<i32>} : memref<18x64xf32, #tpu.memory_space<vmem>>, vector<1x64xf32>,
    %c17_77 = arith.constant 17 : index
    %c0_78 = arith.constant 0 : index
    %75 = vector.load %arg20[%c17_77, %c0_78] : memref<18x64xf32, #tpu.memory_space<vmem>>, vector<1x64xf32>
    tpu.vector_store %arg20[%c17_77, %c0_78], %73 {strides = array<i32>} : memref<18x64xf32, #tpu.memory_space<vmem>>, vector<1x64xf32>,
    %c1_79 = arith.constant 1 : index
    %c0_80 = arith.constant 0 : index
    %76 = vector.load %arg20[%c1_79, %c0_80] : memref<18x64xf32, #tpu.memory_space<vmem>>, vector<16x64xf32>
    tpu.vector_store %arg20[%c1_79, %c0_80], %70 {strides = array<i32>} : memref<18x64xf32, #tpu.memory_space<vmem>>, vector<16x64xf32>,
    %c0_81 = arith.constant 0 : index
    %c0_82 = arith.constant 0 : index
    %77 = vector.load %arg20[%c0_81, %c0_82] : memref<18x64xf32, #tpu.memory_space<vmem>>, vector<16x64xf32>
    %c1_83 = arith.constant 1 : index
    %c0_84 = arith.constant 0 : index
    %78 = vector.load %arg20[%c1_83, %c0_84] : memref<18x64xf32, #tpu.memory_space<vmem>>, vector<16x64xf32>
    %c2_85 = arith.constant 2 : index
    %c0_86 = arith.constant 0 : index
    %79 = vector.load %arg20[%c2_85, %c0_86] : memref<18x64xf32, #tpu.memory_space<vmem>>, vector<16x64xf32>
    %80 = tpu.concatenate %77, %78, %79 in 1 : vector<16x64xf32>, vector<16x64xf32>, vector<16x64xf32> -> vector<16x192xf32>
    %81 = arith.truncf %80 : vector<16x192xf32> to vector<16x192xbf16>
    %cst_87 = arith.constant dense<0.000000e+00> : vector<16x64xf32>
    %82 = tpu.matmul %81, %72, %cst_87 {dimension_numbers = #tpu.dot_dimension_numbers<[1], [0], [0], [1], [0, 0, 1, 1], [], []>} : vector<16x192xbf16>, vector<192x64xbf16>, vector<16x64xf32> -> vector<16x64xf32>
    %c1_88 = arith.constant 1 : index
    %c0_89 = arith.constant 0 : index
    %c0_90 = arith.constant 0 : index
    %83 = vector.load %arg7[%c1_88, %c0_89, %c0_90] : memref<12x1x64xf32, #tpu.memory_space<vmem>>, vector<1x1x64xf32>
    %84 = vector.shape_cast %83 : vector<1x1x64xf32> to vector<1x64xf32>
    %85 = vector.broadcast %84 : vector<1x64xf32> to vector<16x64xf32>
    %86 = arith.mulf %82, %85 : vector<16x64xf32>
    %c1_91 = arith.constant 1 : index
    %c0_92 = arith.constant 0 : index
    %c0_93 = arith.constant 0 : index
    %87 = vector.load %arg8[%c1_91, %c0_92, %c0_93] : memref<12x1x64xf32, #tpu.memory_space<vmem>>, vector<1x1x64xf32>
    %88 = vector.shape_cast %87 : vector<1x1x64xf32> to vector<1x64xf32>
    %89 = vector.broadcast %88 : vector<1x64xf32> to vector<16x64xf32>
    %90 = arith.addf %86, %89 : vector<16x64xf32>
    %cst_94 = arith.constant 0.000000e+00 : f32
    %91 = vector.broadcast %cst_94 : f32 to vector<16x64xf32>
    %92 = arith.maximumf %90, %91 : vector<16x64xf32>
    %c1_95 = arith.constant 1 : index
    %c0_96 = arith.constant 0 : index
    %c0_97 = arith.constant 0 : index
    %93 = vector.load %arg9[%c1_95, %c0_96, %c0_97] : memref<12x192x64xbf16, #tpu.memory_space<vmem>>, vector<1x192x64xbf16>
    %94 = vector.shape_cast %93 : vector<1x192x64xbf16> to vector<192x64xbf16>
    %cst_98 = arith.constant 0.000000e+00 : f32
    %95 = vector.broadcast %cst_98 : f32 to vector<1x64xf32>
    %c0_99 = arith.constant 0 : index
    %c0_100 = arith.constant 0 : index
    %96 = vector.load %arg20[%c0_99, %c0_100] : memref<18x64xf32, #tpu.memory_space<vmem>>, vector<1x64xf32>
    tpu.vector_store %arg20[%c0_99, %c0_100], %95 {strides = array<i32>} : memref<18x64xf32, #tpu.memory_space<vmem>>, vector<1x64xf32>,
    %c17_101 = arith.constant 17 : index
    %c0_102 = arith.constant 0 : index
    %97 = vector.load %arg20[%c17_101, %c0_102] : memref<18x64xf32, #tpu.memory_space<vmem>>, vector<1x64xf32>
    tpu.vector_store %arg20[%c17_101, %c0_102], %95 {strides = array<i32>} : memref<18x64xf32, #tpu.memory_space<vmem>>, vector<1x64xf32>,
    %c1_103 = arith.constant 1 : index
    %c0_104 = arith.constant 0 : index
    %98 = vector.load %arg20[%c1_103, %c0_104] : memref<18x64xf32, #tpu.memory_space<vmem>>, vector<16x64xf32>
    tpu.vector_store %arg20[%c1_103, %c0_104], %92 {strides = array<i32>} : memref<18x64xf32, #tpu.memory_space<vmem>>, vector<16x64xf32>,
    %c0_105 = arith.constant 0 : index
    %c0_106 = arith.constant 0 : index
    %99 = vector.load %arg20[%c0_105, %c0_106] : memref<18x64xf32, #tpu.memory_space<vmem>>, vector<16x64xf32>
    %c1_107 = arith.constant 1 : index
    %c0_108 = arith.constant 0 : index
    %100 = vector.load %arg20[%c1_107, %c0_108] : memref<18x64xf32, #tpu.memory_space<vmem>>, vector<16x64xf32>
    %c2_109 = arith.constant 2 : index
    %c0_110 = arith.constant 0 : index
    %101 = vector.load %arg20[%c2_109, %c0_110] : memref<18x64xf32, #tpu.memory_space<vmem>>, vector<16x64xf32>
    %102 = tpu.concatenate %99, %100, %101 in 1 : vector<16x64xf32>, vector<16x64xf32>, vector<16x64xf32> -> vector<16x192xf32>
    %103 = arith.truncf %102 : vector<16x192xf32> to vector<16x192xbf16>
    %cst_111 = arith.constant dense<0.000000e+00> : vector<16x64xf32>
    %104 = tpu.matmul %103, %94, %cst_111 {dimension_numbers = #tpu.dot_dimension_numbers<[1], [0], [0], [1], [0, 0, 1, 1], [], []>} : vector<16x192xbf16>, vector<192x64xbf16>, vector<16x64xf32> -> vector<16x64xf32>
    %105 = arith.addf %104, %60 : vector<16x64xf32>
    %c2_112 = arith.constant 2 : index
    %c0_113 = arith.constant 0 : index
    %c0_114 = arith.constant 0 : index
    %106 = vector.load %arg4[%c2_112, %c0_113, %c0_114] : memref<12x1x64xf32, #tpu.memory_space<vmem>>, vector<1x1x64xf32>
    %107 = vector.shape_cast %106 : vector<1x1x64xf32> to vector<1x64xf32>
    %108 = vector.broadcast %107 : vector<1x64xf32> to vector<16x64xf32>
    %109 = arith.mulf %105, %108 : vector<16x64xf32>
    %c2_115 = arith.constant 2 : index
    %c0_116 = arith.constant 0 : index
    %c0_117 = arith.constant 0 : index
    %110 = vector.load %arg5[%c2_115, %c0_116, %c0_117] : memref<12x1x64xf32, #tpu.memory_space<vmem>>, vector<1x1x64xf32>
    %111 = vector.shape_cast %110 : vector<1x1x64xf32> to vector<1x64xf32>
    %112 = vector.broadcast %111 : vector<1x64xf32> to vector<16x64xf32>
    %113 = arith.addf %109, %112 : vector<16x64xf32>
    %cst_118 = arith.constant 0.000000e+00 : f32
    %114 = vector.broadcast %cst_118 : f32 to vector<16x64xf32>
    %115 = arith.maximumf %113, %114 : vector<16x64xf32>
    %c2_119 = arith.constant 2 : index
    %c0_120 = arith.constant 0 : index
    %c0_121 = arith.constant 0 : index
    %116 = vector.load %arg6[%c2_119, %c0_120, %c0_121] : memref<12x192x64xbf16, #tpu.memory_space<vmem>>, vector<1x192x64xbf16>
    %117 = vector.shape_cast %116 : vector<1x192x64xbf16> to vector<192x64xbf16>
    %cst_122 = arith.constant 0.000000e+00 : f32
    %118 = vector.broadcast %cst_122 : f32 to vector<1x64xf32>
    %c0_123 = arith.constant 0 : index
    %c0_124 = arith.constant 0 : index
    %119 = vector.load %arg20[%c0_123, %c0_124] : memref<18x64xf32, #tpu.memory_space<vmem>>, vector<1x64xf32>
    tpu.vector_store %arg20[%c0_123, %c0_124], %118 {strides = array<i32>} : memref<18x64xf32, #tpu.memory_space<vmem>>, vector<1x64xf32>,
    %c17_125 = arith.constant 17 : index
    %c0_126 = arith.constant 0 : index
    %120 = vector.load %arg20[%c17_125, %c0_126] : memref<18x64xf32, #tpu.memory_space<vmem>>, vector<1x64xf32>
    tpu.vector_store %arg20[%c17_125, %c0_126], %118 {strides = array<i32>} : memref<18x64xf32, #tpu.memory_space<vmem>>, vector<1x64xf32>,
    %c1_127 = arith.constant 1 : index
    %c0_128 = arith.constant 0 : index
    %121 = vector.load %arg20[%c1_127, %c0_128] : memref<18x64xf32, #tpu.memory_space<vmem>>, vector<16x64xf32>
    tpu.vector_store %arg20[%c1_127, %c0_128], %115 {strides = array<i32>} : memref<18x64xf32, #tpu.memory_space<vmem>>, vector<16x64xf32>,
    %c0_129 = arith.constant 0 : index
    %c0_130 = arith.constant 0 : index
    %122 = vector.load %arg20[%c0_129, %c0_130] : memref<18x64xf32, #tpu.memory_space<vmem>>, vector<16x64xf32>
    %c1_131 = arith.constant 1 : index
    %c0_132 = arith.constant 0 : index
    %123 = vector.load %arg20[%c1_131, %c0_132] : memref<18x64xf32, #tpu.memory_space<vmem>>, vector<16x64xf32>
    %c2_133 = arith.constant 2 : index
    %c0_134 = arith.constant 0 : index
    %124 = vector.load %arg20[%c2_133, %c0_134] : memref<18x64xf32, #tpu.memory_space<vmem>>, vector<16x64xf32>
    %125 = tpu.concatenate %122, %123, %124 in 1 : vector<16x64xf32>, vector<16x64xf32>, vector<16x64xf32> -> vector<16x192xf32>
    %126 = arith.truncf %125 : vector<16x192xf32> to vector<16x192xbf16>
    %cst_135 = arith.constant dense<0.000000e+00> : vector<16x64xf32>
    %127 = tpu.matmul %126, %117, %cst_135 {dimension_numbers = #tpu.dot_dimension_numbers<[1], [0], [0], [1], [0, 0, 1, 1], [], []>} : vector<16x192xbf16>, vector<192x64xbf16>, vector<16x64xf32> -> vector<16x64xf32>
    %c2_136 = arith.constant 2 : index
    %c0_137 = arith.constant 0 : index
    %c0_138 = arith.constant 0 : index
    %128 = vector.load %arg7[%c2_136, %c0_137, %c0_138] : memref<12x1x64xf32, #tpu.memory_space<vmem>>, vector<1x1x64xf32>
    %129 = vector.shape_cast %128 : vector<1x1x64xf32> to vector<1x64xf32>
    %130 = vector.broadcast %129 : vector<1x64xf32> to vector<16x64xf32>
    %131 = arith.mulf %127, %130 : vector<16x64xf32>
    %c2_139 = arith.constant 2 : index
    %c0_140 = arith.constant 0 : index
    %c0_141 = arith.constant 0 : index
    %132 = vector.load %arg8[%c2_139, %c0_140, %c0_141] : memref<12x1x64xf32, #tpu.memory_space<vmem>>, vector<1x1x64xf32>
    %133 = vector.shape_cast %132 : vector<1x1x64xf32> to vector<1x64xf32>
    %134 = vector.broadcast %133 : vector<1x64xf32> to vector<16x64xf32>
    %135 = arith.addf %131, %134 : vector<16x64xf32>
    %cst_142 = arith.constant 0.000000e+00 : f32
    %136 = vector.broadcast %cst_142 : f32 to vector<16x64xf32>
    %137 = arith.maximumf %135, %136 : vector<16x64xf32>
    %c2_143 = arith.constant 2 : index
    %c0_144 = arith.constant 0 : index
    %c0_145 = arith.constant 0 : index
    %138 = vector.load %arg9[%c2_143, %c0_144, %c0_145] : memref<12x192x64xbf16, #tpu.memory_space<vmem>>, vector<1x192x64xbf16>
    %139 = vector.shape_cast %138 : vector<1x192x64xbf16> to vector<192x64xbf16>
    %cst_146 = arith.constant 0.000000e+00 : f32
    %140 = vector.broadcast %cst_146 : f32 to vector<1x64xf32>
    %c0_147 = arith.constant 0 : index
    %c0_148 = arith.constant 0 : index
    %141 = vector.load %arg20[%c0_147, %c0_148] : memref<18x64xf32, #tpu.memory_space<vmem>>, vector<1x64xf32>
    tpu.vector_store %arg20[%c0_147, %c0_148], %140 {strides = array<i32>} : memref<18x64xf32, #tpu.memory_space<vmem>>, vector<1x64xf32>,
    %c17_149 = arith.constant 17 : index
    %c0_150 = arith.constant 0 : index
    %142 = vector.load %arg20[%c17_149, %c0_150] : memref<18x64xf32, #tpu.memory_space<vmem>>, vector<1x64xf32>
    tpu.vector_store %arg20[%c17_149, %c0_150], %140 {strides = array<i32>} : memref<18x64xf32, #tpu.memory_space<vmem>>, vector<1x64xf32>,
    %c1_151 = arith.constant 1 : index
    %c0_152 = arith.constant 0 : index
    %143 = vector.load %arg20[%c1_151, %c0_152] : memref<18x64xf32, #tpu.memory_space<vmem>>, vector<16x64xf32>
    tpu.vector_store %arg20[%c1_151, %c0_152], %137 {strides = array<i32>} : memref<18x64xf32, #tpu.memory_space<vmem>>, vector<16x64xf32>,
    %c0_153 = arith.constant 0 : index
    %c0_154 = arith.constant 0 : index
    %144 = vector.load %arg20[%c0_153, %c0_154] : memref<18x64xf32, #tpu.memory_space<vmem>>, vector<16x64xf32>
    %c1_155 = arith.constant 1 : index
    %c0_156 = arith.constant 0 : index
    %145 = vector.load %arg20[%c1_155, %c0_156] : memref<18x64xf32, #tpu.memory_space<vmem>>, vector<16x64xf32>
    %c2_157 = arith.constant 2 : index
    %c0_158 = arith.constant 0 : index
    %146 = vector.load %arg20[%c2_157, %c0_158] : memref<18x64xf32, #tpu.memory_space<vmem>>, vector<16x64xf32>
    %147 = tpu.concatenate %144, %145, %146 in 1 : vector<16x64xf32>, vector<16x64xf32>, vector<16x64xf32> -> vector<16x192xf32>
    %148 = arith.truncf %147 : vector<16x192xf32> to vector<16x192xbf16>
    %cst_159 = arith.constant dense<0.000000e+00> : vector<16x64xf32>
    %149 = tpu.matmul %148, %139, %cst_159 {dimension_numbers = #tpu.dot_dimension_numbers<[1], [0], [0], [1], [0, 0, 1, 1], [], []>} : vector<16x192xbf16>, vector<192x64xbf16>, vector<16x64xf32> -> vector<16x64xf32>
    %150 = arith.addf %149, %105 : vector<16x64xf32>
    %cst_160 = arith.constant dense<0.000000e+00> : vector<64xf32>
    %151 = vector.multi_reduction <add>, %150, %cst_160 [0] : vector<16x64xf32> to vector<64xf32>
    %152 = vector.shape_cast %151 : vector<64xf32> to vector<1x64xf32>
    %cst_161 = arith.constant 1.600000e+01 : f32
    %153 = vector.broadcast %cst_161 : f32 to vector<1x64xf32>
    %154 = arith.divf %152, %153 : vector<1x64xf32>
    %c0_162 = arith.constant 0 : index
    %c0_163 = arith.constant 0 : index
    %c0_164 = arith.constant 0 : index
    %155 = vector.load %arg11[%c0_162, %c0_163, %c0_164] : memref<4x64x16xf32, #tpu.memory_space<vmem>>, vector<1x64x16xf32>
    %156 = vector.shape_cast %155 : vector<1x64x16xf32> to vector<64x16xf32>
    %cst_165 = arith.constant dense<0.000000e+00> : vector<1x16xf32>
    %157 = tpu.matmul %154, %156, %cst_165 {dimension_numbers = #tpu.dot_dimension_numbers<[1], [0], [0], [1], [0, 0, 1, 1], [], []>} : vector<1x64xf32>, vector<64x16xf32>, vector<1x16xf32> -> vector<1x16xf32>
    %c0_166 = arith.constant 0 : index
    %c0_167 = arith.constant 0 : index
    %c0_168 = arith.constant 0 : index
    %158 = vector.load %arg12[%c0_166, %c0_167, %c0_168] : memref<4x1x16xf32, #tpu.memory_space<vmem>>, vector<1x1x16xf32>
    %159 = vector.shape_cast %158 : vector<1x1x16xf32> to vector<1x16xf32>
    %160 = arith.addf %157, %159 : vector<1x16xf32>
    %c3 = arith.constant 3 : index
    %c0_169 = arith.constant 0 : index
    %c0_170 = arith.constant 0 : index
    %161 = vector.load %arg4[%c3, %c0_169, %c0_170] : memref<12x1x64xf32, #tpu.memory_space<vmem>>, vector<1x1x64xf32>
    %162 = vector.shape_cast %161 : vector<1x1x64xf32> to vector<1x64xf32>
    %163 = vector.broadcast %162 : vector<1x64xf32> to vector<16x64xf32>
    %164 = arith.mulf %150, %163 : vector<16x64xf32>
    %c3_171 = arith.constant 3 : index
    %c0_172 = arith.constant 0 : index
    %c0_173 = arith.constant 0 : index
    %165 = vector.load %arg5[%c3_171, %c0_172, %c0_173] : memref<12x1x64xf32, #tpu.memory_space<vmem>>, vector<1x1x64xf32>
    %166 = vector.shape_cast %165 : vector<1x1x64xf32> to vector<1x64xf32>
    %167 = vector.broadcast %166 : vector<1x64xf32> to vector<16x64xf32>
    %168 = arith.addf %164, %167 : vector<16x64xf32>
    %cst_174 = arith.constant 0.000000e+00 : f32
    %169 = vector.broadcast %cst_174 : f32 to vector<16x64xf32>
    %170 = arith.maximumf %168, %169 : vector<16x64xf32>
    %c3_175 = arith.constant 3 : index
    %c0_176 = arith.constant 0 : index
    %c0_177 = arith.constant 0 : index
    %171 = vector.load %arg6[%c3_175, %c0_176, %c0_177] : memref<12x192x64xbf16, #tpu.memory_space<vmem>>, vector<1x192x64xbf16>
    %172 = vector.shape_cast %171 : vector<1x192x64xbf16> to vector<192x64xbf16>
    %cst_178 = arith.constant 0.000000e+00 : f32
    %173 = vector.broadcast %cst_178 : f32 to vector<1x64xf32>
    %c0_179 = arith.constant 0 : index
    %c0_180 = arith.constant 0 : index
    %174 = vector.load %arg20[%c0_179, %c0_180] : memref<18x64xf32, #tpu.memory_space<vmem>>, vector<1x64xf32>
    tpu.vector_store %arg20[%c0_179, %c0_180], %173 {strides = array<i32>} : memref<18x64xf32, #tpu.memory_space<vmem>>, vector<1x64xf32>,
    %c17_181 = arith.constant 17 : index
    %c0_182 = arith.constant 0 : index
    %175 = vector.load %arg20[%c17_181, %c0_182] : memref<18x64xf32, #tpu.memory_space<vmem>>, vector<1x64xf32>
    tpu.vector_store %arg20[%c17_181, %c0_182], %173 {strides = array<i32>} : memref<18x64xf32, #tpu.memory_space<vmem>>, vector<1x64xf32>,
    %c1_183 = arith.constant 1 : index
    %c0_184 = arith.constant 0 : index
    %176 = vector.load %arg20[%c1_183, %c0_184] : memref<18x64xf32, #tpu.memory_space<vmem>>, vector<16x64xf32>
    tpu.vector_store %arg20[%c1_183, %c0_184], %170 {strides = array<i32>} : memref<18x64xf32, #tpu.memory_space<vmem>>, vector<16x64xf32>,
    %c0_185 = arith.constant 0 : index
    %c0_186 = arith.constant 0 : index
    %177 = vector.load %arg20[%c0_185, %c0_186] : memref<18x64xf32, #tpu.memory_space<vmem>>, vector<16x64xf32>
    %c1_187 = arith.constant 1 : index
    %c0_188 = arith.constant 0 : index
    %178 = vector.load %arg20[%c1_187, %c0_188] : memref<18x64xf32, #tpu.memory_space<vmem>>, vector<16x64xf32>
    %c2_189 = arith.constant 2 : index
    %c0_190 = arith.constant 0 : index
    %179 = vector.load %arg20[%c2_189, %c0_190] : memref<18x64xf32, #tpu.memory_space<vmem>>, vector<16x64xf32>
    %180 = tpu.concatenate %177, %178, %179 in 1 : vector<16x64xf32>, vector<16x64xf32>, vector<16x64xf32> -> vector<16x192xf32>
    %181 = arith.truncf %180 : vector<16x192xf32> to vector<16x192xbf16>
    %cst_191 = arith.constant dense<0.000000e+00> : vector<16x64xf32>
    %182 = tpu.matmul %181, %172, %cst_191 {dimension_numbers = #tpu.dot_dimension_numbers<[1], [0], [0], [1], [0, 0, 1, 1], [], []>} : vector<16x192xbf16>, vector<192x64xbf16>, vector<16x64xf32> -> vector<16x64xf32>
    %c3_192 = arith.constant 3 : index
    %c0_193 = arith.constant 0 : index
    %c0_194 = arith.constant 0 : index
    %183 = vector.load %arg7[%c3_192, %c0_193, %c0_194] : memref<12x1x64xf32, #tpu.memory_space<vmem>>, vector<1x1x64xf32>
    %184 = vector.shape_cast %183 : vector<1x1x64xf32> to vector<1x64xf32>
    %185 = vector.broadcast %184 : vector<1x64xf32> to vector<16x64xf32>
    %186 = arith.mulf %182, %185 : vector<16x64xf32>
    %c3_195 = arith.constant 3 : index
    %c0_196 = arith.constant 0 : index
    %c0_197 = arith.constant 0 : index
    %187 = vector.load %arg8[%c3_195, %c0_196, %c0_197] : memref<12x1x64xf32, #tpu.memory_space<vmem>>, vector<1x1x64xf32>
    %188 = vector.shape_cast %187 : vector<1x1x64xf32> to vector<1x64xf32>
    %189 = vector.broadcast %188 : vector<1x64xf32> to vector<16x64xf32>
    %190 = arith.addf %186, %189 : vector<16x64xf32>
    %cst_198 = arith.constant 0.000000e+00 : f32
    %191 = vector.broadcast %cst_198 : f32 to vector<16x64xf32>
    %192 = arith.maximumf %190, %191 : vector<16x64xf32>
    %c3_199 = arith.constant 3 : index
    %c0_200 = arith.constant 0 : index
    %c0_201 = arith.constant 0 : index
    %193 = vector.load %arg9[%c3_199, %c0_200, %c0_201] : memref<12x192x64xbf16, #tpu.memory_space<vmem>>, vector<1x192x64xbf16>
    %194 = vector.shape_cast %193 : vector<1x192x64xbf16> to vector<192x64xbf16>
    %cst_202 = arith.constant 0.000000e+00 : f32
    %195 = vector.broadcast %cst_202 : f32 to vector<1x64xf32>
    %c0_203 = arith.constant 0 : index
    %c0_204 = arith.constant 0 : index
    %196 = vector.load %arg20[%c0_203, %c0_204] : memref<18x64xf32, #tpu.memory_space<vmem>>, vector<1x64xf32>
    tpu.vector_store %arg20[%c0_203, %c0_204], %195 {strides = array<i32>} : memref<18x64xf32, #tpu.memory_space<vmem>>, vector<1x64xf32>,
    %c17_205 = arith.constant 17 : index
    %c0_206 = arith.constant 0 : index
    %197 = vector.load %arg20[%c17_205, %c0_206] : memref<18x64xf32, #tpu.memory_space<vmem>>, vector<1x64xf32>
    tpu.vector_store %arg20[%c17_205, %c0_206], %195 {strides = array<i32>} : memref<18x64xf32, #tpu.memory_space<vmem>>, vector<1x64xf32>,
    %c1_207 = arith.constant 1 : index
    %c0_208 = arith.constant 0 : index
    %198 = vector.load %arg20[%c1_207, %c0_208] : memref<18x64xf32, #tpu.memory_space<vmem>>, vector<16x64xf32>
    tpu.vector_store %arg20[%c1_207, %c0_208], %192 {strides = array<i32>} : memref<18x64xf32, #tpu.memory_space<vmem>>, vector<16x64xf32>,
    %c0_209 = arith.constant 0 : index
    %c0_210 = arith.constant 0 : index
    %199 = vector.load %arg20[%c0_209, %c0_210] : memref<18x64xf32, #tpu.memory_space<vmem>>, vector<16x64xf32>
    %c1_211 = arith.constant 1 : index
    %c0_212 = arith.constant 0 : index
    %200 = vector.load %arg20[%c1_211, %c0_212] : memref<18x64xf32, #tpu.memory_space<vmem>>, vector<16x64xf32>
    %c2_213 = arith.constant 2 : index
    %c0_214 = arith.constant 0 : index
    %201 = vector.load %arg20[%c2_213, %c0_214] : memref<18x64xf32, #tpu.memory_space<vmem>>, vector<16x64xf32>
    %202 = tpu.concatenate %199, %200, %201 in 1 : vector<16x64xf32>, vector<16x64xf32>, vector<16x64xf32> -> vector<16x192xf32>
    %203 = arith.truncf %202 : vector<16x192xf32> to vector<16x192xbf16>
    %cst_215 = arith.constant dense<0.000000e+00> : vector<16x64xf32>
    %204 = tpu.matmul %203, %194, %cst_215 {dimension_numbers = #tpu.dot_dimension_numbers<[1], [0], [0], [1], [0, 0, 1, 1], [], []>} : vector<16x192xbf16>, vector<192x64xbf16>, vector<16x64xf32> -> vector<16x64xf32>
    %205 = arith.truncf %150 : vector<16x64xf32> to vector<16x64xbf16>
    %c0_216 = arith.constant 0 : index
    %c0_217 = arith.constant 0 : index
    %c0_218 = arith.constant 0 : index
    %206 = vector.load %arg10[%c0_216, %c0_217, %c0_218] : memref<3x64x64xbf16, #tpu.memory_space<vmem>>, vector<1x64x64xbf16>
    %207 = vector.shape_cast %206 : vector<1x64x64xbf16> to vector<64x64xbf16>
    %cst_219 = arith.constant dense<0.000000e+00> : vector<16x64xf32>
    %208 = tpu.matmul %205, %207, %cst_219 {dimension_numbers = #tpu.dot_dimension_numbers<[1], [0], [0], [1], [0, 0, 1, 1], [], []>} : vector<16x64xbf16>, vector<64x64xbf16>, vector<16x64xf32> -> vector<16x64xf32>
    %209 = arith.addf %204, %208 : vector<16x64xf32>
    %c4 = arith.constant 4 : index
    %c0_220 = arith.constant 0 : index
    %c0_221 = arith.constant 0 : index
    %210 = vector.load %arg4[%c4, %c0_220, %c0_221] : memref<12x1x64xf32, #tpu.memory_space<vmem>>, vector<1x1x64xf32>
    %211 = vector.shape_cast %210 : vector<1x1x64xf32> to vector<1x64xf32>
    %212 = vector.broadcast %211 : vector<1x64xf32> to vector<16x64xf32>
    %213 = arith.mulf %209, %212 : vector<16x64xf32>
    %c4_222 = arith.constant 4 : index
    %c0_223 = arith.constant 0 : index
    %c0_224 = arith.constant 0 : index
    %214 = vector.load %arg5[%c4_222, %c0_223, %c0_224] : memref<12x1x64xf32, #tpu.memory_space<vmem>>, vector<1x1x64xf32>
    %215 = vector.shape_cast %214 : vector<1x1x64xf32> to vector<1x64xf32>
    %216 = vector.broadcast %215 : vector<1x64xf32> to vector<16x64xf32>
    %217 = arith.addf %213, %216 : vector<16x64xf32>
    %cst_225 = arith.constant 0.000000e+00 : f32
    %218 = vector.broadcast %cst_225 : f32 to vector<16x64xf32>
    %219 = arith.maximumf %217, %218 : vector<16x64xf32>
    %c4_226 = arith.constant 4 : index
    %c0_227 = arith.constant 0 : index
    %c0_228 = arith.constant 0 : index
    %220 = vector.load %arg6[%c4_226, %c0_227, %c0_228] : memref<12x192x64xbf16, #tpu.memory_space<vmem>>, vector<1x192x64xbf16>
    %221 = vector.shape_cast %220 : vector<1x192x64xbf16> to vector<192x64xbf16>
    %cst_229 = arith.constant 0.000000e+00 : f32
    %222 = vector.broadcast %cst_229 : f32 to vector<1x64xf32>
    %c0_230 = arith.constant 0 : index
    %c0_231 = arith.constant 0 : index
    %223 = vector.load %arg20[%c0_230, %c0_231] : memref<18x64xf32, #tpu.memory_space<vmem>>, vector<1x64xf32>
    tpu.vector_store %arg20[%c0_230, %c0_231], %222 {strides = array<i32>} : memref<18x64xf32, #tpu.memory_space<vmem>>, vector<1x64xf32>,
    %c17_232 = arith.constant 17 : index
    %c0_233 = arith.constant 0 : index
    %224 = vector.load %arg20[%c17_232, %c0_233] : memref<18x64xf32, #tpu.memory_space<vmem>>, vector<1x64xf32>
    tpu.vector_store %arg20[%c17_232, %c0_233], %222 {strides = array<i32>} : memref<18x64xf32, #tpu.memory_space<vmem>>, vector<1x64xf32>,
    %c1_234 = arith.constant 1 : index
    %c0_235 = arith.constant 0 : index
    %225 = vector.load %arg20[%c1_234, %c0_235] : memref<18x64xf32, #tpu.memory_space<vmem>>, vector<16x64xf32>
    tpu.vector_store %arg20[%c1_234, %c0_235], %219 {strides = array<i32>} : memref<18x64xf32, #tpu.memory_space<vmem>>, vector<16x64xf32>,
    %c0_236 = arith.constant 0 : index
    %c0_237 = arith.constant 0 : index
    %226 = vector.load %arg20[%c0_236, %c0_237] : memref<18x64xf32, #tpu.memory_space<vmem>>, vector<16x64xf32>
    %c1_238 = arith.constant 1 : index
    %c0_239 = arith.constant 0 : index
    %227 = vector.load %arg20[%c1_238, %c0_239] : memref<18x64xf32, #tpu.memory_space<vmem>>, vector<16x64xf32>
    %c2_240 = arith.constant 2 : index
    %c0_241 = arith.constant 0 : index
    %228 = vector.load %arg20[%c2_240, %c0_241] : memref<18x64xf32, #tpu.memory_space<vmem>>, vector<16x64xf32>
    %229 = tpu.concatenate %226, %227, %228 in 1 : vector<16x64xf32>, vector<16x64xf32>, vector<16x64xf32> -> vector<16x192xf32>
    %230 = arith.truncf %229 : vector<16x192xf32> to vector<16x192xbf16>
    %cst_242 = arith.constant dense<0.000000e+00> : vector<16x64xf32>
    %231 = tpu.matmul %230, %221, %cst_242 {dimension_numbers = #tpu.dot_dimension_numbers<[1], [0], [0], [1], [0, 0, 1, 1], [], []>} : vector<16x192xbf16>, vector<192x64xbf16>, vector<16x64xf32> -> vector<16x64xf32>
    %c4_243 = arith.constant 4 : index
    %c0_244 = arith.constant 0 : index
    %c0_245 = arith.constant 0 : index
    %232 = vector.load %arg7[%c4_243, %c0_244, %c0_245] : memref<12x1x64xf32, #tpu.memory_space<vmem>>, vector<1x1x64xf32>
    %233 = vector.shape_cast %232 : vector<1x1x64xf32> to vector<1x64xf32>
    %234 = vector.broadcast %233 : vector<1x64xf32> to vector<16x64xf32>
    %235 = arith.mulf %231, %234 : vector<16x64xf32>
    %c4_246 = arith.constant 4 : index
    %c0_247 = arith.constant 0 : index
    %c0_248 = arith.constant 0 : index
    %236 = vector.load %arg8[%c4_246, %c0_247, %c0_248] : memref<12x1x64xf32, #tpu.memory_space<vmem>>, vector<1x1x64xf32>
    %237 = vector.shape_cast %236 : vector<1x1x64xf32> to vector<1x64xf32>
    %238 = vector.broadcast %237 : vector<1x64xf32> to vector<16x64xf32>
    %239 = arith.addf %235, %238 : vector<16x64xf32>
    %cst_249 = arith.constant 0.000000e+00 : f32
    %240 = vector.broadcast %cst_249 : f32 to vector<16x64xf32>
    %241 = arith.maximumf %239, %240 : vector<16x64xf32>
    %c4_250 = arith.constant 4 : index
    %c0_251 = arith.constant 0 : index
    %c0_252 = arith.constant 0 : index
    %242 = vector.load %arg9[%c4_250, %c0_251, %c0_252] : memref<12x192x64xbf16, #tpu.memory_space<vmem>>, vector<1x192x64xbf16>
    %243 = vector.shape_cast %242 : vector<1x192x64xbf16> to vector<192x64xbf16>
    %cst_253 = arith.constant 0.000000e+00 : f32
    %244 = vector.broadcast %cst_253 : f32 to vector<1x64xf32>
    %c0_254 = arith.constant 0 : index
    %c0_255 = arith.constant 0 : index
    %245 = vector.load %arg20[%c0_254, %c0_255] : memref<18x64xf32, #tpu.memory_space<vmem>>, vector<1x64xf32>
    tpu.vector_store %arg20[%c0_254, %c0_255], %244 {strides = array<i32>} : memref<18x64xf32, #tpu.memory_space<vmem>>, vector<1x64xf32>,
    %c17_256 = arith.constant 17 : index
    %c0_257 = arith.constant 0 : index
    %246 = vector.load %arg20[%c17_256, %c0_257] : memref<18x64xf32, #tpu.memory_space<vmem>>, vector<1x64xf32>
    tpu.vector_store %arg20[%c17_256, %c0_257], %244 {strides = array<i32>} : memref<18x64xf32, #tpu.memory_space<vmem>>, vector<1x64xf32>,
    %c1_258 = arith.constant 1 : index
    %c0_259 = arith.constant 0 : index
    %247 = vector.load %arg20[%c1_258, %c0_259] : memref<18x64xf32, #tpu.memory_space<vmem>>, vector<16x64xf32>
    tpu.vector_store %arg20[%c1_258, %c0_259], %241 {strides = array<i32>} : memref<18x64xf32, #tpu.memory_space<vmem>>, vector<16x64xf32>,
    %c0_260 = arith.constant 0 : index
    %c0_261 = arith.constant 0 : index
    %248 = vector.load %arg20[%c0_260, %c0_261] : memref<18x64xf32, #tpu.memory_space<vmem>>, vector<16x64xf32>
    %c1_262 = arith.constant 1 : index
    %c0_263 = arith.constant 0 : index
    %249 = vector.load %arg20[%c1_262, %c0_263] : memref<18x64xf32, #tpu.memory_space<vmem>>, vector<16x64xf32>
    %c2_264 = arith.constant 2 : index
    %c0_265 = arith.constant 0 : index
    %250 = vector.load %arg20[%c2_264, %c0_265] : memref<18x64xf32, #tpu.memory_space<vmem>>, vector<16x64xf32>
    %251 = tpu.concatenate %248, %249, %250 in 1 : vector<16x64xf32>, vector<16x64xf32>, vector<16x64xf32> -> vector<16x192xf32>
    %252 = arith.truncf %251 : vector<16x192xf32> to vector<16x192xbf16>
    %cst_266 = arith.constant dense<0.000000e+00> : vector<16x64xf32>
    %253 = tpu.matmul %252, %243, %cst_266 {dimension_numbers = #tpu.dot_dimension_numbers<[1], [0], [0], [1], [0, 0, 1, 1], [], []>} : vector<16x192xbf16>, vector<192x64xbf16>, vector<16x64xf32> -> vector<16x64xf32>
    %254 = arith.addf %253, %209 : vector<16x64xf32>
    %c5 = arith.constant 5 : index
    %c0_267 = arith.constant 0 : index
    %c0_268 = arith.constant 0 : index
    %255 = vector.load %arg4[%c5, %c0_267, %c0_268] : memref<12x1x64xf32, #tpu.memory_space<vmem>>, vector<1x1x64xf32>
    %256 = vector.shape_cast %255 : vector<1x1x64xf32> to vector<1x64xf32>
    %257 = vector.broadcast %256 : vector<1x64xf32> to vector<16x64xf32>
    %258 = arith.mulf %254, %257 : vector<16x64xf32>
    %c5_269 = arith.constant 5 : index
    %c0_270 = arith.constant 0 : index
    %c0_271 = arith.constant 0 : index
    %259 = vector.load %arg5[%c5_269, %c0_270, %c0_271] : memref<12x1x64xf32, #tpu.memory_space<vmem>>, vector<1x1x64xf32>
    %260 = vector.shape_cast %259 : vector<1x1x64xf32> to vector<1x64xf32>
    %261 = vector.broadcast %260 : vector<1x64xf32> to vector<16x64xf32>
    %262 = arith.addf %258, %261 : vector<16x64xf32>
    %cst_272 = arith.constant 0.000000e+00 : f32
    %263 = vector.broadcast %cst_272 : f32 to vector<16x64xf32>
    %264 = arith.maximumf %262, %263 : vector<16x64xf32>
    %c5_273 = arith.constant 5 : index
    %c0_274 = arith.constant 0 : index
    %c0_275 = arith.constant 0 : index
    %265 = vector.load %arg6[%c5_273, %c0_274, %c0_275] : memref<12x192x64xbf16, #tpu.memory_space<vmem>>, vector<1x192x64xbf16>
    %266 = vector.shape_cast %265 : vector<1x192x64xbf16> to vector<192x64xbf16>
    %cst_276 = arith.constant 0.000000e+00 : f32
    %267 = vector.broadcast %cst_276 : f32 to vector<1x64xf32>
    %c0_277 = arith.constant 0 : index
    %c0_278 = arith.constant 0 : index
    %268 = vector.load %arg20[%c0_277, %c0_278] : memref<18x64xf32, #tpu.memory_space<vmem>>, vector<1x64xf32>
    tpu.vector_store %arg20[%c0_277, %c0_278], %267 {strides = array<i32>} : memref<18x64xf32, #tpu.memory_space<vmem>>, vector<1x64xf32>,
    %c17_279 = arith.constant 17 : index
    %c0_280 = arith.constant 0 : index
    %269 = vector.load %arg20[%c17_279, %c0_280] : memref<18x64xf32, #tpu.memory_space<vmem>>, vector<1x64xf32>
    tpu.vector_store %arg20[%c17_279, %c0_280], %267 {strides = array<i32>} : memref<18x64xf32, #tpu.memory_space<vmem>>, vector<1x64xf32>,
    %c1_281 = arith.constant 1 : index
    %c0_282 = arith.constant 0 : index
    %270 = vector.load %arg20[%c1_281, %c0_282] : memref<18x64xf32, #tpu.memory_space<vmem>>, vector<16x64xf32>
    tpu.vector_store %arg20[%c1_281, %c0_282], %264 {strides = array<i32>} : memref<18x64xf32, #tpu.memory_space<vmem>>, vector<16x64xf32>,
    %c0_283 = arith.constant 0 : index
    %c0_284 = arith.constant 0 : index
    %271 = vector.load %arg20[%c0_283, %c0_284] : memref<18x64xf32, #tpu.memory_space<vmem>>, vector<16x64xf32>
    %c1_285 = arith.constant 1 : index
    %c0_286 = arith.constant 0 : index
    %272 = vector.load %arg20[%c1_285, %c0_286] : memref<18x64xf32, #tpu.memory_space<vmem>>, vector<16x64xf32>
    %c2_287 = arith.constant 2 : index
    %c0_288 = arith.constant 0 : index
    %273 = vector.load %arg20[%c2_287, %c0_288] : memref<18x64xf32, #tpu.memory_space<vmem>>, vector<16x64xf32>
    %274 = tpu.concatenate %271, %272, %273 in 1 : vector<16x64xf32>, vector<16x64xf32>, vector<16x64xf32> -> vector<16x192xf32>
    %275 = arith.truncf %274 : vector<16x192xf32> to vector<16x192xbf16>
    %cst_289 = arith.constant dense<0.000000e+00> : vector<16x64xf32>
    %276 = tpu.matmul %275, %266, %cst_289 {dimension_numbers = #tpu.dot_dimension_numbers<[1], [0], [0], [1], [0, 0, 1, 1], [], []>} : vector<16x192xbf16>, vector<192x64xbf16>, vector<16x64xf32> -> vector<16x64xf32>
    %c5_290 = arith.constant 5 : index
    %c0_291 = arith.constant 0 : index
    %c0_292 = arith.constant 0 : index
    %277 = vector.load %arg7[%c5_290, %c0_291, %c0_292] : memref<12x1x64xf32, #tpu.memory_space<vmem>>, vector<1x1x64xf32>
    %278 = vector.shape_cast %277 : vector<1x1x64xf32> to vector<1x64xf32>
    %279 = vector.broadcast %278 : vector<1x64xf32> to vector<16x64xf32>
    %280 = arith.mulf %276, %279 : vector<16x64xf32>
    %c5_293 = arith.constant 5 : index
    %c0_294 = arith.constant 0 : index
    %c0_295 = arith.constant 0 : index
    %281 = vector.load %arg8[%c5_293, %c0_294, %c0_295] : memref<12x1x64xf32, #tpu.memory_space<vmem>>, vector<1x1x64xf32>
    %282 = vector.shape_cast %281 : vector<1x1x64xf32> to vector<1x64xf32>
    %283 = vector.broadcast %282 : vector<1x64xf32> to vector<16x64xf32>
    %284 = arith.addf %280, %283 : vector<16x64xf32>
    %cst_296 = arith.constant 0.000000e+00 : f32
    %285 = vector.broadcast %cst_296 : f32 to vector<16x64xf32>
    %286 = arith.maximumf %284, %285 : vector<16x64xf32>
    %c5_297 = arith.constant 5 : index
    %c0_298 = arith.constant 0 : index
    %c0_299 = arith.constant 0 : index
    %287 = vector.load %arg9[%c5_297, %c0_298, %c0_299] : memref<12x192x64xbf16, #tpu.memory_space<vmem>>, vector<1x192x64xbf16>
    %288 = vector.shape_cast %287 : vector<1x192x64xbf16> to vector<192x64xbf16>
    %cst_300 = arith.constant 0.000000e+00 : f32
    %289 = vector.broadcast %cst_300 : f32 to vector<1x64xf32>
    %c0_301 = arith.constant 0 : index
    %c0_302 = arith.constant 0 : index
    %290 = vector.load %arg20[%c0_301, %c0_302] : memref<18x64xf32, #tpu.memory_space<vmem>>, vector<1x64xf32>
    tpu.vector_store %arg20[%c0_301, %c0_302], %289 {strides = array<i32>} : memref<18x64xf32, #tpu.memory_space<vmem>>, vector<1x64xf32>,
    %c17_303 = arith.constant 17 : index
    %c0_304 = arith.constant 0 : index
    %291 = vector.load %arg20[%c17_303, %c0_304] : memref<18x64xf32, #tpu.memory_space<vmem>>, vector<1x64xf32>
    tpu.vector_store %arg20[%c17_303, %c0_304], %289 {strides = array<i32>} : memref<18x64xf32, #tpu.memory_space<vmem>>, vector<1x64xf32>,
    %c1_305 = arith.constant 1 : index
    %c0_306 = arith.constant 0 : index
    %292 = vector.load %arg20[%c1_305, %c0_306] : memref<18x64xf32, #tpu.memory_space<vmem>>, vector<16x64xf32>
    tpu.vector_store %arg20[%c1_305, %c0_306], %286 {strides = array<i32>} : memref<18x64xf32, #tpu.memory_space<vmem>>, vector<16x64xf32>,
    %c0_307 = arith.constant 0 : index
    %c0_308 = arith.constant 0 : index
    %293 = vector.load %arg20[%c0_307, %c0_308] : memref<18x64xf32, #tpu.memory_space<vmem>>, vector<16x64xf32>
    %c1_309 = arith.constant 1 : index
    %c0_310 = arith.constant 0 : index
    %294 = vector.load %arg20[%c1_309, %c0_310] : memref<18x64xf32, #tpu.memory_space<vmem>>, vector<16x64xf32>
    %c2_311 = arith.constant 2 : index
    %c0_312 = arith.constant 0 : index
    %295 = vector.load %arg20[%c2_311, %c0_312] : memref<18x64xf32, #tpu.memory_space<vmem>>, vector<16x64xf32>
    %296 = tpu.concatenate %293, %294, %295 in 1 : vector<16x64xf32>, vector<16x64xf32>, vector<16x64xf32> -> vector<16x192xf32>
    %297 = arith.truncf %296 : vector<16x192xf32> to vector<16x192xbf16>
    %cst_313 = arith.constant dense<0.000000e+00> : vector<16x64xf32>
    %298 = tpu.matmul %297, %288, %cst_313 {dimension_numbers = #tpu.dot_dimension_numbers<[1], [0], [0], [1], [0, 0, 1, 1], [], []>} : vector<16x192xbf16>, vector<192x64xbf16>, vector<16x64xf32> -> vector<16x64xf32>
    %299 = arith.addf %298, %254 : vector<16x64xf32>
    %cst_314 = arith.constant dense<0.000000e+00> : vector<64xf32>
    %300 = vector.multi_reduction <add>, %299, %cst_314 [0] : vector<16x64xf32> to vector<64xf32>
    %301 = vector.shape_cast %300 : vector<64xf32> to vector<1x64xf32>
    %cst_315 = arith.constant 1.600000e+01 : f32
    %302 = vector.broadcast %cst_315 : f32 to vector<1x64xf32>
    %303 = arith.divf %301, %302 : vector<1x64xf32>
    %c1_316 = arith.constant 1 : index
    %c0_317 = arith.constant 0 : index
    %c0_318 = arith.constant 0 : index
    %304 = vector.load %arg11[%c1_316, %c0_317, %c0_318] : memref<4x64x16xf32, #tpu.memory_space<vmem>>, vector<1x64x16xf32>
    %305 = vector.shape_cast %304 : vector<1x64x16xf32> to vector<64x16xf32>
    %cst_319 = arith.constant dense<0.000000e+00> : vector<1x16xf32>
    %306 = tpu.matmul %303, %305, %cst_319 {dimension_numbers = #tpu.dot_dimension_numbers<[1], [0], [0], [1], [0, 0, 1, 1], [], []>} : vector<1x64xf32>, vector<64x16xf32>, vector<1x16xf32> -> vector<1x16xf32>
    %c1_320 = arith.constant 1 : index
    %c0_321 = arith.constant 0 : index
    %c0_322 = arith.constant 0 : index
    %307 = vector.load %arg12[%c1_320, %c0_321, %c0_322] : memref<4x1x16xf32, #tpu.memory_space<vmem>>, vector<1x1x16xf32>
    %308 = vector.shape_cast %307 : vector<1x1x16xf32> to vector<1x16xf32>
    %309 = arith.addf %306, %308 : vector<1x16xf32>
    %c6 = arith.constant 6 : index
    %c0_323 = arith.constant 0 : index
    %c0_324 = arith.constant 0 : index
    %310 = vector.load %arg4[%c6, %c0_323, %c0_324] : memref<12x1x64xf32, #tpu.memory_space<vmem>>, vector<1x1x64xf32>
    %311 = vector.shape_cast %310 : vector<1x1x64xf32> to vector<1x64xf32>
    %312 = vector.broadcast %311 : vector<1x64xf32> to vector<16x64xf32>
    %313 = arith.mulf %299, %312 : vector<16x64xf32>
    %c6_325 = arith.constant 6 : index
    %c0_326 = arith.constant 0 : index
    %c0_327 = arith.constant 0 : index
    %314 = vector.load %arg5[%c6_325, %c0_326, %c0_327] : memref<12x1x64xf32, #tpu.memory_space<vmem>>, vector<1x1x64xf32>
    %315 = vector.shape_cast %314 : vector<1x1x64xf32> to vector<1x64xf32>
    %316 = vector.broadcast %315 : vector<1x64xf32> to vector<16x64xf32>
    %317 = arith.addf %313, %316 : vector<16x64xf32>
    %cst_328 = arith.constant 0.000000e+00 : f32
    %318 = vector.broadcast %cst_328 : f32 to vector<16x64xf32>
    %319 = arith.maximumf %317, %318 : vector<16x64xf32>
    %c6_329 = arith.constant 6 : index
    %c0_330 = arith.constant 0 : index
    %c0_331 = arith.constant 0 : index
    %320 = vector.load %arg6[%c6_329, %c0_330, %c0_331] : memref<12x192x64xbf16, #tpu.memory_space<vmem>>, vector<1x192x64xbf16>
    %321 = vector.shape_cast %320 : vector<1x192x64xbf16> to vector<192x64xbf16>
    %cst_332 = arith.constant 0.000000e+00 : f32
    %322 = vector.broadcast %cst_332 : f32 to vector<1x64xf32>
    %c0_333 = arith.constant 0 : index
    %c0_334 = arith.constant 0 : index
    %323 = vector.load %arg20[%c0_333, %c0_334] : memref<18x64xf32, #tpu.memory_space<vmem>>, vector<1x64xf32>
    tpu.vector_store %arg20[%c0_333, %c0_334], %322 {strides = array<i32>} : memref<18x64xf32, #tpu.memory_space<vmem>>, vector<1x64xf32>,
    %c17_335 = arith.constant 17 : index
    %c0_336 = arith.constant 0 : index
    %324 = vector.load %arg20[%c17_335, %c0_336] : memref<18x64xf32, #tpu.memory_space<vmem>>, vector<1x64xf32>
    tpu.vector_store %arg20[%c17_335, %c0_336], %322 {strides = array<i32>} : memref<18x64xf32, #tpu.memory_space<vmem>>, vector<1x64xf32>,
    %c1_337 = arith.constant 1 : index
    %c0_338 = arith.constant 0 : index
    %325 = vector.load %arg20[%c1_337, %c0_338] : memref<18x64xf32, #tpu.memory_space<vmem>>, vector<16x64xf32>
    tpu.vector_store %arg20[%c1_337, %c0_338], %319 {strides = array<i32>} : memref<18x64xf32, #tpu.memory_space<vmem>>, vector<16x64xf32>,
    %c0_339 = arith.constant 0 : index
    %c0_340 = arith.constant 0 : index
    %326 = vector.load %arg20[%c0_339, %c0_340] : memref<18x64xf32, #tpu.memory_space<vmem>>, vector<16x64xf32>
    %c1_341 = arith.constant 1 : index
    %c0_342 = arith.constant 0 : index
    %327 = vector.load %arg20[%c1_341, %c0_342] : memref<18x64xf32, #tpu.memory_space<vmem>>, vector<16x64xf32>
    %c2_343 = arith.constant 2 : index
    %c0_344 = arith.constant 0 : index
    %328 = vector.load %arg20[%c2_343, %c0_344] : memref<18x64xf32, #tpu.memory_space<vmem>>, vector<16x64xf32>
    %329 = tpu.concatenate %326, %327, %328 in 1 : vector<16x64xf32>, vector<16x64xf32>, vector<16x64xf32> -> vector<16x192xf32>
    %330 = arith.truncf %329 : vector<16x192xf32> to vector<16x192xbf16>
    %cst_345 = arith.constant dense<0.000000e+00> : vector<16x64xf32>
    %331 = tpu.matmul %330, %321, %cst_345 {dimension_numbers = #tpu.dot_dimension_numbers<[1], [0], [0], [1], [0, 0, 1, 1], [], []>} : vector<16x192xbf16>, vector<192x64xbf16>, vector<16x64xf32> -> vector<16x64xf32>
    %c6_346 = arith.constant 6 : index
    %c0_347 = arith.constant 0 : index
    %c0_348 = arith.constant 0 : index
    %332 = vector.load %arg7[%c6_346, %c0_347, %c0_348] : memref<12x1x64xf32, #tpu.memory_space<vmem>>, vector<1x1x64xf32>
    %333 = vector.shape_cast %332 : vector<1x1x64xf32> to vector<1x64xf32>
    %334 = vector.broadcast %333 : vector<1x64xf32> to vector<16x64xf32>
    %335 = arith.mulf %331, %334 : vector<16x64xf32>
    %c6_349 = arith.constant 6 : index
    %c0_350 = arith.constant 0 : index
    %c0_351 = arith.constant 0 : index
    %336 = vector.load %arg8[%c6_349, %c0_350, %c0_351] : memref<12x1x64xf32, #tpu.memory_space<vmem>>, vector<1x1x64xf32>
    %337 = vector.shape_cast %336 : vector<1x1x64xf32> to vector<1x64xf32>
    %338 = vector.broadcast %337 : vector<1x64xf32> to vector<16x64xf32>
    %339 = arith.addf %335, %338 : vector<16x64xf32>
    %cst_352 = arith.constant 0.000000e+00 : f32
    %340 = vector.broadcast %cst_352 : f32 to vector<16x64xf32>
    %341 = arith.maximumf %339, %340 : vector<16x64xf32>
    %c6_353 = arith.constant 6 : index
    %c0_354 = arith.constant 0 : index
    %c0_355 = arith.constant 0 : index
    %342 = vector.load %arg9[%c6_353, %c0_354, %c0_355] : memref<12x192x64xbf16, #tpu.memory_space<vmem>>, vector<1x192x64xbf16>
    %343 = vector.shape_cast %342 : vector<1x192x64xbf16> to vector<192x64xbf16>
    %cst_356 = arith.constant 0.000000e+00 : f32
    %344 = vector.broadcast %cst_356 : f32 to vector<1x64xf32>
    %c0_357 = arith.constant 0 : index
    %c0_358 = arith.constant 0 : index
    %345 = vector.load %arg20[%c0_357, %c0_358] : memref<18x64xf32, #tpu.memory_space<vmem>>, vector<1x64xf32>
    tpu.vector_store %arg20[%c0_357, %c0_358], %344 {strides = array<i32>} : memref<18x64xf32, #tpu.memory_space<vmem>>, vector<1x64xf32>,
    %c17_359 = arith.constant 17 : index
    %c0_360 = arith.constant 0 : index
    %346 = vector.load %arg20[%c17_359, %c0_360] : memref<18x64xf32, #tpu.memory_space<vmem>>, vector<1x64xf32>
    tpu.vector_store %arg20[%c17_359, %c0_360], %344 {strides = array<i32>} : memref<18x64xf32, #tpu.memory_space<vmem>>, vector<1x64xf32>,
    %c1_361 = arith.constant 1 : index
    %c0_362 = arith.constant 0 : index
    %347 = vector.load %arg20[%c1_361, %c0_362] : memref<18x64xf32, #tpu.memory_space<vmem>>, vector<16x64xf32>
    tpu.vector_store %arg20[%c1_361, %c0_362], %341 {strides = array<i32>} : memref<18x64xf32, #tpu.memory_space<vmem>>, vector<16x64xf32>,
    %c0_363 = arith.constant 0 : index
    %c0_364 = arith.constant 0 : index
    %348 = vector.load %arg20[%c0_363, %c0_364] : memref<18x64xf32, #tpu.memory_space<vmem>>, vector<16x64xf32>
    %c1_365 = arith.constant 1 : index
    %c0_366 = arith.constant 0 : index
    %349 = vector.load %arg20[%c1_365, %c0_366] : memref<18x64xf32, #tpu.memory_space<vmem>>, vector<16x64xf32>
    %c2_367 = arith.constant 2 : index
    %c0_368 = arith.constant 0 : index
    %350 = vector.load %arg20[%c2_367, %c0_368] : memref<18x64xf32, #tpu.memory_space<vmem>>, vector<16x64xf32>
    %351 = tpu.concatenate %348, %349, %350 in 1 : vector<16x64xf32>, vector<16x64xf32>, vector<16x64xf32> -> vector<16x192xf32>
    %352 = arith.truncf %351 : vector<16x192xf32> to vector<16x192xbf16>
    %cst_369 = arith.constant dense<0.000000e+00> : vector<16x64xf32>
    %353 = tpu.matmul %352, %343, %cst_369 {dimension_numbers = #tpu.dot_dimension_numbers<[1], [0], [0], [1], [0, 0, 1, 1], [], []>} : vector<16x192xbf16>, vector<192x64xbf16>, vector<16x64xf32> -> vector<16x64xf32>
    %354 = arith.truncf %299 : vector<16x64xf32> to vector<16x64xbf16>
    %c1_370 = arith.constant 1 : index
    %c0_371 = arith.constant 0 : index
    %c0_372 = arith.constant 0 : index
    %355 = vector.load %arg10[%c1_370, %c0_371, %c0_372] : memref<3x64x64xbf16, #tpu.memory_space<vmem>>, vector<1x64x64xbf16>
    %356 = vector.shape_cast %355 : vector<1x64x64xbf16> to vector<64x64xbf16>
    %cst_373 = arith.constant dense<0.000000e+00> : vector<16x64xf32>
    %357 = tpu.matmul %354, %356, %cst_373 {dimension_numbers = #tpu.dot_dimension_numbers<[1], [0], [0], [1], [0, 0, 1, 1], [], []>} : vector<16x64xbf16>, vector<64x64xbf16>, vector<16x64xf32> -> vector<16x64xf32>
    %358 = arith.addf %353, %357 : vector<16x64xf32>
    %c7 = arith.constant 7 : index
    %c0_374 = arith.constant 0 : index
    %c0_375 = arith.constant 0 : index
    %359 = vector.load %arg4[%c7, %c0_374, %c0_375] : memref<12x1x64xf32, #tpu.memory_space<vmem>>, vector<1x1x64xf32>
    %360 = vector.shape_cast %359 : vector<1x1x64xf32> to vector<1x64xf32>
    %361 = vector.broadcast %360 : vector<1x64xf32> to vector<16x64xf32>
    %362 = arith.mulf %358, %361 : vector<16x64xf32>
    %c7_376 = arith.constant 7 : index
    %c0_377 = arith.constant 0 : index
    %c0_378 = arith.constant 0 : index
    %363 = vector.load %arg5[%c7_376, %c0_377, %c0_378] : memref<12x1x64xf32, #tpu.memory_space<vmem>>, vector<1x1x64xf32>
    %364 = vector.shape_cast %363 : vector<1x1x64xf32> to vector<1x64xf32>
    %365 = vector.broadcast %364 : vector<1x64xf32> to vector<16x64xf32>
    %366 = arith.addf %362, %365 : vector<16x64xf32>
    %cst_379 = arith.constant 0.000000e+00 : f32
    %367 = vector.broadcast %cst_379 : f32 to vector<16x64xf32>
    %368 = arith.maximumf %366, %367 : vector<16x64xf32>
    %c7_380 = arith.constant 7 : index
    %c0_381 = arith.constant 0 : index
    %c0_382 = arith.constant 0 : index
    %369 = vector.load %arg6[%c7_380, %c0_381, %c0_382] : memref<12x192x64xbf16, #tpu.memory_space<vmem>>, vector<1x192x64xbf16>
    %370 = vector.shape_cast %369 : vector<1x192x64xbf16> to vector<192x64xbf16>
    %cst_383 = arith.constant 0.000000e+00 : f32
    %371 = vector.broadcast %cst_383 : f32 to vector<1x64xf32>
    %c0_384 = arith.constant 0 : index
    %c0_385 = arith.constant 0 : index
    %372 = vector.load %arg20[%c0_384, %c0_385] : memref<18x64xf32, #tpu.memory_space<vmem>>, vector<1x64xf32>
    tpu.vector_store %arg20[%c0_384, %c0_385], %371 {strides = array<i32>} : memref<18x64xf32, #tpu.memory_space<vmem>>, vector<1x64xf32>,
    %c17_386 = arith.constant 17 : index
    %c0_387 = arith.constant 0 : index
    %373 = vector.load %arg20[%c17_386, %c0_387] : memref<18x64xf32, #tpu.memory_space<vmem>>, vector<1x64xf32>
    tpu.vector_store %arg20[%c17_386, %c0_387], %371 {strides = array<i32>} : memref<18x64xf32, #tpu.memory_space<vmem>>, vector<1x64xf32>,
    %c1_388 = arith.constant 1 : index
    %c0_389 = arith.constant 0 : index
    %374 = vector.load %arg20[%c1_388, %c0_389] : memref<18x64xf32, #tpu.memory_space<vmem>>, vector<16x64xf32>
    tpu.vector_store %arg20[%c1_388, %c0_389], %368 {strides = array<i32>} : memref<18x64xf32, #tpu.memory_space<vmem>>, vector<16x64xf32>,
    %c0_390 = arith.constant 0 : index
    %c0_391 = arith.constant 0 : index
    %375 = vector.load %arg20[%c0_390, %c0_391] : memref<18x64xf32, #tpu.memory_space<vmem>>, vector<16x64xf32>
    %c1_392 = arith.constant 1 : index
    %c0_393 = arith.constant 0 : index
    %376 = vector.load %arg20[%c1_392, %c0_393] : memref<18x64xf32, #tpu.memory_space<vmem>>, vector<16x64xf32>
    %c2_394 = arith.constant 2 : index
    %c0_395 = arith.constant 0 : index
    %377 = vector.load %arg20[%c2_394, %c0_395] : memref<18x64xf32, #tpu.memory_space<vmem>>, vector<16x64xf32>
    %378 = tpu.concatenate %375, %376, %377 in 1 : vector<16x64xf32>, vector<16x64xf32>, vector<16x64xf32> -> vector<16x192xf32>
    %379 = arith.truncf %378 : vector<16x192xf32> to vector<16x192xbf16>
    %cst_396 = arith.constant dense<0.000000e+00> : vector<16x64xf32>
    %380 = tpu.matmul %379, %370, %cst_396 {dimension_numbers = #tpu.dot_dimension_numbers<[1], [0], [0], [1], [0, 0, 1, 1], [], []>} : vector<16x192xbf16>, vector<192x64xbf16>, vector<16x64xf32> -> vector<16x64xf32>
    %c7_397 = arith.constant 7 : index
    %c0_398 = arith.constant 0 : index
    %c0_399 = arith.constant 0 : index
    %381 = vector.load %arg7[%c7_397, %c0_398, %c0_399] : memref<12x1x64xf32, #tpu.memory_space<vmem>>, vector<1x1x64xf32>
    %382 = vector.shape_cast %381 : vector<1x1x64xf32> to vector<1x64xf32>
    %383 = vector.broadcast %382 : vector<1x64xf32> to vector<16x64xf32>
    %384 = arith.mulf %380, %383 : vector<16x64xf32>
    %c7_400 = arith.constant 7 : index
    %c0_401 = arith.constant 0 : index
    %c0_402 = arith.constant 0 : index
    %385 = vector.load %arg8[%c7_400, %c0_401, %c0_402] : memref<12x1x64xf32, #tpu.memory_space<vmem>>, vector<1x1x64xf32>
    %386 = vector.shape_cast %385 : vector<1x1x64xf32> to vector<1x64xf32>
    %387 = vector.broadcast %386 : vector<1x64xf32> to vector<16x64xf32>
    %388 = arith.addf %384, %387 : vector<16x64xf32>
    %cst_403 = arith.constant 0.000000e+00 : f32
    %389 = vector.broadcast %cst_403 : f32 to vector<16x64xf32>
    %390 = arith.maximumf %388, %389 : vector<16x64xf32>
    %c7_404 = arith.constant 7 : index
    %c0_405 = arith.constant 0 : index
    %c0_406 = arith.constant 0 : index
    %391 = vector.load %arg9[%c7_404, %c0_405, %c0_406] : memref<12x192x64xbf16, #tpu.memory_space<vmem>>, vector<1x192x64xbf16>
    %392 = vector.shape_cast %391 : vector<1x192x64xbf16> to vector<192x64xbf16>
    %cst_407 = arith.constant 0.000000e+00 : f32
    %393 = vector.broadcast %cst_407 : f32 to vector<1x64xf32>
    %c0_408 = arith.constant 0 : index
    %c0_409 = arith.constant 0 : index
    %394 = vector.load %arg20[%c0_408, %c0_409] : memref<18x64xf32, #tpu.memory_space<vmem>>, vector<1x64xf32>
    tpu.vector_store %arg20[%c0_408, %c0_409], %393 {strides = array<i32>} : memref<18x64xf32, #tpu.memory_space<vmem>>, vector<1x64xf32>,
    %c17_410 = arith.constant 17 : index
    %c0_411 = arith.constant 0 : index
    %395 = vector.load %arg20[%c17_410, %c0_411] : memref<18x64xf32, #tpu.memory_space<vmem>>, vector<1x64xf32>
    tpu.vector_store %arg20[%c17_410, %c0_411], %393 {strides = array<i32>} : memref<18x64xf32, #tpu.memory_space<vmem>>, vector<1x64xf32>,
    %c1_412 = arith.constant 1 : index
    %c0_413 = arith.constant 0 : index
    %396 = vector.load %arg20[%c1_412, %c0_413] : memref<18x64xf32, #tpu.memory_space<vmem>>, vector<16x64xf32>
    tpu.vector_store %arg20[%c1_412, %c0_413], %390 {strides = array<i32>} : memref<18x64xf32, #tpu.memory_space<vmem>>, vector<16x64xf32>,
    %c0_414 = arith.constant 0 : index
    %c0_415 = arith.constant 0 : index
    %397 = vector.load %arg20[%c0_414, %c0_415] : memref<18x64xf32, #tpu.memory_space<vmem>>, vector<16x64xf32>
    %c1_416 = arith.constant 1 : index
    %c0_417 = arith.constant 0 : index
    %398 = vector.load %arg20[%c1_416, %c0_417] : memref<18x64xf32, #tpu.memory_space<vmem>>, vector<16x64xf32>
    %c2_418 = arith.constant 2 : index
    %c0_419 = arith.constant 0 : index
    %399 = vector.load %arg20[%c2_418, %c0_419] : memref<18x64xf32, #tpu.memory_space<vmem>>, vector<16x64xf32>
    %400 = tpu.concatenate %397, %398, %399 in 1 : vector<16x64xf32>, vector<16x64xf32>, vector<16x64xf32> -> vector<16x192xf32>
    %401 = arith.truncf %400 : vector<16x192xf32> to vector<16x192xbf16>
    %cst_420 = arith.constant dense<0.000000e+00> : vector<16x64xf32>
    %402 = tpu.matmul %401, %392, %cst_420 {dimension_numbers = #tpu.dot_dimension_numbers<[1], [0], [0], [1], [0, 0, 1, 1], [], []>} : vector<16x192xbf16>, vector<192x64xbf16>, vector<16x64xf32> -> vector<16x64xf32>
    %403 = arith.addf %402, %358 : vector<16x64xf32>
    %c8 = arith.constant 8 : index
    %c0_421 = arith.constant 0 : index
    %c0_422 = arith.constant 0 : index
    %404 = vector.load %arg4[%c8, %c0_421, %c0_422] : memref<12x1x64xf32, #tpu.memory_space<vmem>>, vector<1x1x64xf32>
    %405 = vector.shape_cast %404 : vector<1x1x64xf32> to vector<1x64xf32>
    %406 = vector.broadcast %405 : vector<1x64xf32> to vector<16x64xf32>
    %407 = arith.mulf %403, %406 : vector<16x64xf32>
    %c8_423 = arith.constant 8 : index
    %c0_424 = arith.constant 0 : index
    %c0_425 = arith.constant 0 : index
    %408 = vector.load %arg5[%c8_423, %c0_424, %c0_425] : memref<12x1x64xf32, #tpu.memory_space<vmem>>, vector<1x1x64xf32>
    %409 = vector.shape_cast %408 : vector<1x1x64xf32> to vector<1x64xf32>
    %410 = vector.broadcast %409 : vector<1x64xf32> to vector<16x64xf32>
    %411 = arith.addf %407, %410 : vector<16x64xf32>
    %cst_426 = arith.constant 0.000000e+00 : f32
    %412 = vector.broadcast %cst_426 : f32 to vector<16x64xf32>
    %413 = arith.maximumf %411, %412 : vector<16x64xf32>
    %c8_427 = arith.constant 8 : index
    %c0_428 = arith.constant 0 : index
    %c0_429 = arith.constant 0 : index
    %414 = vector.load %arg6[%c8_427, %c0_428, %c0_429] : memref<12x192x64xbf16, #tpu.memory_space<vmem>>, vector<1x192x64xbf16>
    %415 = vector.shape_cast %414 : vector<1x192x64xbf16> to vector<192x64xbf16>
    %cst_430 = arith.constant 0.000000e+00 : f32
    %416 = vector.broadcast %cst_430 : f32 to vector<1x64xf32>
    %c0_431 = arith.constant 0 : index
    %c0_432 = arith.constant 0 : index
    %417 = vector.load %arg20[%c0_431, %c0_432] : memref<18x64xf32, #tpu.memory_space<vmem>>, vector<1x64xf32>
    tpu.vector_store %arg20[%c0_431, %c0_432], %416 {strides = array<i32>} : memref<18x64xf32, #tpu.memory_space<vmem>>, vector<1x64xf32>,
    %c17_433 = arith.constant 17 : index
    %c0_434 = arith.constant 0 : index
    %418 = vector.load %arg20[%c17_433, %c0_434] : memref<18x64xf32, #tpu.memory_space<vmem>>, vector<1x64xf32>
    tpu.vector_store %arg20[%c17_433, %c0_434], %416 {strides = array<i32>} : memref<18x64xf32, #tpu.memory_space<vmem>>, vector<1x64xf32>,
    %c1_435 = arith.constant 1 : index
    %c0_436 = arith.constant 0 : index
    %419 = vector.load %arg20[%c1_435, %c0_436] : memref<18x64xf32, #tpu.memory_space<vmem>>, vector<16x64xf32>
    tpu.vector_store %arg20[%c1_435, %c0_436], %413 {strides = array<i32>} : memref<18x64xf32, #tpu.memory_space<vmem>>, vector<16x64xf32>,
    %c0_437 = arith.constant 0 : index
    %c0_438 = arith.constant 0 : index
    %420 = vector.load %arg20[%c0_437, %c0_438] : memref<18x64xf32, #tpu.memory_space<vmem>>, vector<16x64xf32>
    %c1_439 = arith.constant 1 : index
    %c0_440 = arith.constant 0 : index
    %421 = vector.load %arg20[%c1_439, %c0_440] : memref<18x64xf32, #tpu.memory_space<vmem>>, vector<16x64xf32>
    %c2_441 = arith.constant 2 : index
    %c0_442 = arith.constant 0 : index
    %422 = vector.load %arg20[%c2_441, %c0_442] : memref<18x64xf32, #tpu.memory_space<vmem>>, vector<16x64xf32>
    %423 = tpu.concatenate %420, %421, %422 in 1 : vector<16x64xf32>, vector<16x64xf32>, vector<16x64xf32> -> vector<16x192xf32>
    %424 = arith.truncf %423 : vector<16x192xf32> to vector<16x192xbf16>
    %cst_443 = arith.constant dense<0.000000e+00> : vector<16x64xf32>
    %425 = tpu.matmul %424, %415, %cst_443 {dimension_numbers = #tpu.dot_dimension_numbers<[1], [0], [0], [1], [0, 0, 1, 1], [], []>} : vector<16x192xbf16>, vector<192x64xbf16>, vector<16x64xf32> -> vector<16x64xf32>
    %c8_444 = arith.constant 8 : index
    %c0_445 = arith.constant 0 : index
    %c0_446 = arith.constant 0 : index
    %426 = vector.load %arg7[%c8_444, %c0_445, %c0_446] : memref<12x1x64xf32, #tpu.memory_space<vmem>>, vector<1x1x64xf32>
    %427 = vector.shape_cast %426 : vector<1x1x64xf32> to vector<1x64xf32>
    %428 = vector.broadcast %427 : vector<1x64xf32> to vector<16x64xf32>
    %429 = arith.mulf %425, %428 : vector<16x64xf32>
    %c8_447 = arith.constant 8 : index
    %c0_448 = arith.constant 0 : index
    %c0_449 = arith.constant 0 : index
    %430 = vector.load %arg8[%c8_447, %c0_448, %c0_449] : memref<12x1x64xf32, #tpu.memory_space<vmem>>, vector<1x1x64xf32>
    %431 = vector.shape_cast %430 : vector<1x1x64xf32> to vector<1x64xf32>
    %432 = vector.broadcast %431 : vector<1x64xf32> to vector<16x64xf32>
    %433 = arith.addf %429, %432 : vector<16x64xf32>
    %cst_450 = arith.constant 0.000000e+00 : f32
    %434 = vector.broadcast %cst_450 : f32 to vector<16x64xf32>
    %435 = arith.maximumf %433, %434 : vector<16x64xf32>
    %c8_451 = arith.constant 8 : index
    %c0_452 = arith.constant 0 : index
    %c0_453 = arith.constant 0 : index
    %436 = vector.load %arg9[%c8_451, %c0_452, %c0_453] : memref<12x192x64xbf16, #tpu.memory_space<vmem>>, vector<1x192x64xbf16>
    %437 = vector.shape_cast %436 : vector<1x192x64xbf16> to vector<192x64xbf16>
    %cst_454 = arith.constant 0.000000e+00 : f32
    %438 = vector.broadcast %cst_454 : f32 to vector<1x64xf32>
    %c0_455 = arith.constant 0 : index
    %c0_456 = arith.constant 0 : index
    %439 = vector.load %arg20[%c0_455, %c0_456] : memref<18x64xf32, #tpu.memory_space<vmem>>, vector<1x64xf32>
    tpu.vector_store %arg20[%c0_455, %c0_456], %438 {strides = array<i32>} : memref<18x64xf32, #tpu.memory_space<vmem>>, vector<1x64xf32>,
    %c17_457 = arith.constant 17 : index
    %c0_458 = arith.constant 0 : index
    %440 = vector.load %arg20[%c17_457, %c0_458] : memref<18x64xf32, #tpu.memory_space<vmem>>, vector<1x64xf32>
    tpu.vector_store %arg20[%c17_457, %c0_458], %438 {strides = array<i32>} : memref<18x64xf32, #tpu.memory_space<vmem>>, vector<1x64xf32>,
    %c1_459 = arith.constant 1 : index
    %c0_460 = arith.constant 0 : index
    %441 = vector.load %arg20[%c1_459, %c0_460] : memref<18x64xf32, #tpu.memory_space<vmem>>, vector<16x64xf32>
    tpu.vector_store %arg20[%c1_459, %c0_460], %435 {strides = array<i32>} : memref<18x64xf32, #tpu.memory_space<vmem>>, vector<16x64xf32>,
    %c0_461 = arith.constant 0 : index
    %c0_462 = arith.constant 0 : index
    %442 = vector.load %arg20[%c0_461, %c0_462] : memref<18x64xf32, #tpu.memory_space<vmem>>, vector<16x64xf32>
    %c1_463 = arith.constant 1 : index
    %c0_464 = arith.constant 0 : index
    %443 = vector.load %arg20[%c1_463, %c0_464] : memref<18x64xf32, #tpu.memory_space<vmem>>, vector<16x64xf32>
    %c2_465 = arith.constant 2 : index
    %c0_466 = arith.constant 0 : index
    %444 = vector.load %arg20[%c2_465, %c0_466] : memref<18x64xf32, #tpu.memory_space<vmem>>, vector<16x64xf32>
    %445 = tpu.concatenate %442, %443, %444 in 1 : vector<16x64xf32>, vector<16x64xf32>, vector<16x64xf32> -> vector<16x192xf32>
    %446 = arith.truncf %445 : vector<16x192xf32> to vector<16x192xbf16>
    %cst_467 = arith.constant dense<0.000000e+00> : vector<16x64xf32>
    %447 = tpu.matmul %446, %437, %cst_467 {dimension_numbers = #tpu.dot_dimension_numbers<[1], [0], [0], [1], [0, 0, 1, 1], [], []>} : vector<16x192xbf16>, vector<192x64xbf16>, vector<16x64xf32> -> vector<16x64xf32>
    %448 = arith.addf %447, %403 : vector<16x64xf32>
    %cst_468 = arith.constant dense<0.000000e+00> : vector<64xf32>
    %449 = vector.multi_reduction <add>, %448, %cst_468 [0] : vector<16x64xf32> to vector<64xf32>
    %450 = vector.shape_cast %449 : vector<64xf32> to vector<1x64xf32>
    %cst_469 = arith.constant 1.600000e+01 : f32
    %451 = vector.broadcast %cst_469 : f32 to vector<1x64xf32>
    %452 = arith.divf %450, %451 : vector<1x64xf32>
    %c2_470 = arith.constant 2 : index
    %c0_471 = arith.constant 0 : index
    %c0_472 = arith.constant 0 : index
    %453 = vector.load %arg11[%c2_470, %c0_471, %c0_472] : memref<4x64x16xf32, #tpu.memory_space<vmem>>, vector<1x64x16xf32>
    %454 = vector.shape_cast %453 : vector<1x64x16xf32> to vector<64x16xf32>
    %cst_473 = arith.constant dense<0.000000e+00> : vector<1x16xf32>
    %455 = tpu.matmul %452, %454, %cst_473 {dimension_numbers = #tpu.dot_dimension_numbers<[1], [0], [0], [1], [0, 0, 1, 1], [], []>} : vector<1x64xf32>, vector<64x16xf32>, vector<1x16xf32> -> vector<1x16xf32>
    %c2_474 = arith.constant 2 : index
    %c0_475 = arith.constant 0 : index
    %c0_476 = arith.constant 0 : index
    %456 = vector.load %arg12[%c2_474, %c0_475, %c0_476] : memref<4x1x16xf32, #tpu.memory_space<vmem>>, vector<1x1x16xf32>
    %457 = vector.shape_cast %456 : vector<1x1x16xf32> to vector<1x16xf32>
    %458 = arith.addf %455, %457 : vector<1x16xf32>
    %c9 = arith.constant 9 : index
    %c0_477 = arith.constant 0 : index
    %c0_478 = arith.constant 0 : index
    %459 = vector.load %arg4[%c9, %c0_477, %c0_478] : memref<12x1x64xf32, #tpu.memory_space<vmem>>, vector<1x1x64xf32>
    %460 = vector.shape_cast %459 : vector<1x1x64xf32> to vector<1x64xf32>
    %461 = vector.broadcast %460 : vector<1x64xf32> to vector<16x64xf32>
    %462 = arith.mulf %448, %461 : vector<16x64xf32>
    %c9_479 = arith.constant 9 : index
    %c0_480 = arith.constant 0 : index
    %c0_481 = arith.constant 0 : index
    %463 = vector.load %arg5[%c9_479, %c0_480, %c0_481] : memref<12x1x64xf32, #tpu.memory_space<vmem>>, vector<1x1x64xf32>
    %464 = vector.shape_cast %463 : vector<1x1x64xf32> to vector<1x64xf32>
    %465 = vector.broadcast %464 : vector<1x64xf32> to vector<16x64xf32>
    %466 = arith.addf %462, %465 : vector<16x64xf32>
    %cst_482 = arith.constant 0.000000e+00 : f32
    %467 = vector.broadcast %cst_482 : f32 to vector<16x64xf32>
    %468 = arith.maximumf %466, %467 : vector<16x64xf32>
    %c9_483 = arith.constant 9 : index
    %c0_484 = arith.constant 0 : index
    %c0_485 = arith.constant 0 : index
    %469 = vector.load %arg6[%c9_483, %c0_484, %c0_485] : memref<12x192x64xbf16, #tpu.memory_space<vmem>>, vector<1x192x64xbf16>
    %470 = vector.shape_cast %469 : vector<1x192x64xbf16> to vector<192x64xbf16>
    %cst_486 = arith.constant 0.000000e+00 : f32
    %471 = vector.broadcast %cst_486 : f32 to vector<1x64xf32>
    %c0_487 = arith.constant 0 : index
    %c0_488 = arith.constant 0 : index
    %472 = vector.load %arg20[%c0_487, %c0_488] : memref<18x64xf32, #tpu.memory_space<vmem>>, vector<1x64xf32>
    tpu.vector_store %arg20[%c0_487, %c0_488], %471 {strides = array<i32>} : memref<18x64xf32, #tpu.memory_space<vmem>>, vector<1x64xf32>,
    %c17_489 = arith.constant 17 : index
    %c0_490 = arith.constant 0 : index
    %473 = vector.load %arg20[%c17_489, %c0_490] : memref<18x64xf32, #tpu.memory_space<vmem>>, vector<1x64xf32>
    tpu.vector_store %arg20[%c17_489, %c0_490], %471 {strides = array<i32>} : memref<18x64xf32, #tpu.memory_space<vmem>>, vector<1x64xf32>,
    %c1_491 = arith.constant 1 : index
    %c0_492 = arith.constant 0 : index
    %474 = vector.load %arg20[%c1_491, %c0_492] : memref<18x64xf32, #tpu.memory_space<vmem>>, vector<16x64xf32>
    tpu.vector_store %arg20[%c1_491, %c0_492], %468 {strides = array<i32>} : memref<18x64xf32, #tpu.memory_space<vmem>>, vector<16x64xf32>,
    %c0_493 = arith.constant 0 : index
    %c0_494 = arith.constant 0 : index
    %475 = vector.load %arg20[%c0_493, %c0_494] : memref<18x64xf32, #tpu.memory_space<vmem>>, vector<16x64xf32>
    %c1_495 = arith.constant 1 : index
    %c0_496 = arith.constant 0 : index
    %476 = vector.load %arg20[%c1_495, %c0_496] : memref<18x64xf32, #tpu.memory_space<vmem>>, vector<16x64xf32>
    %c2_497 = arith.constant 2 : index
    %c0_498 = arith.constant 0 : index
    %477 = vector.load %arg20[%c2_497, %c0_498] : memref<18x64xf32, #tpu.memory_space<vmem>>, vector<16x64xf32>
    %478 = tpu.concatenate %475, %476, %477 in 1 : vector<16x64xf32>, vector<16x64xf32>, vector<16x64xf32> -> vector<16x192xf32>
    %479 = arith.truncf %478 : vector<16x192xf32> to vector<16x192xbf16>
    %cst_499 = arith.constant dense<0.000000e+00> : vector<16x64xf32>
    %480 = tpu.matmul %479, %470, %cst_499 {dimension_numbers = #tpu.dot_dimension_numbers<[1], [0], [0], [1], [0, 0, 1, 1], [], []>} : vector<16x192xbf16>, vector<192x64xbf16>, vector<16x64xf32> -> vector<16x64xf32>
    %c9_500 = arith.constant 9 : index
    %c0_501 = arith.constant 0 : index
    %c0_502 = arith.constant 0 : index
    %481 = vector.load %arg7[%c9_500, %c0_501, %c0_502] : memref<12x1x64xf32, #tpu.memory_space<vmem>>, vector<1x1x64xf32>
    %482 = vector.shape_cast %481 : vector<1x1x64xf32> to vector<1x64xf32>
    %483 = vector.broadcast %482 : vector<1x64xf32> to vector<16x64xf32>
    %484 = arith.mulf %480, %483 : vector<16x64xf32>
    %c9_503 = arith.constant 9 : index
    %c0_504 = arith.constant 0 : index
    %c0_505 = arith.constant 0 : index
    %485 = vector.load %arg8[%c9_503, %c0_504, %c0_505] : memref<12x1x64xf32, #tpu.memory_space<vmem>>, vector<1x1x64xf32>
    %486 = vector.shape_cast %485 : vector<1x1x64xf32> to vector<1x64xf32>
    %487 = vector.broadcast %486 : vector<1x64xf32> to vector<16x64xf32>
    %488 = arith.addf %484, %487 : vector<16x64xf32>
    %cst_506 = arith.constant 0.000000e+00 : f32
    %489 = vector.broadcast %cst_506 : f32 to vector<16x64xf32>
    %490 = arith.maximumf %488, %489 : vector<16x64xf32>
    %c9_507 = arith.constant 9 : index
    %c0_508 = arith.constant 0 : index
    %c0_509 = arith.constant 0 : index
    %491 = vector.load %arg9[%c9_507, %c0_508, %c0_509] : memref<12x192x64xbf16, #tpu.memory_space<vmem>>, vector<1x192x64xbf16>
    %492 = vector.shape_cast %491 : vector<1x192x64xbf16> to vector<192x64xbf16>
    %cst_510 = arith.constant 0.000000e+00 : f32
    %493 = vector.broadcast %cst_510 : f32 to vector<1x64xf32>
    %c0_511 = arith.constant 0 : index
    %c0_512 = arith.constant 0 : index
    %494 = vector.load %arg20[%c0_511, %c0_512] : memref<18x64xf32, #tpu.memory_space<vmem>>, vector<1x64xf32>
    tpu.vector_store %arg20[%c0_511, %c0_512], %493 {strides = array<i32>} : memref<18x64xf32, #tpu.memory_space<vmem>>, vector<1x64xf32>,
    %c17_513 = arith.constant 17 : index
    %c0_514 = arith.constant 0 : index
    %495 = vector.load %arg20[%c17_513, %c0_514] : memref<18x64xf32, #tpu.memory_space<vmem>>, vector<1x64xf32>
    tpu.vector_store %arg20[%c17_513, %c0_514], %493 {strides = array<i32>} : memref<18x64xf32, #tpu.memory_space<vmem>>, vector<1x64xf32>,
    %c1_515 = arith.constant 1 : index
    %c0_516 = arith.constant 0 : index
    %496 = vector.load %arg20[%c1_515, %c0_516] : memref<18x64xf32, #tpu.memory_space<vmem>>, vector<16x64xf32>
    tpu.vector_store %arg20[%c1_515, %c0_516], %490 {strides = array<i32>} : memref<18x64xf32, #tpu.memory_space<vmem>>, vector<16x64xf32>,
    %c0_517 = arith.constant 0 : index
    %c0_518 = arith.constant 0 : index
    %497 = vector.load %arg20[%c0_517, %c0_518] : memref<18x64xf32, #tpu.memory_space<vmem>>, vector<16x64xf32>
    %c1_519 = arith.constant 1 : index
    %c0_520 = arith.constant 0 : index
    %498 = vector.load %arg20[%c1_519, %c0_520] : memref<18x64xf32, #tpu.memory_space<vmem>>, vector<16x64xf32>
    %c2_521 = arith.constant 2 : index
    %c0_522 = arith.constant 0 : index
    %499 = vector.load %arg20[%c2_521, %c0_522] : memref<18x64xf32, #tpu.memory_space<vmem>>, vector<16x64xf32>
    %500 = tpu.concatenate %497, %498, %499 in 1 : vector<16x64xf32>, vector<16x64xf32>, vector<16x64xf32> -> vector<16x192xf32>
    %501 = arith.truncf %500 : vector<16x192xf32> to vector<16x192xbf16>
    %cst_523 = arith.constant dense<0.000000e+00> : vector<16x64xf32>
    %502 = tpu.matmul %501, %492, %cst_523 {dimension_numbers = #tpu.dot_dimension_numbers<[1], [0], [0], [1], [0, 0, 1, 1], [], []>} : vector<16x192xbf16>, vector<192x64xbf16>, vector<16x64xf32> -> vector<16x64xf32>
    %503 = arith.truncf %448 : vector<16x64xf32> to vector<16x64xbf16>
    %c2_524 = arith.constant 2 : index
    %c0_525 = arith.constant 0 : index
    %c0_526 = arith.constant 0 : index
    %504 = vector.load %arg10[%c2_524, %c0_525, %c0_526] : memref<3x64x64xbf16, #tpu.memory_space<vmem>>, vector<1x64x64xbf16>
    %505 = vector.shape_cast %504 : vector<1x64x64xbf16> to vector<64x64xbf16>
    %cst_527 = arith.constant dense<0.000000e+00> : vector<16x64xf32>
    %506 = tpu.matmul %503, %505, %cst_527 {dimension_numbers = #tpu.dot_dimension_numbers<[1], [0], [0], [1], [0, 0, 1, 1], [], []>} : vector<16x64xbf16>, vector<64x64xbf16>, vector<16x64xf32> -> vector<16x64xf32>
    %507 = arith.addf %502, %506 : vector<16x64xf32>
    %c10 = arith.constant 10 : index
    %c0_528 = arith.constant 0 : index
    %c0_529 = arith.constant 0 : index
    %508 = vector.load %arg4[%c10, %c0_528, %c0_529] : memref<12x1x64xf32, #tpu.memory_space<vmem>>, vector<1x1x64xf32>
    %509 = vector.shape_cast %508 : vector<1x1x64xf32> to vector<1x64xf32>
    %510 = vector.broadcast %509 : vector<1x64xf32> to vector<16x64xf32>
    %511 = arith.mulf %507, %510 : vector<16x64xf32>
    %c10_530 = arith.constant 10 : index
    %c0_531 = arith.constant 0 : index
    %c0_532 = arith.constant 0 : index
    %512 = vector.load %arg5[%c10_530, %c0_531, %c0_532] : memref<12x1x64xf32, #tpu.memory_space<vmem>>, vector<1x1x64xf32>
    %513 = vector.shape_cast %512 : vector<1x1x64xf32> to vector<1x64xf32>
    %514 = vector.broadcast %513 : vector<1x64xf32> to vector<16x64xf32>
    %515 = arith.addf %511, %514 : vector<16x64xf32>
    %cst_533 = arith.constant 0.000000e+00 : f32
    %516 = vector.broadcast %cst_533 : f32 to vector<16x64xf32>
    %517 = arith.maximumf %515, %516 : vector<16x64xf32>
    %c10_534 = arith.constant 10 : index
    %c0_535 = arith.constant 0 : index
    %c0_536 = arith.constant 0 : index
    %518 = vector.load %arg6[%c10_534, %c0_535, %c0_536] : memref<12x192x64xbf16, #tpu.memory_space<vmem>>, vector<1x192x64xbf16>
    %519 = vector.shape_cast %518 : vector<1x192x64xbf16> to vector<192x64xbf16>
    %cst_537 = arith.constant 0.000000e+00 : f32
    %520 = vector.broadcast %cst_537 : f32 to vector<1x64xf32>
    %c0_538 = arith.constant 0 : index
    %c0_539 = arith.constant 0 : index
    %521 = vector.load %arg20[%c0_538, %c0_539] : memref<18x64xf32, #tpu.memory_space<vmem>>, vector<1x64xf32>
    tpu.vector_store %arg20[%c0_538, %c0_539], %520 {strides = array<i32>} : memref<18x64xf32, #tpu.memory_space<vmem>>, vector<1x64xf32>,
    %c17_540 = arith.constant 17 : index
    %c0_541 = arith.constant 0 : index
    %522 = vector.load %arg20[%c17_540, %c0_541] : memref<18x64xf32, #tpu.memory_space<vmem>>, vector<1x64xf32>
    tpu.vector_store %arg20[%c17_540, %c0_541], %520 {strides = array<i32>} : memref<18x64xf32, #tpu.memory_space<vmem>>, vector<1x64xf32>,
    %c1_542 = arith.constant 1 : index
    %c0_543 = arith.constant 0 : index
    %523 = vector.load %arg20[%c1_542, %c0_543] : memref<18x64xf32, #tpu.memory_space<vmem>>, vector<16x64xf32>
    tpu.vector_store %arg20[%c1_542, %c0_543], %517 {strides = array<i32>} : memref<18x64xf32, #tpu.memory_space<vmem>>, vector<16x64xf32>,
    %c0_544 = arith.constant 0 : index
    %c0_545 = arith.constant 0 : index
    %524 = vector.load %arg20[%c0_544, %c0_545] : memref<18x64xf32, #tpu.memory_space<vmem>>, vector<16x64xf32>
    %c1_546 = arith.constant 1 : index
    %c0_547 = arith.constant 0 : index
    %525 = vector.load %arg20[%c1_546, %c0_547] : memref<18x64xf32, #tpu.memory_space<vmem>>, vector<16x64xf32>
    %c2_548 = arith.constant 2 : index
    %c0_549 = arith.constant 0 : index
    %526 = vector.load %arg20[%c2_548, %c0_549] : memref<18x64xf32, #tpu.memory_space<vmem>>, vector<16x64xf32>
    %527 = tpu.concatenate %524, %525, %526 in 1 : vector<16x64xf32>, vector<16x64xf32>, vector<16x64xf32> -> vector<16x192xf32>
    %528 = arith.truncf %527 : vector<16x192xf32> to vector<16x192xbf16>
    %cst_550 = arith.constant dense<0.000000e+00> : vector<16x64xf32>
    %529 = tpu.matmul %528, %519, %cst_550 {dimension_numbers = #tpu.dot_dimension_numbers<[1], [0], [0], [1], [0, 0, 1, 1], [], []>} : vector<16x192xbf16>, vector<192x64xbf16>, vector<16x64xf32> -> vector<16x64xf32>
    %c10_551 = arith.constant 10 : index
    %c0_552 = arith.constant 0 : index
    %c0_553 = arith.constant 0 : index
    %530 = vector.load %arg7[%c10_551, %c0_552, %c0_553] : memref<12x1x64xf32, #tpu.memory_space<vmem>>, vector<1x1x64xf32>
    %531 = vector.shape_cast %530 : vector<1x1x64xf32> to vector<1x64xf32>
    %532 = vector.broadcast %531 : vector<1x64xf32> to vector<16x64xf32>
    %533 = arith.mulf %529, %532 : vector<16x64xf32>
    %c10_554 = arith.constant 10 : index
    %c0_555 = arith.constant 0 : index
    %c0_556 = arith.constant 0 : index
    %534 = vector.load %arg8[%c10_554, %c0_555, %c0_556] : memref<12x1x64xf32, #tpu.memory_space<vmem>>, vector<1x1x64xf32>
    %535 = vector.shape_cast %534 : vector<1x1x64xf32> to vector<1x64xf32>
    %536 = vector.broadcast %535 : vector<1x64xf32> to vector<16x64xf32>
    %537 = arith.addf %533, %536 : vector<16x64xf32>
    %cst_557 = arith.constant 0.000000e+00 : f32
    %538 = vector.broadcast %cst_557 : f32 to vector<16x64xf32>
    %539 = arith.maximumf %537, %538 : vector<16x64xf32>
    %c10_558 = arith.constant 10 : index
    %c0_559 = arith.constant 0 : index
    %c0_560 = arith.constant 0 : index
    %540 = vector.load %arg9[%c10_558, %c0_559, %c0_560] : memref<12x192x64xbf16, #tpu.memory_space<vmem>>, vector<1x192x64xbf16>
    %541 = vector.shape_cast %540 : vector<1x192x64xbf16> to vector<192x64xbf16>
    %cst_561 = arith.constant 0.000000e+00 : f32
    %542 = vector.broadcast %cst_561 : f32 to vector<1x64xf32>
    %c0_562 = arith.constant 0 : index
    %c0_563 = arith.constant 0 : index
    %543 = vector.load %arg20[%c0_562, %c0_563] : memref<18x64xf32, #tpu.memory_space<vmem>>, vector<1x64xf32>
    tpu.vector_store %arg20[%c0_562, %c0_563], %542 {strides = array<i32>} : memref<18x64xf32, #tpu.memory_space<vmem>>, vector<1x64xf32>,
    %c17_564 = arith.constant 17 : index
    %c0_565 = arith.constant 0 : index
    %544 = vector.load %arg20[%c17_564, %c0_565] : memref<18x64xf32, #tpu.memory_space<vmem>>, vector<1x64xf32>
    tpu.vector_store %arg20[%c17_564, %c0_565], %542 {strides = array<i32>} : memref<18x64xf32, #tpu.memory_space<vmem>>, vector<1x64xf32>,
    %c1_566 = arith.constant 1 : index
    %c0_567 = arith.constant 0 : index
    %545 = vector.load %arg20[%c1_566, %c0_567] : memref<18x64xf32, #tpu.memory_space<vmem>>, vector<16x64xf32>
    tpu.vector_store %arg20[%c1_566, %c0_567], %539 {strides = array<i32>} : memref<18x64xf32, #tpu.memory_space<vmem>>, vector<16x64xf32>,
    %c0_568 = arith.constant 0 : index
    %c0_569 = arith.constant 0 : index
    %546 = vector.load %arg20[%c0_568, %c0_569] : memref<18x64xf32, #tpu.memory_space<vmem>>, vector<16x64xf32>
    %c1_570 = arith.constant 1 : index
    %c0_571 = arith.constant 0 : index
    %547 = vector.load %arg20[%c1_570, %c0_571] : memref<18x64xf32, #tpu.memory_space<vmem>>, vector<16x64xf32>
    %c2_572 = arith.constant 2 : index
    %c0_573 = arith.constant 0 : index
    %548 = vector.load %arg20[%c2_572, %c0_573] : memref<18x64xf32, #tpu.memory_space<vmem>>, vector<16x64xf32>
    %549 = tpu.concatenate %546, %547, %548 in 1 : vector<16x64xf32>, vector<16x64xf32>, vector<16x64xf32> -> vector<16x192xf32>
    %550 = arith.truncf %549 : vector<16x192xf32> to vector<16x192xbf16>
    %cst_574 = arith.constant dense<0.000000e+00> : vector<16x64xf32>
    %551 = tpu.matmul %550, %541, %cst_574 {dimension_numbers = #tpu.dot_dimension_numbers<[1], [0], [0], [1], [0, 0, 1, 1], [], []>} : vector<16x192xbf16>, vector<192x64xbf16>, vector<16x64xf32> -> vector<16x64xf32>
    %552 = arith.addf %551, %507 : vector<16x64xf32>
    %c11 = arith.constant 11 : index
    %c0_575 = arith.constant 0 : index
    %c0_576 = arith.constant 0 : index
    %553 = vector.load %arg4[%c11, %c0_575, %c0_576] : memref<12x1x64xf32, #tpu.memory_space<vmem>>, vector<1x1x64xf32>
    %554 = vector.shape_cast %553 : vector<1x1x64xf32> to vector<1x64xf32>
    %555 = vector.broadcast %554 : vector<1x64xf32> to vector<16x64xf32>
    %556 = arith.mulf %552, %555 : vector<16x64xf32>
    %c11_577 = arith.constant 11 : index
    %c0_578 = arith.constant 0 : index
    %c0_579 = arith.constant 0 : index
    %557 = vector.load %arg5[%c11_577, %c0_578, %c0_579] : memref<12x1x64xf32, #tpu.memory_space<vmem>>, vector<1x1x64xf32>
    %558 = vector.shape_cast %557 : vector<1x1x64xf32> to vector<1x64xf32>
    %559 = vector.broadcast %558 : vector<1x64xf32> to vector<16x64xf32>
    %560 = arith.addf %556, %559 : vector<16x64xf32>
    %cst_580 = arith.constant 0.000000e+00 : f32
    %561 = vector.broadcast %cst_580 : f32 to vector<16x64xf32>
    %562 = arith.maximumf %560, %561 : vector<16x64xf32>
    %c11_581 = arith.constant 11 : index
    %c0_582 = arith.constant 0 : index
    %c0_583 = arith.constant 0 : index
    %563 = vector.load %arg6[%c11_581, %c0_582, %c0_583] : memref<12x192x64xbf16, #tpu.memory_space<vmem>>, vector<1x192x64xbf16>
    %564 = vector.shape_cast %563 : vector<1x192x64xbf16> to vector<192x64xbf16>
    %cst_584 = arith.constant 0.000000e+00 : f32
    %565 = vector.broadcast %cst_584 : f32 to vector<1x64xf32>
    %c0_585 = arith.constant 0 : index
    %c0_586 = arith.constant 0 : index
    %566 = vector.load %arg20[%c0_585, %c0_586] : memref<18x64xf32, #tpu.memory_space<vmem>>, vector<1x64xf32>
    tpu.vector_store %arg20[%c0_585, %c0_586], %565 {strides = array<i32>} : memref<18x64xf32, #tpu.memory_space<vmem>>, vector<1x64xf32>,
    %c17_587 = arith.constant 17 : index
    %c0_588 = arith.constant 0 : index
    %567 = vector.load %arg20[%c17_587, %c0_588] : memref<18x64xf32, #tpu.memory_space<vmem>>, vector<1x64xf32>
    tpu.vector_store %arg20[%c17_587, %c0_588], %565 {strides = array<i32>} : memref<18x64xf32, #tpu.memory_space<vmem>>, vector<1x64xf32>,
    %c1_589 = arith.constant 1 : index
    %c0_590 = arith.constant 0 : index
    %568 = vector.load %arg20[%c1_589, %c0_590] : memref<18x64xf32, #tpu.memory_space<vmem>>, vector<16x64xf32>
    tpu.vector_store %arg20[%c1_589, %c0_590], %562 {strides = array<i32>} : memref<18x64xf32, #tpu.memory_space<vmem>>, vector<16x64xf32>,
    %c0_591 = arith.constant 0 : index
    %c0_592 = arith.constant 0 : index
    %569 = vector.load %arg20[%c0_591, %c0_592] : memref<18x64xf32, #tpu.memory_space<vmem>>, vector<16x64xf32>
    %c1_593 = arith.constant 1 : index
    %c0_594 = arith.constant 0 : index
    %570 = vector.load %arg20[%c1_593, %c0_594] : memref<18x64xf32, #tpu.memory_space<vmem>>, vector<16x64xf32>
    %c2_595 = arith.constant 2 : index
    %c0_596 = arith.constant 0 : index
    %571 = vector.load %arg20[%c2_595, %c0_596] : memref<18x64xf32, #tpu.memory_space<vmem>>, vector<16x64xf32>
    %572 = tpu.concatenate %569, %570, %571 in 1 : vector<16x64xf32>, vector<16x64xf32>, vector<16x64xf32> -> vector<16x192xf32>
    %573 = arith.truncf %572 : vector<16x192xf32> to vector<16x192xbf16>
    %cst_597 = arith.constant dense<0.000000e+00> : vector<16x64xf32>
    %574 = tpu.matmul %573, %564, %cst_597 {dimension_numbers = #tpu.dot_dimension_numbers<[1], [0], [0], [1], [0, 0, 1, 1], [], []>} : vector<16x192xbf16>, vector<192x64xbf16>, vector<16x64xf32> -> vector<16x64xf32>
    %c11_598 = arith.constant 11 : index
    %c0_599 = arith.constant 0 : index
    %c0_600 = arith.constant 0 : index
    %575 = vector.load %arg7[%c11_598, %c0_599, %c0_600] : memref<12x1x64xf32, #tpu.memory_space<vmem>>, vector<1x1x64xf32>
    %576 = vector.shape_cast %575 : vector<1x1x64xf32> to vector<1x64xf32>
    %577 = vector.broadcast %576 : vector<1x64xf32> to vector<16x64xf32>
    %578 = arith.mulf %574, %577 : vector<16x64xf32>
    %c11_601 = arith.constant 11 : index
    %c0_602 = arith.constant 0 : index
    %c0_603 = arith.constant 0 : index
    %579 = vector.load %arg8[%c11_601, %c0_602, %c0_603] : memref<12x1x64xf32, #tpu.memory_space<vmem>>, vector<1x1x64xf32>
    %580 = vector.shape_cast %579 : vector<1x1x64xf32> to vector<1x64xf32>
    %581 = vector.broadcast %580 : vector<1x64xf32> to vector<16x64xf32>
    %582 = arith.addf %578, %581 : vector<16x64xf32>
    %cst_604 = arith.constant 0.000000e+00 : f32
    %583 = vector.broadcast %cst_604 : f32 to vector<16x64xf32>
    %584 = arith.maximumf %582, %583 : vector<16x64xf32>
    %c11_605 = arith.constant 11 : index
    %c0_606 = arith.constant 0 : index
    %c0_607 = arith.constant 0 : index
    %585 = vector.load %arg9[%c11_605, %c0_606, %c0_607] : memref<12x192x64xbf16, #tpu.memory_space<vmem>>, vector<1x192x64xbf16>
    %586 = vector.shape_cast %585 : vector<1x192x64xbf16> to vector<192x64xbf16>
    %cst_608 = arith.constant 0.000000e+00 : f32
    %587 = vector.broadcast %cst_608 : f32 to vector<1x64xf32>
    %c0_609 = arith.constant 0 : index
    %c0_610 = arith.constant 0 : index
    %588 = vector.load %arg20[%c0_609, %c0_610] : memref<18x64xf32, #tpu.memory_space<vmem>>, vector<1x64xf32>
    tpu.vector_store %arg20[%c0_609, %c0_610], %587 {strides = array<i32>} : memref<18x64xf32, #tpu.memory_space<vmem>>, vector<1x64xf32>,
    %c17_611 = arith.constant 17 : index
    %c0_612 = arith.constant 0 : index
    %589 = vector.load %arg20[%c17_611, %c0_612] : memref<18x64xf32, #tpu.memory_space<vmem>>, vector<1x64xf32>
    tpu.vector_store %arg20[%c17_611, %c0_612], %587 {strides = array<i32>} : memref<18x64xf32, #tpu.memory_space<vmem>>, vector<1x64xf32>,
    %c1_613 = arith.constant 1 : index
    %c0_614 = arith.constant 0 : index
    %590 = vector.load %arg20[%c1_613, %c0_614] : memref<18x64xf32, #tpu.memory_space<vmem>>, vector<16x64xf32>
    tpu.vector_store %arg20[%c1_613, %c0_614], %584 {strides = array<i32>} : memref<18x64xf32, #tpu.memory_space<vmem>>, vector<16x64xf32>,
    %c0_615 = arith.constant 0 : index
    %c0_616 = arith.constant 0 : index
    %591 = vector.load %arg20[%c0_615, %c0_616] : memref<18x64xf32, #tpu.memory_space<vmem>>, vector<16x64xf32>
    %c1_617 = arith.constant 1 : index
    %c0_618 = arith.constant 0 : index
    %592 = vector.load %arg20[%c1_617, %c0_618] : memref<18x64xf32, #tpu.memory_space<vmem>>, vector<16x64xf32>
    %c2_619 = arith.constant 2 : index
    %c0_620 = arith.constant 0 : index
    %593 = vector.load %arg20[%c2_619, %c0_620] : memref<18x64xf32, #tpu.memory_space<vmem>>, vector<16x64xf32>
    %594 = tpu.concatenate %591, %592, %593 in 1 : vector<16x64xf32>, vector<16x64xf32>, vector<16x64xf32> -> vector<16x192xf32>
    %595 = arith.truncf %594 : vector<16x192xf32> to vector<16x192xbf16>
    %cst_621 = arith.constant dense<0.000000e+00> : vector<16x64xf32>
    %596 = tpu.matmul %595, %586, %cst_621 {dimension_numbers = #tpu.dot_dimension_numbers<[1], [0], [0], [1], [0, 0, 1, 1], [], []>} : vector<16x192xbf16>, vector<192x64xbf16>, vector<16x64xf32> -> vector<16x64xf32>
    %597 = arith.addf %596, %552 : vector<16x64xf32>
    %cst_622 = arith.constant dense<0.000000e+00> : vector<64xf32>
    %598 = vector.multi_reduction <add>, %597, %cst_622 [0] : vector<16x64xf32> to vector<64xf32>
    %599 = vector.shape_cast %598 : vector<64xf32> to vector<1x64xf32>
    %cst_623 = arith.constant 1.600000e+01 : f32
    %600 = vector.broadcast %cst_623 : f32 to vector<1x64xf32>
    %601 = arith.divf %599, %600 : vector<1x64xf32>
    %c3_624 = arith.constant 3 : index
    %c0_625 = arith.constant 0 : index
    %c0_626 = arith.constant 0 : index
    %602 = vector.load %arg11[%c3_624, %c0_625, %c0_626] : memref<4x64x16xf32, #tpu.memory_space<vmem>>, vector<1x64x16xf32>
    %603 = vector.shape_cast %602 : vector<1x64x16xf32> to vector<64x16xf32>
    %cst_627 = arith.constant dense<0.000000e+00> : vector<1x16xf32>
    %604 = tpu.matmul %601, %603, %cst_627 {dimension_numbers = #tpu.dot_dimension_numbers<[1], [0], [0], [1], [0, 0, 1, 1], [], []>} : vector<1x64xf32>, vector<64x16xf32>, vector<1x16xf32> -> vector<1x16xf32>
    %c3_628 = arith.constant 3 : index
    %c0_629 = arith.constant 0 : index
    %c0_630 = arith.constant 0 : index
    %605 = vector.load %arg12[%c3_628, %c0_629, %c0_630] : memref<4x1x16xf32, #tpu.memory_space<vmem>>, vector<1x1x16xf32>
    %606 = vector.shape_cast %605 : vector<1x1x16xf32> to vector<1x16xf32>
    %607 = arith.addf %604, %606 : vector<1x16xf32>
    %608 = tpu.concatenate %160, %309, %458, %607 in 1 : vector<1x16xf32>, vector<1x16xf32>, vector<1x16xf32>, vector<1x16xf32> -> vector<1x64xf32>
    %c0_631 = arith.constant 0 : index
    %c0_632 = arith.constant 0 : index
    %609 = vector.load %arg13[%c0_631, %c0_632] : memref<64x16xf32, #tpu.memory_space<vmem>>, vector<64x16xf32>
    %cst_633 = arith.constant dense<0.000000e+00> : vector<1x16xf32>
    %610 = tpu.matmul %608, %609, %cst_633 {dimension_numbers = #tpu.dot_dimension_numbers<[1], [0], [0], [1], [0, 0, 1, 1], [], []>} : vector<1x64xf32>, vector<64x16xf32>, vector<1x16xf32> -> vector<1x16xf32>
    %c0_634 = arith.constant 0 : index
    %c0_635 = arith.constant 0 : index
    %611 = vector.load %arg14[%c0_634, %c0_635] : memref<1x16xf32, #tpu.memory_space<vmem>>, vector<1x16xf32>
    %612 = arith.addf %610, %611 : vector<1x16xf32>
    %c0_636 = arith.constant 0 : index
    %c0_637 = arith.constant 0 : index
    %c0_638 = arith.constant 0 : index
    %613 = vector.load %arg15[%c0_636, %c0_637, %c0_638] : memref<1x1x16xf32, #tpu.memory_space<vmem>>, vector<1x1x16xf32>
    %614 = vector.shape_cast %613 : vector<1x1x16xf32> to vector<1x16xf32>
    %615 = vector.shape_cast %160 : vector<1x16xf32> to vector<1x1x16xf32>
    tpu.vector_store %arg15[%c0_636, %c0_637, %c0_638], %615 {strides = array<i32>} : memref<1x1x16xf32, #tpu.memory_space<vmem>>, vector<1x1x16xf32>,
    %c0_639 = arith.constant 0 : index
    %c0_640 = arith.constant 0 : index
    %c0_641 = arith.constant 0 : index
    %616 = vector.load %arg16[%c0_639, %c0_640, %c0_641] : memref<1x1x16xf32, #tpu.memory_space<vmem>>, vector<1x1x16xf32>
    %617 = vector.shape_cast %616 : vector<1x1x16xf32> to vector<1x16xf32>
    %618 = vector.shape_cast %309 : vector<1x16xf32> to vector<1x1x16xf32>
    tpu.vector_store %arg16[%c0_639, %c0_640, %c0_641], %618 {strides = array<i32>} : memref<1x1x16xf32, #tpu.memory_space<vmem>>, vector<1x1x16xf32>,
    %c0_642 = arith.constant 0 : index
    %c0_643 = arith.constant 0 : index
    %c0_644 = arith.constant 0 : index
    %619 = vector.load %arg17[%c0_642, %c0_643, %c0_644] : memref<1x1x16xf32, #tpu.memory_space<vmem>>, vector<1x1x16xf32>
    %620 = vector.shape_cast %619 : vector<1x1x16xf32> to vector<1x16xf32>
    %621 = vector.shape_cast %458 : vector<1x16xf32> to vector<1x1x16xf32>
    tpu.vector_store %arg17[%c0_642, %c0_643, %c0_644], %621 {strides = array<i32>} : memref<1x1x16xf32, #tpu.memory_space<vmem>>, vector<1x1x16xf32>,
    %c0_645 = arith.constant 0 : index
    %c0_646 = arith.constant 0 : index
    %c0_647 = arith.constant 0 : index
    %622 = vector.load %arg18[%c0_645, %c0_646, %c0_647] : memref<1x1x16xf32, #tpu.memory_space<vmem>>, vector<1x1x16xf32>
    %623 = vector.shape_cast %622 : vector<1x1x16xf32> to vector<1x16xf32>
    %624 = vector.shape_cast %607 : vector<1x16xf32> to vector<1x1x16xf32>
    tpu.vector_store %arg18[%c0_645, %c0_646, %c0_647], %624 {strides = array<i32>} : memref<1x1x16xf32, #tpu.memory_space<vmem>>, vector<1x1x16xf32>,
    %c0_648 = arith.constant 0 : index
    %c0_649 = arith.constant 0 : index
    %c0_650 = arith.constant 0 : index
    %625 = vector.load %arg19[%c0_648, %c0_649, %c0_650] : memref<1x1x16xf32, #tpu.memory_space<vmem>>, vector<1x1x16xf32>
    %626 = vector.shape_cast %625 : vector<1x1x16xf32> to vector<1x16xf32>
    %627 = vector.shape_cast %612 : vector<1x16xf32> to vector<1x1x16xf32>
    tpu.vector_store %arg19[%c0_648, %c0_649, %c0_650], %627 {strides = array<i32>} : memref<1x1x16xf32, #tpu.memory_space<vmem>>, vector<1x1x16xf32>,
    return
  }
  func.func @transform_0(%arg0: i32) -> (i32, i32, i32) {
    %c0_i32 = arith.constant 0 : i32
    %c0_i32_0 = arith.constant 0 : i32
    %c0_i32_1 = arith.constant 0 : i32
    return %arg0, %c0_i32, %c0_i32_0 : i32, i32, i32
  }
  func.func @transform_1(%arg0: i32) -> (i32, i32) {
    %c0_i32 = arith.constant 0 : i32
    %c0_i32_0 = arith.constant 0 : i32
    %c0_i32_1 = arith.constant 0 : i32
    return %c0_i32, %c0_i32_0 : i32, i32
  }
  func.func @transform_2(%arg0: i32) -> (i32, i32) {
    %c0_i32 = arith.constant 0 : i32
    %c0_i32_0 = arith.constant 0 : i32
    %c0_i32_1 = arith.constant 0 : i32
    return %c0_i32, %c0_i32_0 : i32, i32
  }
  func.func @transform_3(%arg0: i32) -> (i32, i32, i32) {
    %c0_i32 = arith.constant 0 : i32
    %c0_i32_0 = arith.constant 0 : i32
    %c0_i32_1 = arith.constant 0 : i32
    %c0_i32_2 = arith.constant 0 : i32
    return %c0_i32, %c0_i32_0, %c0_i32_1 : i32, i32, i32
  }
  func.func @transform_4(%arg0: i32) -> (i32, i32, i32) {
    %c0_i32 = arith.constant 0 : i32
    %c0_i32_0 = arith.constant 0 : i32
    %c0_i32_1 = arith.constant 0 : i32
    %c0_i32_2 = arith.constant 0 : i32
    return %c0_i32, %c0_i32_0, %c0_i32_1 : i32, i32, i32
  }
  func.func @transform_5(%arg0: i32) -> (i32, i32, i32) {
    %c0_i32 = arith.constant 0 : i32
    %c0_i32_0 = arith.constant 0 : i32
    %c0_i32_1 = arith.constant 0 : i32
    %c0_i32_2 = arith.constant 0 : i32
    return %c0_i32, %c0_i32_0, %c0_i32_1 : i32, i32, i32
  }
  func.func @transform_6(%arg0: i32) -> (i32, i32, i32) {
    %c0_i32 = arith.constant 0 : i32
    %c0_i32_0 = arith.constant 0 : i32
    %c0_i32_1 = arith.constant 0 : i32
    %c0_i32_2 = arith.constant 0 : i32
    return %c0_i32, %c0_i32_0, %c0_i32_1 : i32, i32, i32
  }
  func.func @transform_7(%arg0: i32) -> (i32, i32, i32) {
    %c0_i32 = arith.constant 0 : i32
    %c0_i32_0 = arith.constant 0 : i32
    %c0_i32_1 = arith.constant 0 : i32
    %c0_i32_2 = arith.constant 0 : i32
    return %c0_i32, %c0_i32_0, %c0_i32_1 : i32, i32, i32
  }
  func.func @transform_8(%arg0: i32) -> (i32, i32, i32) {
    %c0_i32 = arith.constant 0 : i32
    %c0_i32_0 = arith.constant 0 : i32
    %c0_i32_1 = arith.constant 0 : i32
    %c0_i32_2 = arith.constant 0 : i32
    return %c0_i32, %c0_i32_0, %c0_i32_1 : i32, i32, i32
  }
  func.func @transform_9(%arg0: i32) -> (i32, i32, i32) {
    %c0_i32 = arith.constant 0 : i32
    %c0_i32_0 = arith.constant 0 : i32
    %c0_i32_1 = arith.constant 0 : i32
    %c0_i32_2 = arith.constant 0 : i32
    return %c0_i32, %c0_i32_0, %c0_i32_1 : i32, i32, i32
  }
  func.func @transform_10(%arg0: i32) -> (i32, i32, i32) {
    %c0_i32 = arith.constant 0 : i32
    %c0_i32_0 = arith.constant 0 : i32
    %c0_i32_1 = arith.constant 0 : i32
    %c0_i32_2 = arith.constant 0 : i32
    return %c0_i32, %c0_i32_0, %c0_i32_1 : i32, i32, i32
  }
  func.func @transform_11(%arg0: i32) -> (i32, i32, i32) {
    %c0_i32 = arith.constant 0 : i32
    %c0_i32_0 = arith.constant 0 : i32
    %c0_i32_1 = arith.constant 0 : i32
    %c0_i32_2 = arith.constant 0 : i32
    return %c0_i32, %c0_i32_0, %c0_i32_1 : i32, i32, i32
  }
  func.func @transform_12(%arg0: i32) -> (i32, i32) {
    %c0_i32 = arith.constant 0 : i32
    %c0_i32_0 = arith.constant 0 : i32
    %c0_i32_1 = arith.constant 0 : i32
    return %c0_i32, %c0_i32_0 : i32, i32
  }
  func.func @transform_13(%arg0: i32) -> (i32, i32) {
    %c0_i32 = arith.constant 0 : i32
    %c0_i32_0 = arith.constant 0 : i32
    %c0_i32_1 = arith.constant 0 : i32
    return %c0_i32, %c0_i32_0 : i32, i32
  }
  func.func @transform_14(%arg0: i32) -> (i32, i32, i32) {
    %c0_i32 = arith.constant 0 : i32
    %c0_i32_0 = arith.constant 0 : i32
    %c0_i32_1 = arith.constant 0 : i32
    return %arg0, %c0_i32, %c0_i32_0 : i32, i32, i32
  }
  func.func @transform_15(%arg0: i32) -> (i32, i32, i32) {
    %c0_i32 = arith.constant 0 : i32
    %c0_i32_0 = arith.constant 0 : i32
    %c0_i32_1 = arith.constant 0 : i32
    return %arg0, %c0_i32, %c0_i32_0 : i32, i32, i32
  }
  func.func @transform_16(%arg0: i32) -> (i32, i32, i32) {
    %c0_i32 = arith.constant 0 : i32
    %c0_i32_0 = arith.constant 0 : i32
    %c0_i32_1 = arith.constant 0 : i32
    return %arg0, %c0_i32, %c0_i32_0 : i32, i32, i32
  }
  func.func @transform_17(%arg0: i32) -> (i32, i32, i32) {
    %c0_i32 = arith.constant 0 : i32
    %c0_i32_0 = arith.constant 0 : i32
    %c0_i32_1 = arith.constant 0 : i32
    return %arg0, %c0_i32, %c0_i32_0 : i32, i32, i32
  }
  func.func @transform_18(%arg0: i32) -> (i32, i32, i32) {
    %c0_i32 = arith.constant 0 : i32
    %c0_i32_0 = arith.constant 0 : i32
    %c0_i32_1 = arith.constant 0 : i32
    return %arg0, %c0_i32, %c0_i32_0 : i32, i32, i32
  }
}

</mosaic_0001>

<bundles_post_ra>
// kernel: tpu_custom_call.1
= control target key start
LH: loop header
LB: loop body
LE: loop exit
PB: predicated region body
PF: predicated region fallthrough
CT: control target
= control target key end

     0   :  { %s9870_s0 = inlined_call_operand.vmem [shape: f32[2,16,64], index: 0, kind: input, shape index: {}]   ;;  %s9871_s1 = inlined_call_operand.vmem [shape: bf16[192,64], index: 1, kind: input, shape index: {}]   ;;  %s9872_s2 = inlined_call_operand.vmem [shape: f32[1,64], index: 2, kind: input, shape index: {}]   ;;  %s9873_s3 = inlined_call_operand.vmem [shape: f32[12,1,64], index: 3, kind: input, shape index: {}]   ;;  %s9874_s4 = inlined_call_operand.vmem [shape: f32[12,1,64], index: 4, kind: input, shape index: {}]   ;;  %s9875_s5 = inlined_call_operand.vmem [shape: bf16[12,192,64], index: 5, kind: input, shape index: {}]   ;;  %s9876_s6 = inlined_call_operand.vmem [shape: f32[12,1,64], index: 6, kind: input, shape index: {}]   ;;  %s9877_s7 = inlined_call_operand.vmem [shape: f32[12,1,64], index: 7, kind: input, shape index: {}]   ;;  %s9878_s8 = inlined_call_operand.vmem [shape: bf16[12,192,64], index: 8, kind: input, shape index: {}]   ;;  %s9879_s9 = inlined_call_operand.vmem [shape: bf16[3,64,64], index: 9, kind: input, shape index: {}]   ;;  %s9880_s10 = inlined_call_operand.vmem [shape: f32[4,64,16], index: 10, kind: input, shape index: {}]   ;;  %s9881_s11 = inlined_call_operand.vmem [shape: f32[4,1,16], index: 11, kind: input, shape index: {}]   ;;  %s9882_s12 = inlined_call_operand.vmem [shape: f32[64,16], index: 12, kind: input, shape index: {}]   ;;  %s9883_s13 = inlined_call_operand.vmem [shape: f32[1,16], index: 13, kind: input, shape index: {}]   ;;  %s9884_s14 = inlined_call_operand.hbm [shape: f32[2,1,16], index: 14, kind: output, shape index: {0}]   ;;  %s9885_s15 = inlined_call_operand.hbm [shape: f32[2,1,16], index: 15, kind: output, shape index: {1}]   ;;  %s9886_s16 = inlined_call_operand.hbm [shape: f32[2,1,16], index: 16, kind: output, shape index: {2}]   ;;  %s9887_s17 = inlined_call_operand.hbm [shape: f32[2,1,16], index: 17, kind: output, shape index: {3}]   ;;  %s9888_s18 = inlined_call_operand.hbm [shape: f32[2,1,16], index: 18, kind: output, shape index: {4}]  }
   0x1   :  { %9901 = sst [smem:[#allocation20_spill]] %s9870_s0 }
   0x2   :  { %9902 = sst [smem:[#allocation21_spill]] %s9871_s1 }
   0x3   :  { %9903 = sst [smem:[#allocation22_spill]] %s9872_s2 }
   0x4   :  { %9904 = sst [smem:[#allocation23_spill]] %s9873_s3 }
   0x5   :  { %9905 = sst [smem:[#allocation24_spill]] %s9874_s4 }
   0x6   :  { %9906 = sst [smem:[#allocation25_spill]] %s9875_s5 }
   0x7   :  { %9907 = sst [smem:[#allocation26_spill]] %s9876_s6 }
   0x8   :  { %9908 = sst [smem:[#allocation27_spill]] %s9877_s7 }
   0x9   :  { %9909 = sst [smem:[#allocation28_spill]] %s9883_s13 }
   0xa   :  { %24 = vsyncpa [#allocation4], 0 }
   0xb   :  { %26 = vsyncpa [#allocation4 + $0x1], 0 }
   0xc   :  { %27 = vsyncpa [#allocation6], 0 }
   0xd   :  { %29 = vsyncpa [#allocation6 + $0x1], 0 }
   0xe   :  { %30 = vsyncpa [#allocation9], 0 }
   0xf   :  { %32 = vsyncpa [#allocation9 + $0x1], 0  ;;  %s8114_s27 = smov 0   ;;  %s8116_s28 = smov 0  }
  0x10   :  { %s8118_s29 = smov 0   ;;  %s8120_s30 = smov 0  }
  0x11 LB: > { %9910 = sst [smem:[#allocation14_spill]] %s7999_s27  ;;  %s8135_s0 = sadd.s32 4294967295, %s8011_s30   ;;  %s8011_s30 = sphi %s8120_s30, %s9934_s30   ;;  %s8007_s29 = sphi %s8118_s29, %s9936_s29   ;;  %s8003_s28 = sphi %s8116_s28, %s9938_s28   ;;  %s7999_s27 = sphi %s8114_s27, %s9937_s27  }
  0x12   : > { %9911 = sst [smem:[#allocation15_spill]] %s8007_s29  ;;  %s9890_s19 = sadd.s32 4294967294, %s8011_s30  }
  0x13   : > { %9912 = sst [smem:[#allocation16_spill]] %s8011_s30  ;;  %s8139_s1 = sadd.s32 1, %s8011_s30  }
  0x14   : > { %9913 = sst [smem:[#allocation17_spill]] %s8139_s1  ;;  %s344_s20 = sadd.s32 1, %s8007_s29 }
  0x15   : > { %s341_s21 = ssub.s32 %s8011_s30, %s8139_s1  ;;  %p354_p0 = scmp.ne.s32.totalorder %s8007_s29, %s8003_s28 }
  0x16   : > { %p342_p1 = scmp.eq.s32.totalorder %s341_s21, 0  ;;  %p355_p2 = scmp.eq.s32.totalorder %s8135_s0, 1 }
  0x17   : > { %p360_p3 = scmp.ne.s32.totalorder %s8003_s28, %s7999_s27  ;;  %p361_p4 = scmp.eq.s32.totalorder %s9890_s19, 1 }
  0x18   : > { %s8152_s22 = scalar_select %p342_p1, %s8007_s29, %s344_s20  }
  0x19   : > { %p8154_p5 = por %p355_p2, %p354_p0  ;;  %p8158_p6 = por %p361_p4, %p360_p3 }
  0x1a   : > { %9914 = sst [smem:[#allocation18_spill]] %s8152_s22  ;;  %p5374_p7 = scmp.ge.s32.totalorder %s8011_s30, 1 }
  0x1b   : > { %s9916_s23 = scalar_select %p8158_p6, 1, 0 }
  0x1c   : > { %p530_p8 = scmp.lt.s32.totalorder %s8011_s30, 3 }
  0x1d   : > { %9917 = sst [smem:[#allocation19_spill]] %s9916_s23 }
  0x1e   : > { %p531_p9 = pnand %p5374_p7, %p530_p8 }
  0x1f   : > { %p599_p10 = scmp.lt.s32.totalorder (!%p531_p9), %s8135_s0, 1  ;;  %s9918_s26 = sld [smem:[#allocation21_spill]] (!%p531_p9) }
  0x20   : > { %534 = sbr.rel (%p531_p9) target bundleno = 7171 (0x1c03), region = 76  ;;  %s9919_s30 = sld [smem:[#allocation20_spill]] (!%p531_p9) }
  0x21   : > { %s8014_s20 = smov (!%p531_p9), 64   ;;  %s9920_s5 = sld [smem:[#allocation25_spill]] (!%p531_p9) }
  0x22   : > { %s9922_s3 = sld [smem:[#allocation23_spill]] (!%p531_p9)  ;;  %s8017_s29 = smov (!%p531_p9), 32  }
  0x23   : > { %s9923_s4 = sld [smem:[#allocation24_spill]] (!%p531_p9)  ;;  %s8018_s22 = smov (!%p531_p9), 48  }
  0x24   : > { %s9924_s6 = sld [smem:[#allocation26_spill]] (!%p531_p9)  ;;  %s5167_s23 = scalar_lea.hbm (!%p531_p9), %s9885_s15, %s8135_s0 }
  0x25   : > { %vm631_vm0 = vcmask 516096   ;;  %v7283_v0 = vld [vmem:[%s9918_s26 + $0x38] sm:$0xff]  ;;  %v8013_v1 = vmov 0.0   ;;  %s600_s19 = scalar_select %p599_p10, %s8135_s0, 1  ;;  %v7282_v3 = vld [vmem:[%s9918_s26 + $0x30] sm:$0xff]  ;;  %vm634_vm1 = vcmask 523264  }
  0x26   : > { %632 = vst.msk [vmem:[#allocation2] sm:$0x1] %vm631_vm0, %v8013_v1  ;;  %v7287_v2 = vld [vmem:[%s9918_s26 + $0x58] sm:$0xff]  ;;  %734 = vmatpush.bf16.msra.mxu0 %v7283_v0  ;;  %v7286_v4 = vld [vmem:[%s9918_s26 + $0x50] sm:$0xff]  ;;  %v7281_v5 = vld [vmem:[%s9918_s26 + $0x28] sm:$0xff]  ;;  %s9925_s7 = sld [smem:[#allocation27_spill]] }
  0x27   : > { %633 = vst.msk [vmem:[#allocation2 + $0x11] sm:$0x1] %vm631_vm0, %v8013_v1  ;;  %752 = vmatpush.bf16.msra.mxu1 %v7287_v2  ;;  %s7275_s1 = sshll.u32 %s600_s19, 4  ;;  %v7285_v8 = vld [vmem:[%s9918_s26 + $0x48] sm:$0xff]  ;;  %v7280_v9 = vld [vmem:[%s9918_s26 + $0x20] sm:$0xff]  ;;  %v7279_v11 = vld [vmem:[%s9918_s26 + $0x18] sm:$0xff] }
  0x28   : > { %s603_s13 = scalar_lea.vmem %s9919_s30, %s7275_s1  ;;  %v7284_v10 = vld [vmem:[%s9918_s26 + $0x40] sm:$0xff]  ;;  %v7278_v18 = vld [vmem:[%s9918_s26 + $0x10] sm:$0xff]  ;;  %v7277_v20 = vld [vmem:[%s9918_s26 + $0x8] sm:$0xff]  ;;  %s9921_s19 = sld [smem:[#allocation22_spill]]  ;;  %vm5123_vm3 = vcmask 122880   ;;  %vm5085_vm4 = vcmask 130048  }
  0x29   : > { %v605_v6 = vld [vmem:[%s603_s13] sm:$0xff]  ;;  %v606_v7 = vld [vmem:[%s603_s13 + $0x8] sm:$0xff]  ;;  %v7299_v29 = vld [vmem:[%s9920_s5 + $0x58] sm:$0xff]  ;;  %s8654_s13 = sand.u32 1, %s8003_s28   ;;  %vm5087_vm5 = vcmask 261120   ;;  %vm5089_vm6 = vcmask 392192   ;;  %s5193_s30 = scalar_lea.hbm %s9887_s17, %s8135_s0 }
  0x2a   : > { %735 = vmatpush.bf16.msra.mxu0 %v7282_v3  ;;  %635 = vst.msk [vmem:[#allocation2 + $0x1] sm:$0xff] %vm634_vm1, %v605_v6  ;;  %v7276_v21 = vld [vmem:[%s9918_s26] sm:$0xff]  ;;  %915 = vmatpush.bf16.msra.mxu3 %v7299_v29  ;;  %v7298_v30 = vld [vmem:[%s9920_s5 + $0x50] sm:$0xff]  ;;  %v7297_v31 = vld [vmem:[%s9920_s5 + $0x48] sm:$0xff]  ;;  %s9898_s25 = scalar_lea.vmem [#allocation3], %s8654_s13  ;;  %s9899_s24 = scalar_lea.vmem [#allocation5], %s8654_s13 }
  0x2b   : > { %753 = vmatpush.bf16.msra.mxu1 %v7286_v4  ;;  %636 = vst.msk [vmem:[#allocation2 + $0x9] sm:$0xff] %vm634_vm1, %v606_v7  ;;  %v7296_v32 = vld [vmem:[%s9920_s5 + $0x40] sm:$0xff]  ;;  %v7295_v34 = vld [vmem:[%s9920_s5 + $0x38] sm:$0xff]  ;;  %v7294_v39 = vld [vmem:[%s9920_s5 + $0x30] sm:$0xff]  ;;  %s9900_s1 = scalar_lea.vmem [#allocation7], %s8654_s13  ;;  %s5133_s21 = sand.u32 1, %s8135_s0  }
  0x2c   : > { %v7779_v38 = vld [vmem:[%s9922_s3] ss:$0 sm:$0xff]  ;;  %897 = vmatpush.bf16.msra.mxu2 %v7295_v34  ;;  %v7293_v43 = vld [vmem:[%s9920_s5 + $0x28] sm:$0xff]  ;;  %v7291_v52 = vld [vmem:[%s9920_s5 + $0x18] sm:$0xff] }
  0x2d   : > { %v7780_v41 = vld [vmem:[%s9923_s4] ss:$0 sm:$0xff]  ;;  %v7290_v55 = vld [vmem:[%s9920_s5 + $0x10] sm:$0xff]  ;;  %v7289_v57 = vld [vmem:[%s9920_s5 + $0x8] sm:$0xff] }
  0x2e   : > { %736 = vmatpush.bf16.msra.mxu0 %v7281_v5  ;;  %916 = vmatpush.bf16.msra.mxu3 %v7298_v30  ;;  %v7778_v33 = vld [vmem:[%s9921_s19] ss:$0 sm:$0xff]  ;;  %v7303_v29 = vld [vmem:[%s9878_s8 + $0x18] sm:$0xff]  ;;  %v7301_v34 = vld [vmem:[%s9878_s8 + $0x8] sm:$0xff] }
  0x2f   : > { %754 = vmatpush.bf16.msra.mxu1 %v7285_v8  ;;  %v7292_v48 = vld [vmem:[%s9920_s5 + $0x20] sm:$0xff] }
  0x30   : > { %898 = vmatpush.bf16.msra.mxu2 %v7294_v39  ;;  %v7288_v0 = vld [vmem:[%s9920_s5] sm:$0xff] }
  0x31   : > { %v639_v12 = vld [vmem:[#allocation2 + $0x1] sm:$0xff] }
  0x32   : > { %v637_v13 = vld [vmem:[#allocation2] sm:$0xff]  ;;  %737 = vmatpush.bf16.msra.mxu0 %v7280_v9  ;;  %v640_v14 = vld [vmem:[#allocation2 + $0x9] sm:$0xff]  ;;  %917 = vmatpush.bf16.msra.mxu3 %v7297_v31  ;;  %v7311_v9 = vld [vmem:[%s9878_s8 + $0x58] sm:$0xff] }
  0x33   : > { %v641_v15 = vld [vmem:[#allocation2 + $0x2] sm:$0xff]  ;;  %v642_v16 = vld [vmem:[#allocation2 + $0xa] sm:$0xff]  ;;  %800 = vst.msk [vmem:[#allocation2] sm:$0x1] %vm631_vm0, %v8013_v1  ;;  %755 = vmatpush.bf16.msra.mxu1 %v7284_v10  ;;  %v7653_v17 = vpack.i.bf16 %v640_v14, %v639_v12 }
  0x34   : > { %801 = vst.msk [vmem:[#allocation2 + $0x11] sm:$0x1] %vm631_vm0, %v8013_v1  ;;  %v654_v19 = vpack.c.bf16 %v642_v16, %v641_v15  ;;  %v638_v22 = vld [vmem:[#allocation2 + $0x8] sm:$0xff]  ;;  %899 = vmatpush.bf16.msra.mxu2 %v7293_v43  ;;  %v7310_v10 = vld [vmem:[%s9878_s8 + $0x50] sm:$0xff]  ;;  %v7308_v12 = vld [vmem:[%s9878_s8 + $0x40] sm:$0xff] }
  0x35   : > { %7654 = vrot.lane.b32.xlu0 %v7653_v17, %s8014_s20  ;;  %v7781_v15 = vld [vmem:[%s9924_s6] ss:$0 sm:$0xff]  ;;  %v7306_v16 = vld [vmem:[%s9878_s8 + $0x30] sm:$0xff] }
  0x36   : > { %738 = vmatpush.bf16.msra.mxu0 %v7279_v11  ;;  %5425 = vmatmul.msk.bf16.vlgmr.msra.gmra.mxu1 %vm634_vm1, %v654_v19  ;;  %v7309_v11 = vld [vmem:[%s9878_s8 + $0x48] sm:$0xff]  ;;  %v7782_v19 = vld [vmem:[%s9925_s7] ss:$0 sm:$0xff] }
  0x37   : > { %918 = vmatpush.bf16.msra.mxu3 %v7296_v32  ;;  %v7302_v32 = vld [vmem:[%s9878_s8 + $0x10] sm:$0xff] }
  0x38   : > { %900 = vmatpush.bf16.msra.mxu2 %v7292_v48 }
  0x3a   : > { %739 = vmatpush.bf16.msra.mxu0 %v7278_v18 }
  0x3b   : > { %1078 = vmatpush.bf16.msrb.mxu3 %v7311_v9  ;;  %v7315_v9 = vld [vmem:[%s9920_s5 + $0x78] sm:$0xff] }
  0x3c   : > { %901 = vmatpush.bf16.msra.mxu2 %v7291_v52  ;;  %v7322_v52 = vld [vmem:[%s9920_s5 + $0xb0] sm:$0xff] }
  0x3e   : > { %740 = vmatpush.bf16.msra.mxu0 %v7277_v20 }
  0x3f   : > { %1079 = vmatpush.bf16.msrb.mxu3 %v7310_v10 }
  0x40   : > { %902 = vmatpush.bf16.msra.mxu2 %v7290_v55  ;;  %v7319_v55 = vld [vmem:[%s9920_s5 + $0x98] sm:$0xff] }
  0x42   : > { %741 = vmatpush.bf16.msra.mxu0 %v7276_v21  ;;  %v7305_v21 = vld [vmem:[%s9878_s8 + $0x28] sm:$0xff] }
  0x43   : > { %1080 = vmatpush.bf16.msrb.mxu3 %v7309_v11 }
  0x44   : > { %903 = vmatpush.bf16.msra.mxu2 %v7289_v57 }
  0x46   : > { %1226 = vmatpush.bf16.msrb.mxu0 %v7319_v55  ;;  %v7325_v55 = vld [vmem:[%s9878_s8 + $0x68] sm:$0xff] }
  0x47   : > { %1081 = vmatpush.bf16.msrb.mxu3 %v7308_v12 }
  0x48   : > { %904 = vmatpush.bf16.msra.mxu2 %v7288_v0 }
  0xa7   : > { %v7655_v23 = vpop.permute.xlu0 %7654 }
  0xa8   : > { %v7657_v24 = vunpack.i.h.bf16 %v7655_v23  ;;  %v7656_v25 = vunpack.i.l.bf16 %v7655_v23 }
  0xaa   : > { %v651_v26 = vsel %vm634_vm1, %v637_v13, %v7656_v25  ;;  %v652_v27 = vsel %vm634_vm1, %v638_v22, %v7657_v24  ;;  %v7307_v13 = vld [vmem:[%s9878_s8 + $0x38] sm:$0xff]  ;;  %v7304_v24 = vld [vmem:[%s9878_s8 + $0x20] sm:$0xff] }
  0xab   : > { %v653_v28 = vpack.c.bf16 %v652_v27, %v651_v26  ;;  %1060 = vmatpush.bf16.msrb.mxu1 %v7307_v13  ;;  %v7313_v13 = vld [vmem:[%s9920_s5 + $0x68] sm:$0xff] }
  0xad   : > { %742 = vmatmul.bf16.vlgmr.msra.gmra.mxu0 %v653_v28 }
  0xaf   : > { %1061 = vmatpush.bf16.msrb.mxu1 %v7306_v16 }
  0xb3   : > { %v757_v35 = vpop.f32.mrf.mxu1  ;;  %1062 = vmatpush.bf16.msrb.mxu1 %v7305_v21 }
  0xb7   : > { %1063 = vmatpush.bf16.msrb.mxu1 %v7304_v24 }
  0xbb   : > { %v759_v49 = vpop.f32.mrf.mxu1  ;;  %1064 = vmatpush.bf16.msrb.mxu1 %v7303_v29  ;;  %v7334_v29 = vld [vmem:[%s9878_s8 + $0xb0] sm:$0xff] }
  0xbf   : > { %1065 = vmatpush.bf16.msrb.mxu1 %v7302_v32  ;;  %v7331_v32 = vld [vmem:[%s9878_s8 + $0x98] sm:$0xff] }
  0xc3   : > { %1066 = vmatpush.bf16.msrb.mxu1 %v7301_v34  ;;  %v7785_v34 = vld [vmem:[%s9924_s6 + $0x1] ss:$0 sm:$0xff] }
 0x12a   : > { %v743_v36 = vpop.f32.mrf.mxu0 }
 0x12b   : > { %v744_v37 = vadd.f32 %v7778_v33, %v743_v36 }
 0x12d   : > { %v8243_v40 = vadd.f32 %v757_v35, %v744_v37 }
 0x12f   : > { %v766_v42 = vmul.f32 %v7779_v38, %v8243_v40 }
 0x131   : > { %v772_v44 = vadd.f32 %v7780_v41, %v766_v42  ;;  %v7300_v42 = vld [vmem:[%s9878_s8] sm:$0xff] }
 0x132   : > { %v745_v45 = vpop.f32.mrf.mxu0  ;;  %1067 = vmatpush.bf16.msrb.mxu1 %v7300_v42 }
 0x133   : > { %v774_v46 = vmax.f32 %v772_v44, 0.0  ;;  %v746_v47 = vadd.f32 %v7778_v33, %v745_v45 }
 0x135   : > { %802 = vst.msk [vmem:[#allocation2 + $0x1] sm:$0xff] %vm634_vm1, %v774_v46  ;;  %v8256_v50 = vadd.f32 %v759_v49, %v746_v47 }
 0x137   : > { %v767_v51 = vmul.f32 %v7779_v38, %v8256_v50 }
 0x139   : > { %v773_v53 = vadd.f32 %v7780_v41, %v767_v51  ;;  %v7323_v51 = vld [vmem:[%s9920_s5 + $0xb8] sm:$0xff] }
 0x13a   : > { %1244 = vmatpush.bf16.msrb.mxu2 %v7323_v51 }
 0x13b   : > { %v775_v54 = vmax.f32 %v773_v53, 0.0  ;;  %v7321_v53 = vld [vmem:[%s9920_s5 + $0xa8] sm:$0xff] }
 0x13c   : > { %v804_v56 = vld [vmem:[#allocation2] sm:$0xff] }
 0x13d   : > { %963 = vst.msk [vmem:[#allocation2] sm:$0x1] %vm631_vm0, %v8013_v1  ;;  %v806_v61 = vld [vmem:[#allocation2 + $0x1] sm:$0xff] }
 0x13e   : > { %803 = vst.msk [vmem:[#allocation2 + $0x9] sm:$0xff] %vm634_vm1, %v775_v54  ;;  %1245 = vmatpush.bf16.msrb.mxu2 %v7322_v52  ;;  %v7320_v54 = vld [vmem:[%s9920_s5 + $0xa0] sm:$0xff] }
 0x142   : > { %1246 = vmatpush.bf16.msrb.mxu2 %v7321_v53  ;;  %v7326_v53 = vld [vmem:[%s9878_s8 + $0x70] sm:$0xff] }
 0x145   : > { %v808_v58 = vld [vmem:[#allocation2 + $0x2] sm:$0xff]  ;;  %v809_v59 = vld [vmem:[#allocation2 + $0xa] sm:$0xff] }
 0x146   : > { %964 = vst.msk [vmem:[#allocation2 + $0x11] sm:$0x1] %vm631_vm0, %v8013_v1  ;;  %v821_v60 = vpack.c.bf16 %v809_v59, %v808_v58  ;;  %v807_v62 = vld [vmem:[#allocation2 + $0x9] sm:$0xff]  ;;  %1247 = vmatpush.bf16.msrb.mxu2 %v7320_v54  ;;  %v7783_v59 = vld [vmem:[%s9922_s3 + $0x1] ss:$0 sm:$0xff] }
 0x147   : > { %v7658_v63 = vpack.i.bf16 %v807_v62, %v806_v61  ;;  %v805_v5 = vld [vmem:[#allocation2 + $0x8] sm:$0xff]  ;;  %v7784_v62 = vld [vmem:[%s9923_s4 + $0x1] ss:$0 sm:$0xff] }
 0x148   : > { %5474 = vmatmul.msk.bf16.vlgmr.msra.gmra.mxu3 %vm634_vm1, %v821_v60  ;;  %v7318_v60 = vld [vmem:[%s9920_s5 + $0x90] sm:$0xff] }
 0x149   : > { %7659 = vrot.lane.b32.xlu0 %v7658_v63, %s8014_s20  ;;  %1227 = vmatpush.bf16.msrb.mxu0 %v7318_v60 }
 0x14a   : > { %1392 = vmatpush.bf16.msra.mxu3 %v7331_v32  ;;  %v7337_v32 = vld [vmem:[%s9920_s5 + $0xc8] sm:$0xff] }
 0x1bb   : > { %v7660_v2 = vpop.permute.xlu0 %7659 }
 0x1bc   : > { %v7662_v3 = vunpack.i.h.bf16 %v7660_v2  ;;  %v7661_v4 = vunpack.i.l.bf16 %v7660_v2 }
 0x1be   : > { %v818_v6 = vsel %vm634_vm1, %v804_v56, %v7661_v4  ;;  %v819_v7 = vsel %vm634_vm1, %v805_v5, %v7662_v3  ;;  %v7316_v5 = vld [vmem:[%s9920_s5 + $0x80] sm:$0xff] }
 0x1bf   : > { %v820_v8 = vpack.c.bf16 %v819_v7, %v818_v6 }
 0x1c1   : > { %905 = vmatmul.bf16.vlgmr.msra.gmra.mxu2 %v820_v8 }
 0x1cb   : > { %v920_v14 = vpop.f32.mrf.mxu3 }
 0x1d3   : > { %v922_v25 = vpop.f32.mrf.mxu3 }
 0x244   : > { %v906_v17 = vpop.f32.mrf.mxu2 }
 0x245   : > { %v921_v18 = vadd.f32 %v920_v14, %v906_v17 }
 0x247   : > { %v929_v20 = vmul.f32 %v7781_v15, %v921_v18 }
 0x249   : > { %v935_v22 = vadd.f32 %v7782_v19, %v929_v20  ;;  %v7312_v20 = vld [vmem:[%s9920_s5 + $0x60] sm:$0xff] }
 0x24b   : > { %v937_v23 = vmax.f32 %v935_v22, 0.0 }
 0x24c   : > { %v908_v26 = vpop.f32.mrf.mxu2 }
 0x24d   : > { %965 = vst.msk [vmem:[#allocation2 + $0x1] sm:$0xff] %vm634_vm1, %v937_v23  ;;  %v923_v27 = vadd.f32 %v922_v25, %v908_v26 }
 0x24f   : > { %v930_v28 = vmul.f32 %v7781_v15, %v923_v27 }
 0x251   : > { %v936_v30 = vadd.f32 %v7782_v19, %v930_v28  ;;  %v7335_v28 = vld [vmem:[%s9878_s8 + $0xb8] sm:$0xff] }
 0x252   : > { %1410 = vmatpush.bf16.msra.mxu1 %v7335_v28  ;;  %v7339_v28 = vld [vmem:[%s9920_s5 + $0xd8] sm:$0xff] }
 0x253   : > { %v938_v31 = vmax.f32 %v936_v30, 0.0  ;;  %v7333_v30 = vld [vmem:[%s9878_s8 + $0xa8] sm:$0xff] }
 0x254   : > { %v967_v33 = vld [vmem:[#allocation2] sm:$0xff] }
 0x255   : > { %1129 = vst.msk [vmem:[#allocation2] sm:$0x1] %vm631_vm0, %v8013_v1  ;;  %v969_v38 = vld [vmem:[#allocation2 + $0x1] sm:$0xff] }
 0x256   : > { %966 = vst.msk [vmem:[#allocation2 + $0x9] sm:$0xff] %vm634_vm1, %v938_v31  ;;  %1411 = vmatpush.bf16.msra.mxu1 %v7334_v29  ;;  %v7332_v31 = vld [vmem:[%s9878_s8 + $0xa0] sm:$0xff] }
 0x25a   : > { %1412 = vmatpush.bf16.msra.mxu1 %v7333_v30 }
 0x25d   : > { %v971_v35 = vld [vmem:[#allocation2 + $0x2] sm:$0xff]  ;;  %v972_v36 = vld [vmem:[#allocation2 + $0xa] sm:$0xff] }
 0x25e   : > { %1130 = vst.msk [vmem:[#allocation2 + $0x11] sm:$0x1] %vm631_vm0, %v8013_v1  ;;  %v984_v37 = vpack.c.bf16 %v972_v36, %v971_v35  ;;  %v970_v39 = vld [vmem:[#allocation2 + $0x9] sm:$0xff]  ;;  %1413 = vmatpush.bf16.msra.mxu1 %v7332_v31 }
 0x25f   : > { %v7663_v41 = vpack.i.bf16 %v970_v39, %v969_v38  ;;  %v968_v46 = vld [vmem:[#allocation2 + $0x8] sm:$0xff]  ;;  %v7330_v35 = vld [vmem:[%s9878_s8 + $0x90] sm:$0xff]  ;;  %v7786_v38 = vld [vmem:[%s9925_s7 + $0x1] ss:$0 sm:$0xff] }
 0x260   : > { %5523 = vmatmul.msk.bf16.vlgmr.msrb.gmra.mxu3 %vm634_vm1, %v984_v37 }
 0x261   : > { %7664 = vrot.lane.b32.xlu1 %v7663_v41, %s8014_s20  ;;  %1393 = vmatpush.bf16.msra.mxu3 %v7330_v35  ;;  %v7329_v41 = vld [vmem:[%s9878_s8 + $0x88] sm:$0xff] }
 0x265   : > { %1394 = vmatpush.bf16.msra.mxu3 %v7329_v41 }
 0x2d3   : > { %v7665_v43 = vpop.permute.xlu1 %7664 }
 0x2d4   : > { %v7667_v44 = vunpack.i.h.bf16 %v7665_v43  ;;  %v7666_v45 = vunpack.i.l.bf16 %v7665_v43 }
 0x2d6   : > { %v981_v47 = vsel %vm634_vm1, %v967_v33, %v7666_v45  ;;  %v982_v48 = vsel %vm634_vm1, %v968_v46, %v7667_v44  ;;  %v7328_v44 = vld [vmem:[%s9878_s8 + $0x80] sm:$0xff] }
 0x2d7   : > { %v983_v49 = vpack.c.bf16 %v982_v48, %v981_v47  ;;  %1395 = vmatpush.bf16.msra.mxu3 %v7328_v44 }
 0x2d9   : > { %1068 = vmatmul.bf16.vlgmr.msrb.gmra.mxu1 %v983_v49  ;;  %v7327_v49 = vld [vmem:[%s9878_s8 + $0x78] sm:$0xff] }
 0x2db   : > { %1396 = vmatpush.bf16.msra.mxu3 %v7327_v49  ;;  %v7358_v49 = vld [vmem:[%s9878_s8 + $0x110] sm:$0xff] }
 0x2df   : > { %1397 = vmatpush.bf16.msra.mxu3 %v7326_v53  ;;  %v7355_v53 = vld [vmem:[%s9878_s8 + $0xf8] sm:$0xff] }
 0x2e0   : > { %1724 = vmatpush.bf16.msrb.mxu1 %v7355_v53  ;;  %v7367_v53 = vld [vmem:[%s9920_s5 + $0x158] sm:$0xff] }
 0x2e3   : > { %v1083_v56 = vpop.f32.mrf.mxu3  ;;  %1398 = vmatpush.bf16.msra.mxu3 %v7325_v55  ;;  %v7789_v55 = vld [vmem:[%s9924_s6 + $0x2] ss:$0 sm:$0xff] }
 0x2eb   : > { %v1085_v6 = vpop.f32.mrf.mxu3 }
 0x356   : > { %v1069_v57 = vpop.f32.mrf.mxu1 }
 0x357   : > { %v1070_v58 = vadd.f32 %v1069_v57, %v8243_v40  ;;  %v7317_v40 = vld [vmem:[%s9920_s5 + $0x88] sm:$0xff] }
 0x358   : > { %1228 = vmatpush.bf16.msrb.mxu0 %v7317_v40 }
 0x359   : > { %v8354_v61 = vadd.f32 %v1083_v56, %v1070_v58 }
 0x35b   : > { %v1093_v63 = vmul.f32 %v7783_v59, %v8354_v61 }
 0x35c   : > { %1229 = vmatpush.bf16.msrb.mxu0 %v7316_v5 }
 0x35d   : > { %v1100_v0 = vadd.f32 %v7784_v62, %v1093_v63  ;;  %v7324_v63 = vld [vmem:[%s9878_s8 + $0x60] sm:$0xff] }
 0x35e   : > { %v1071_v2 = vpop.f32.mrf.mxu1  ;;  %1399 = vmatpush.bf16.msra.mxu3 %v7324_v63 }
 0x35f   : > { %v1102_v3 = vmax.f32 %v1100_v0, 0.0  ;;  %v1072_v4 = vadd.f32 %v1071_v2, %v8256_v50  ;;  %v7314_v50 = vld [vmem:[%s9920_s5 + $0x70] sm:$0xff] }
 0x360   : > { %1230 = vmatpush.bf16.msrb.mxu0 %v7315_v9  ;;  %v7346_v9 = vld [vmem:[%s9920_s5 + $0x110] sm:$0xff] }
 0x361   : > { %1131 = vst.msk [vmem:[#allocation2 + $0x1] sm:$0xff] %vm634_vm1, %v1102_v3  ;;  %v8368_v7 = vadd.f32 %v1085_v6, %v1072_v4 }
 0x363   : > { %v1094_v8 = vmul.f32 %v7783_v59, %v8368_v7 }
 0x364   : > { %1231 = vmatpush.bf16.msrb.mxu0 %v7314_v50  ;;  %v7343_v50 = vld [vmem:[%s9920_s5 + $0xf8] sm:$0xff] }
 0x365   : > { %v1101_v10 = vadd.f32 %v7784_v62, %v1094_v8  ;;  %v7347_v8 = vld [vmem:[%s9920_s5 + $0x118] sm:$0xff]  ;;  %1558 = vmatpush.bf16.msra.mxu2 %v7343_v50  ;;  %v7349_v50 = vld [vmem:[%s9878_s8 + $0xc8] sm:$0xff] }
 0x367   : > { %v1103_v11 = vmax.f32 %v1101_v10, 0.0  ;;  %v7345_v10 = vld [vmem:[%s9920_s5 + $0x108] sm:$0xff] }
 0x368   : > { %v1133_v12 = vld [vmem:[#allocation2] sm:$0xff]  ;;  %1232 = vmatpush.bf16.msrb.mxu0 %v7313_v13 }
 0x369   : > { %1295 = vst.msk [vmem:[#allocation2] sm:$0x1] %vm631_vm0, %v8013_v1  ;;  %v1135_v17 = vld [vmem:[#allocation2 + $0x1] sm:$0xff] }
 0x36a   : > { %1132 = vst.msk [vmem:[#allocation2 + $0x9] sm:$0xff] %vm634_vm1, %v1103_v11  ;;  %v7344_v11 = vld [vmem:[%s9920_s5 + $0x100] sm:$0xff] }
 0x36c   : > { %1233 = vmatpush.bf16.msrb.mxu0 %v7312_v20 }
 0x370   : > { %1576 = vmatpush.bf16.msra.mxu0 %v7347_v8 }
 0x371   : > { %v1137_v14 = vld [vmem:[#allocation2 + $0x2] sm:$0xff]  ;;  %v1138_v15 = vld [vmem:[#allocation2 + $0xa] sm:$0xff] }
 0x372   : > { %1296 = vst.msk [vmem:[#allocation2 + $0x11] sm:$0x1] %vm631_vm0, %v8013_v1  ;;  %v1150_v16 = vpack.c.bf16 %v1138_v15, %v1137_v14  ;;  %v1136_v18 = vld [vmem:[#allocation2 + $0x9] sm:$0xff]  ;;  %v7787_v15 = vld [vmem:[%s9922_s3 + $0x2] ss:$0 sm:$0xff] }
 0x373   : > { %v7668_v19 = vpack.i.bf16 %v1136_v18, %v1135_v17  ;;  %v1134_v24 = vld [vmem:[#allocation2 + $0x8] sm:$0xff]  ;;  %v7788_v18 = vld [vmem:[%s9923_s4 + $0x2] ss:$0 sm:$0xff] }
 0x374   : > { %5598 = vmatmul.msk.bf16.vlgmr.msrb.gmra.mxu2 %vm634_vm1, %v1150_v16  ;;  %1577 = vmatpush.bf16.msra.mxu0 %v7346_v9  ;;  %v7342_v16 = vld [vmem:[%s9920_s5 + $0xf0] sm:$0xff] }
 0x375   : > { %7669 = vrot.lane.b32.xlu1 %v7668_v19, %s8014_s20  ;;  %1559 = vmatpush.bf16.msra.mxu2 %v7342_v16 }
 0x378   : > { %1578 = vmatpush.bf16.msra.mxu0 %v7345_v10  ;;  %v7350_v10 = vld [vmem:[%s9878_s8 + $0xd0] sm:$0xff] }
 0x37c   : > { %1579 = vmatpush.bf16.msra.mxu0 %v7344_v11 }
 0x3e7   : > { %v7670_v21 = vpop.permute.xlu1 %7669 }
 0x3e8   : > { %v7672_v22 = vunpack.i.h.bf16 %v7670_v21  ;;  %v7671_v23 = vunpack.i.l.bf16 %v7670_v21 }
 0x3ea   : > { %v1147_v25 = vsel %vm634_vm1, %v1133_v12, %v7671_v23  ;;  %v1148_v26 = vsel %vm634_vm1, %v1134_v24, %v7672_v22  ;;  %v7340_v24 = vld [vmem:[%s9920_s5 + $0xe0] sm:$0xff] }
 0x3eb   : > { %v1149_v27 = vpack.c.bf16 %v1148_v26, %v1147_v25 }
 0x3ed   : > { %1234 = vmatmul.bf16.vlgmr.msrb.gmra.mxu0 %v1149_v27 }
 0x3f7   : > { %v1249_v33 = vpop.f32.mrf.mxu2 }
 0x3ff   : > { %v1251_v45 = vpop.f32.mrf.mxu2 }
 0x46a   : > { %v1235_v36 = vpop.f32.mrf.mxu0 }
 0x46b   : > { %v1250_v37 = vadd.f32 %v1249_v33, %v1235_v36 }
 0x46d   : > { %v1259_v39 = vmul.f32 %v7785_v34, %v1250_v37 }
 0x46f   : > { %v1266_v42 = vadd.f32 %v7786_v38, %v1259_v39  ;;  %v7336_v39 = vld [vmem:[%s9920_s5 + $0xc0] sm:$0xff] }
 0x471   : > { %v1268_v43 = vmax.f32 %v1266_v42, 0.0 }
 0x472   : > { %v1237_v46 = vpop.f32.mrf.mxu0 }
 0x473   : > { %1297 = vst.msk [vmem:[#allocation2 + $0x1] sm:$0xff] %vm634_vm1, %v1268_v43  ;;  %v1252_v47 = vadd.f32 %v1251_v45, %v1237_v46 }
 0x475   : > { %v1260_v48 = vmul.f32 %v7785_v34, %v1252_v47 }
 0x477   : > { %v1267_v51 = vadd.f32 %v7786_v38, %v1260_v48  ;;  %v7359_v48 = vld [vmem:[%s9878_s8 + $0x118] sm:$0xff] }
 0x478   : > { %1742 = vmatpush.bf16.msrb.mxu3 %v7359_v48 }
 0x479   : > { %v1269_v52 = vmax.f32 %v1267_v51, 0.0  ;;  %v7357_v51 = vld [vmem:[%s9878_s8 + $0x108] sm:$0xff] }
 0x47a   : > { %v1299_v54 = vld [vmem:[#allocation2] sm:$0xff] }
 0x47b   : > { %1461 = vst.msk [vmem:[#allocation2] sm:$0x1] %vm631_vm0, %v8013_v1  ;;  %v1301_v59 = vld [vmem:[#allocation2 + $0x1] sm:$0xff] }
 0x47c   : > { %1298 = vst.msk [vmem:[#allocation2 + $0x9] sm:$0xff] %vm634_vm1, %v1269_v52  ;;  %1743 = vmatpush.bf16.msrb.mxu3 %v7358_v49  ;;  %v7356_v52 = vld [vmem:[%s9878_s8 + $0x100] sm:$0xff] }
 0x47d   : > { %v7792_v49 = vld [vmem:[%s9923_s4 + $0x3] ss:$0 sm:$0xff] }
 0x480   : > { %1744 = vmatpush.bf16.msrb.mxu3 %v7357_v51 }
 0x483   : > { %v1303_v56 = vld [vmem:[#allocation2 + $0x2] sm:$0xff]  ;;  %v1304_v57 = vld [vmem:[#allocation2 + $0xa] sm:$0xff] }
 0x484   : > { %1462 = vst.msk [vmem:[#allocation2 + $0x11] sm:$0x1] %vm631_vm0, %v8013_v1  ;;  %v1316_v58 = vpack.c.bf16 %v1304_v57, %v1303_v56  ;;  %v1302_v60 = vld [vmem:[#allocation2 + $0x9] sm:$0xff]  ;;  %1745 = vmatpush.bf16.msrb.mxu3 %v7356_v52 }
 0x485   : > { %v7673_v62 = vpack.i.bf16 %v1302_v60, %v1301_v59  ;;  %v1300_v3 = vld [vmem:[#allocation2 + $0x8] sm:$0xff]  ;;  %v7354_v56 = vld [vmem:[%s9878_s8 + $0xf0] sm:$0xff]  ;;  %v7790_v59 = vld [vmem:[%s9925_s7 + $0x2] ss:$0 sm:$0xff] }
 0x486   : > { %5673 = vmatmul.msk.bf16.vlgmr.msra.gmra.mxu1 %vm634_vm1, %v1316_v58 }
 0x487   : > { %7674 = vrot.lane.b32.xlu2 %v7673_v62, %s8014_s20  ;;  %1725 = vmatpush.bf16.msrb.mxu1 %v7354_v56  ;;  %v7353_v62 = vld [vmem:[%s9878_s8 + $0xe8] sm:$0xff] }
 0x48b   : > { %1726 = vmatpush.bf16.msrb.mxu1 %v7353_v62  ;;  %v7365_v62 = vld [vmem:[%s9920_s5 + $0x148] sm:$0xff] }
 0x4e1   : > { %v7675_v40 = vpop.permute.xlu2 %7674 }
 0x4e2   : > { %v7677_v0 = vunpack.i.h.bf16 %v7675_v40  ;;  %v7676_v2 = vunpack.i.l.bf16 %v7675_v40 }
 0x4e4   : > { %v1313_v4 = vsel %vm634_vm1, %v1299_v54, %v7676_v2  ;;  %v1314_v5 = vsel %vm634_vm1, %v1300_v3, %v7677_v0  ;;  %v7352_v0 = vld [vmem:[%s9878_s8 + $0xe0] sm:$0xff] }
 0x4e5   : > { %v1315_v6 = vpack.c.bf16 %v1314_v5, %v1313_v4  ;;  %1727 = vmatpush.bf16.msrb.mxu1 %v7352_v0 }
 0x4e7   : > { %1400 = vmatmul.bf16.vlgmr.msra.gmra.mxu3 %v1315_v6  ;;  %v7351_v6 = vld [vmem:[%s9878_s8 + $0xd8] sm:$0xff] }
 0x4e9   : > { %1728 = vmatpush.bf16.msrb.mxu1 %v7351_v6 }
 0x4ed   : > { %1729 = vmatpush.bf16.msrb.mxu1 %v7350_v10 }
 0x4f1   : > { %1730 = vmatpush.bf16.msrb.mxu1 %v7349_v50  ;;  %v7363_v50 = vld [vmem:[%s9920_s5 + $0x138] sm:$0xff] }
 0x503   : > { %v1415_v12 = vpop.f32.mrf.mxu1 }
 0x50b   : > { %v1417_v25 = vpop.f32.mrf.mxu1 }
 0x56a   : > { %v1401_v13 = vpop.f32.mrf.mxu3 }
 0x56b   : > { %v1402_v14 = vadd.f32 %v1401_v13, %v8354_v61  ;;  %v7341_v61 = vld [vmem:[%s9920_s5 + $0xe8] sm:$0xff] }
 0x56c   : > { %1560 = vmatpush.bf16.msra.mxu2 %v7341_v61 }
 0x56d   : > { %v8466_v17 = vadd.f32 %v1415_v12, %v1402_v14 }
 0x56f   : > { %v1425_v19 = vmul.f32 %v7787_v15, %v8466_v17 }
 0x570   : > { %1561 = vmatpush.bf16.msra.mxu2 %v7340_v24 }
 0x571   : > { %v1432_v20 = vadd.f32 %v7788_v18, %v1425_v19  ;;  %v7348_v19 = vld [vmem:[%s9878_s8 + $0xc0] sm:$0xff] }
 0x572   : > { %v1403_v21 = vpop.f32.mrf.mxu3  ;;  %1731 = vmatpush.bf16.msrb.mxu1 %v7348_v19 }
 0x573   : > { %v1434_v22 = vmax.f32 %v1432_v20, 0.0  ;;  %v1404_v23 = vadd.f32 %v1403_v21, %v8368_v7  ;;  %v7338_v7 = vld [vmem:[%s9920_s5 + $0xd0] sm:$0xff] }
 0x574   : > { %1562 = vmatpush.bf16.msra.mxu2 %v7339_v28  ;;  %v1775_v28 = vld [vmem:[%s9880_s10 + $0x30] sm:$0xff] }
 0x575   : > { %1463 = vst.msk [vmem:[#allocation2 + $0x1] sm:$0xff] %vm634_vm1, %v1434_v22  ;;  %v8480_v26 = vadd.f32 %v1417_v25, %v1404_v23 }
 0x577   : > { %v1426_v27 = vmul.f32 %v7787_v15, %v8480_v26 }
 0x578   : > { %1563 = vmatpush.bf16.msra.mxu2 %v7338_v7  ;;  %v1773_v7 = vld [vmem:[%s9880_s10 + $0x20] sm:$0xff] }
 0x579   : > { %v1433_v29 = vadd.f32 %v7788_v18, %v1426_v27  ;;  %v1776_v27 = vld [vmem:[%s9880_s10 + $0x38] sm:$0xff] }
 0x57a   : > { %1789 = vmatpush.msrb.mxu0 %v1776_v27 }
 0x57b   : > { %v1435_v30 = vmax.f32 %v1433_v29, 0.0  ;;  %v1774_v29 = vld [vmem:[%s9880_s10 + $0x28] sm:$0xff] }
 0x57c   : > { %v1465_v31 = vld [vmem:[#allocation2] sm:$0xff]  ;;  %1564 = vmatpush.bf16.msra.mxu2 %v7337_v32  ;;  %1790 = vmatpush.msrb.mxu0 %v1775_v28  ;;  %v7370_v32 = vld [vmem:[%s9920_s5 + $0x170] sm:$0xff] }
 0x57d   : > { %1627 = vst.msk [vmem:[#allocation2] sm:$0x1] %vm631_vm0, %v8013_v1  ;;  %v1467_v36 = vld [vmem:[#allocation2 + $0x1] sm:$0xff] }
 0x57e   : > { %1464 = vst.msk [vmem:[#allocation2 + $0x9] sm:$0xff] %vm634_vm1, %v1435_v30  ;;  %1791 = vmatpush.msrb.mxu0 %v1774_v29  ;;  %v7371_v30 = vld [vmem:[%s9920_s5 + $0x178] sm:$0xff]  ;;  %v7360_v28 = vld [vmem:[%s9920_s5 + $0x120] sm:$0xff] }
 0x57f   : > { %1957 = vmatpush.bf16.msra.mxu3 %v7371_v30 }
 0x580   : > { %1565 = vmatpush.bf16.msra.mxu2 %v7336_v39  ;;  %1792 = vmatpush.msrb.mxu0 %v1773_v7  ;;  %v7386_v39 = vld [vmem:[%s9879_s9 + $0x10] sm:$0xff] }
 0x583   : > { %1958 = vmatpush.bf16.msra.mxu3 %v7370_v32 }
 0x584   : > { %1939 = vmatpush.bf16.msrb.mxu2 %v7367_v53 }
 0x585   : > { %v1469_v33 = vld [vmem:[#allocation2 + $0x2] sm:$0xff]  ;;  %v1470_v34 = vld [vmem:[#allocation2 + $0xa] sm:$0xff] }
 0x586   : > { %1628 = vst.msk [vmem:[#allocation2 + $0x11] sm:$0x1] %vm631_vm0, %v8013_v1  ;;  %v1482_v35 = vpack.c.bf16 %v1470_v34, %v1469_v33  ;;  %v1468_v37 = vld [vmem:[#allocation2 + $0x9] sm:$0xff] }
 0x587   : > { %v7678_v38 = vpack.i.bf16 %v1468_v37, %v1467_v36  ;;  %v1466_v44 = vld [vmem:[#allocation2 + $0x8] sm:$0xff]  ;;  %v1771_v33 = vld [vmem:[%s9880_s10 + $0x10] sm:$0xff]  ;;  %v1769_v36 = vld [vmem:[%s9880_s10] sm:$0xff] }
 0x588   : > { %5748 = vmatmul.msk.bf16.vlgmr.msra.gmra.mxu0 %vm634_vm1, %v1482_v35  ;;  %v1770_v34 = vld [vmem:[%s9880_s10 + $0x8] sm:$0xff]  ;;  %v7387_v37 = vld [vmem:[%s9879_s9 + $0x18] sm:$0xff] }
 0x589   : > { %7679 = vrot.lane.b32.xlu2 %v7678_v38, %s8014_s20  ;;  %v7369_v35 = vld [vmem:[%s9920_s5 + $0x168] sm:$0xff]  ;;  %v7368_v38 = vld [vmem:[%s9920_s5 + $0x160] sm:$0xff] }
 0x58a   : > { %1959 = vmatpush.bf16.msra.mxu3 %v7369_v35  ;;  %v1777_v35 = vld [vmem:[%s9881_s11] sm:$0x1] }
 0x58e   : > { %1960 = vmatpush.bf16.msra.mxu3 %v7368_v38  ;;  %v7383_v38 = vld [vmem:[%s9878_s8 + $0x178] sm:$0xff] }
 0x5e3   : > { %v7680_v41 = vpop.permute.xlu2 %7679 }
 0x5e4   : > { %v7682_v42 = vunpack.i.h.bf16 %v7680_v41  ;;  %v7681_v43 = vunpack.i.l.bf16 %v7680_v41  ;;  %v7385_v41 = vld [vmem:[%s9879_s9 + $0x8] sm:$0xff] }
 0x5e6   : > { %v1479_v45 = vsel %vm634_vm1, %v1465_v31, %v7681_v43  ;;  %v1480_v46 = vsel %vm634_vm1, %v1466_v44, %v7682_v42  ;;  %v1772_v31 = vld [vmem:[%s9880_s10 + $0x18] sm:$0xff]  ;;  %v7384_v42 = vld [vmem:[%s9879_s9] sm:$0xff] }
 0x5e7   : > { %v1481_v47 = vpack.c.bf16 %v1480_v46, %v1479_v45  ;;  %1793 = vmatpush.msrb.mxu0 %v1772_v31  ;;  %v8015_v45 = vmov 16.0  }
 0x5e8   : > { %7827 = vrcp.f32 %v8015_v45 }
 0x5e9   : > { %1566 = vmatmul.bf16.vlgmr.msra.gmra.mxu2 %v1481_v47  ;;  %1794 = vmatpush.msrb.mxu0 %v1771_v33  ;;  %v7791_v47 = vld [vmem:[%s9922_s3 + $0x3] ss:$0 sm:$0xff] }
 0x5eb   : > { %1795 = vmatpush.msrb.mxu0 %v1770_v34 }
 0x5ed   : > { %1796 = vmatpush.msrb.mxu0 %v1769_v36 }
 0x5ee   : > { %v7828_v52 = vpop.eup %7827 }
 0x5ef   : > { %2070 = vmatpush.bf16.msra.mxu0 %v7387_v37  ;;  %vm1766_vm2 = vweird.f32 %v7828_v52 }
 0x5f3   : > { %2071 = vmatpush.bf16.msra.mxu0 %v7386_v39  ;;  %v7382_v39 = vld [vmem:[%s9878_s8 + $0x170] sm:$0xff] }
 0x5f7   : > { %2072 = vmatpush.bf16.msra.mxu0 %v7385_v41  ;;  %v7381_v41 = vld [vmem:[%s9878_s8 + $0x168] sm:$0xff] }
 0x5fb   : > { %2073 = vmatpush.bf16.msra.mxu0 %v7384_v42  ;;  %v7380_v42 = vld [vmem:[%s9878_s8 + $0x160] sm:$0xff] }
 0x605   : > { %v1581_v54 = vpop.f32.mrf.mxu0 }
 0x60d   : > { %v1583_v2 = vpop.f32.mrf.mxu0 }
 0x66c   : > { %v1567_v57 = vpop.f32.mrf.mxu2 }
 0x66d   : > { %v1582_v58 = vadd.f32 %v1581_v54, %v1567_v57 }
 0x66f   : > { %v1591_v60 = vmul.f32 %v7789_v55, %v1582_v58  ;;  %v1762_v58 = vmul.f32 16.0, %v7828_v52 }
 0x671   : > { %v1598_v63 = vadd.f32 %v7790_v59, %v1591_v60 }
 0x673   : > { %v1600_v40 = vmax.f32 %v1598_v63, 0.0 }
 0x674   : > { %v1569_v3 = vpop.f32.mrf.mxu2 }
 0x675   : > { %1629 = vst.msk [vmem:[#allocation2 + $0x1] sm:$0xff] %vm634_vm1, %v1600_v40  ;;  %v1584_v4 = vadd.f32 %v1583_v2, %v1569_v3  ;;  %v1763_v2 = vsub.f32 1.0, %v1762_v58  ;;  %v7375_v58 = vld [vmem:[%s9878_s8 + $0x138] sm:$0xff] }
 0x677   : > { %v1592_v5 = vmul.f32 %v7789_v55, %v1584_v4 }
 0x679   : > { %v1599_v8 = vadd.f32 %v7790_v59, %v1592_v5 }
 0x67b   : > { %v1601_v9 = vmax.f32 %v1599_v8, 0.0  ;;  %v1764_v8 = vmul.f32 %v7828_v52, %v1763_v2 }
 0x67c   : > { %v1631_v11 = vld [vmem:[#allocation2] sm:$0xff] }
 0x67d   : > { %1842 = vst.msk [vmem:[#allocation2] sm:$0x1] %vm631_vm0, %v8013_v1  ;;  %v1633_v15 = vld [vmem:[#allocation2 + $0x1] sm:$0xff] }
 0x67e   : > { %1630 = vst.msk [vmem:[#allocation2 + $0x9] sm:$0xff] %vm634_vm1, %v1601_v9 }
 0x685   : > { %v1635_v12 = vld [vmem:[#allocation2 + $0x2] sm:$0xff]  ;;  %v1636_v13 = vld [vmem:[#allocation2 + $0xa] sm:$0xff] }
 0x686   : > { %1843 = vst.msk [vmem:[#allocation2 + $0x11] sm:$0x1] %vm631_vm0, %v8013_v1  ;;  %v1648_v14 = vpack.c.bf16 %v1636_v13, %v1635_v12  ;;  %v1634_v16 = vld [vmem:[#allocation2 + $0x9] sm:$0xff]  ;;  %v1765_v12 = vadd.f32 %v7828_v52, %v1764_v8  ;;  %v7372_v8 = vld [vmem:[%s9878_s8 + $0x120] sm:$0xff] }
 0x687   : > { %v7683_v18 = vpack.i.bf16 %v1634_v16, %v1633_v15  ;;  %v1632_v22 = vld [vmem:[#allocation2 + $0x8] sm:$0xff]  ;;  %v7362_v15 = vld [vmem:[%s9920_s5 + $0x130] sm:$0xff] }
 0x688   : > { %5823 = vmatmul.msk.bf16.vlgmr.msrb.gmra.mxu3 %vm634_vm1, %v1648_v14 }
 0x689   : > { %7684 = vrot.lane.b32.xlu0 %v7683_v18, %s8014_s20  ;;  %v8636_v18 = vsel %vm1766_vm2, %v7828_v52, %v1765_v12  ;;  %2173 = vmatpush.bf16.msrb.mxu3 %v7383_v38 }
 0x68d   : > { %2174 = vmatpush.bf16.msrb.mxu3 %v7382_v39 }
 0x691   : > { %2175 = vmatpush.bf16.msrb.mxu3 %v7381_v41  ;;  %v7391_v41 = vld [vmem:[%s9920_s5 + $0x198] sm:$0xff] }
 0x695   : > { %2176 = vmatpush.bf16.msrb.mxu3 %v7380_v42 }
 0x6fb   : > { %v7685_v61 = vpop.permute.xlu0 %7684 }
 0x6fc   : > { %v7687_v20 = vunpack.i.h.bf16 %v7685_v61  ;;  %v7686_v21 = vunpack.i.l.bf16 %v7685_v61 }
 0x6fe   : > { %v1645_v23 = vsel %vm634_vm1, %v1631_v11, %v7686_v21  ;;  %v1646_v24 = vsel %vm634_vm1, %v1632_v22, %v7687_v20 }
 0x6ff   : > { %v1647_v25 = vpack.c.bf16 %v1646_v24, %v1645_v23 }
 0x701   : > { %1732 = vmatmul.bf16.vlgmr.msrb.gmra.mxu1 %v1647_v25  ;;  %v7361_v25 = vld [vmem:[%s9920_s5 + $0x128] sm:$0xff] }
 0x70b   : > { %v1747_v43 = vpop.f32.mrf.mxu3 }
 0x713   : > { %v1749_v59 = vpop.f32.mrf.mxu3 }
 0x77e   : > { %v1733_v44 = vpop.f32.mrf.mxu1 }
 0x77f   : > { %v1734_v46 = vadd.f32 %v1733_v44, %v8466_v17  ;;  %v7366_v17 = vld [vmem:[%s9920_s5 + $0x150] sm:$0xff] }
 0x780   : > { %1940 = vmatpush.bf16.msrb.mxu2 %v7366_v17  ;;  %v7378_v44 = vld [vmem:[%s9878_s8 + $0x150] sm:$0xff] }
 0x781   : > { %v1748_v48 = vadd.f32 %v1747_v43, %v1734_v46  ;;  %v7379_v43 = vld [vmem:[%s9878_s8 + $0x158] sm:$0xff]  ;;  %v7793_v46 = vld [vmem:[%s9924_s6 + $0x3] ss:$0 sm:$0xff] }
 0x782   : > { %2155 = vmatpush.bf16.msra.mxu1 %v7379_v43 }
 0x783   : > { %v1806_v51 = vmul.f32 %v7791_v47, %v1748_v48  ;;  %v1752_v63 = vsel %vm634_vm1, %v1748_v48, 0.0 }
 0x784   : > { %1941 = vmatpush.bf16.msrb.mxu2 %v7365_v62  ;;  %v7374_v62 = vld [vmem:[%s9878_s8 + $0x130] sm:$0xff] }
 0x785   : > { %v1813_v54 = vadd.f32 %v7792_v49, %v1806_v51  ;;  %v7377_v51 = vld [vmem:[%s9878_s8 + $0x148] sm:$0xff] }
 0x786   : > { %v1735_v55 = vpop.f32.mrf.mxu1  ;;  %2156 = vmatpush.bf16.msra.mxu1 %v7378_v44  ;;  %v7390_v44 = vld [vmem:[%s9920_s5 + $0x190] sm:$0xff] }
 0x787   : > { %v1815_v56 = vmax.f32 %v1813_v54, 0.0  ;;  %v1736_v57 = vadd.f32 %v1735_v55, %v8480_v26  ;;  %v7364_v26 = vld [vmem:[%s9920_s5 + $0x140] sm:$0xff] }
 0x788   : > { %1942 = vmatpush.bf16.msrb.mxu2 %v7364_v26  ;;  %v7376_v54 = vld [vmem:[%s9878_s8 + $0x140] sm:$0xff] }
 0x789   : > { %1844 = vst.msk [vmem:[#allocation2 + $0x1] sm:$0xff] %vm634_vm1, %v1815_v56  ;;  %v1750_v60 = vadd.f32 %v1749_v59, %v1736_v57 }
 0x78a   : > { %2157 = vmatpush.bf16.msra.mxu1 %v7377_v51 }
 0x78b   : > { %v1753_v40 = vsel %vm634_vm1, %v1750_v60, 0.0  ;;  %v1807_v0 = vmul.f32 %v7791_v47, %v1750_v60  ;;  %v2030_v27 = vpack.c.bf16 %v1750_v60, %v1748_v48 }
 0x78c   : > { %v1754_v3 = vadd.f32 %v1753_v40, %v1752_v63  ;;  %1943 = vmatpush.bf16.msrb.mxu2 %v7363_v50  ;;  %v7373_v40 = vld [vmem:[%s9878_s8 + $0x128] sm:$0xff] }
 0x78d   : > { %v1814_v4 = vadd.f32 %v7792_v49, %v1807_v0  ;;  %v7794_v49 = vld [vmem:[%s9925_s7 + $0x3] ss:$0 sm:$0xff] }
 0x78e   : > { %v1755_v5 = vrot.slane %v1754_v3, 4  ;;  %2158 = vmatpush.bf16.msra.mxu1 %v7376_v54 }
 0x78f   : > { %v1816_v6 = vmax.f32 %v1814_v4, 0.0 }
 0x790   : > { %v1756_v9 = vadd.f32 %v1755_v5, %v1754_v3  ;;  %v1846_v10 = vld [vmem:[#allocation2] sm:$0xff]  ;;  %1944 = vmatpush.bf16.msrb.mxu2 %v7362_v15  ;;  %v7399_v15 = vld [vmem:[%s9920_s5 + $0x1d8] sm:$0xff] }
 0x791   : > { %1845 = vst.msk [vmem:[#allocation2 + $0x9] sm:$0xff] %vm634_vm1, %v1816_v6  ;;  %v1848_v16 = vld [vmem:[#allocation2 + $0x1] sm:$0xff] }
 0x792   : > { %v1757_v11 = vrot.slane %v1756_v9, 2  ;;  %2008 = vst.msk [vmem:[#allocation2] sm:$0x1] %vm631_vm0, %v8013_v1  ;;  %2159 = vmatpush.bf16.msra.mxu1 %v7375_v58 }
 0x794   : > { %v1758_v13 = vadd.f32 %v1757_v11, %v1756_v9  ;;  %1945 = vmatpush.bf16.msrb.mxu2 %v7361_v25 }
 0x796   : > { %v1759_v14 = vrot.slane %v1758_v13, 1  ;;  %2160 = vmatpush.bf16.msra.mxu1 %v7374_v62 }
 0x798   : > { %v1850_v19 = vld [vmem:[#allocation2 + $0x2] sm:$0xff]  ;;  %v1851_v61 = vld [vmem:[#allocation2 + $0xa] sm:$0xff]  ;;  %v1760_v21 = vadd.f32 %v1759_v14, %v1758_v13  ;;  %1946 = vmatpush.bf16.msrb.mxu2 %v7360_v28 }
 0x799   : > { %v1849_v20 = vld [vmem:[#allocation2 + $0x9] sm:$0xff]  ;;  %v1863_v22 = vpack.c.bf16 %v1851_v61, %v1850_v19  ;;  %2009 = vst.msk [vmem:[#allocation2 + $0x11] sm:$0x1] %vm631_vm0, %v8013_v1  ;;  %v7396_v61 = vld [vmem:[%s9920_s5 + $0x1c0] sm:$0xff] }
 0x79a   : > { %v7688_v23 = vpack.i.bf16 %v1849_v20, %v1848_v16  ;;  %v1768_v24 = vmul.f32 %v8636_v18, %v1760_v21  ;;  %v1847_v31 = vld [vmem:[#allocation2 + $0x8] sm:$0xff]  ;;  %2161 = vmatpush.bf16.msra.mxu1 %v7373_v40  ;;  %v7398_v16 = vld [vmem:[%s9920_s5 + $0x1d0] sm:$0xff]  ;;  %v7395_v20 = vld [vmem:[%s9920_s5 + $0x1b8] sm:$0xff] }
 0x79b   : > { %5899 = vmatmul.msk.bf16.vlgmr.msra.gmra.mxu3 %vm634_vm1, %v1863_v22  ;;  %v7397_v19 = vld [vmem:[%s9920_s5 + $0x1c8] sm:$0xff]  ;;  %v7394_v22 = vld [vmem:[%s9920_s5 + $0x1b0] sm:$0xff] }
 0x79c   : > { %7689 = vrot.lane.b32.xlu1 %v7688_v23, %s8014_s20  ;;  %5824 = vmatmul.msk.f32.vlgmr.msrb.gmra.mxu0 %vm634_vm1, %v1768_v24  ;;  %v7410_v40 = vld [vmem:[%s9878_s8 + $0x1d0] sm:$0xff] }
 0x79d   : > { %2339 = vmatpush.bf16.msra.mxu2 %v7399_v15  ;;  %2321 = vmatpush.bf16.msrb.mxu0 %v7395_v20 }
 0x79e   : > { %2162 = vmatpush.bf16.msra.mxu1 %v7372_v8 }
 0x7a1   : > { %2340 = vmatpush.bf16.msra.mxu2 %v7398_v16  ;;  %2322 = vmatpush.bf16.msrb.mxu0 %v7394_v22 }
 0x7a4   : > { %5942 = vmatmul.msk.bf16.vlgmr.msra.gmra.mxu0 %vm634_vm1, %v2030_v27  ;;  %v7795_v27 = vld [vmem:[%s9922_s3 + $0x4] ss:$0 sm:$0xff] }
 0x7a5   : > { %2341 = vmatpush.bf16.msra.mxu2 %v7397_v19  ;;  %v7403_v19 = vld [vmem:[%s9878_s8 + $0x198] sm:$0xff] }
 0x7a9   : > { %2342 = vmatpush.bf16.msra.mxu2 %v7396_v61 }
 0x80e   : > { %v7690_v29 = vpop.permute.xlu1 %7689 }
 0x80f   : > { %v7692_v30 = vunpack.i.h.bf16 %v7690_v29  ;;  %v7691_v7 = vunpack.i.l.bf16 %v7690_v29  ;;  %v7796_v29 = vld [vmem:[%s9923_s4 + $0x4] ss:$0 sm:$0xff] }
 0x811   : > { %v1860_v32 = vsel %vm634_vm1, %v1846_v10, %v7691_v7  ;;  %v1861_v33 = vsel %vm634_vm1, %v1847_v31, %v7692_v30  ;;  %v7393_v30 = vld [vmem:[%s9920_s5 + $0x1a8] sm:$0xff] }
 0x812   : > { %v1862_v34 = vpack.c.bf16 %v1861_v33, %v1860_v32  ;;  %2323 = vmatpush.bf16.msrb.mxu0 %v7393_v30  ;;  %v7392_v32 = vld [vmem:[%s9920_s5 + $0x1a0] sm:$0xff] }
 0x814   : > { %1947 = vmatmul.bf16.vlgmr.msrb.gmra.mxu2 %v1862_v34 }
 0x816   : > { %2324 = vmatpush.bf16.msrb.mxu0 %v7392_v32  ;;  %v7400_v32 = vld [vmem:[%s9878_s8 + $0x180] sm:$0xff] }
 0x819   : > { %v1798_v36 = vpop.f32.mrf.mxu0 }
 0x81a   : > { %v8659_v37 = vadd.f32 %v1798_v36, %v1777_v35  ;;  %2325 = vmatpush.bf16.msrb.mxu0 %v7391_v41 }
 0x81c   : > { %5124 = vst.msk [vmem:[%s9898_s25] sm:$0x1] %vm5123_vm3, %v8659_v37 }
 0x81e   : > { %v1962_v45 = vpop.f32.mrf.mxu3  ;;  %2326 = vmatpush.bf16.msrb.mxu0 %v7390_v44  ;;  %v7422_v44 = vld [vmem:[%s9920_s5 + $0x230] sm:$0xff] }
 0x821   : > { %v2075_v21 = vpop.f32.mrf.mxu0 }
 0x826   : > { %v1964_v17 = vpop.f32.mrf.mxu3 }
 0x829   : > { %v2077_v33 = vpop.f32.mrf.mxu0 }
 0x897   : > { %v1948_v47 = vpop.f32.mrf.mxu2 }
 0x898   : > { %v1963_v48 = vadd.f32 %v1962_v45, %v1948_v47 }
 0x89a   : > { %v1972_v52 = vmul.f32 %v7793_v46, %v1963_v48 }
 0x89c   : > { %v1979_v53 = vadd.f32 %v7794_v49, %v1972_v52 }
 0x89e   : > { %v1981_v55 = vmax.f32 %v1979_v53, 0.0 }
 0x89f   : > { %v1950_v56 = vpop.f32.mrf.mxu2 }
 0x8a0   : > { %2010 = vst.msk [vmem:[#allocation2 + $0x1] sm:$0xff] %vm634_vm1, %v1981_v55  ;;  %v1965_v57 = vadd.f32 %v1964_v17, %v1950_v56  ;;  %v7388_v55 = vld [vmem:[%s9920_s5 + $0x180] sm:$0xff] }
 0x8a2   : > { %v1973_v59 = vmul.f32 %v7793_v46, %v1965_v57  ;;  %v7389_v46 = vld [vmem:[%s9920_s5 + $0x188] sm:$0xff] }
 0x8a3   : > { %2327 = vmatpush.bf16.msrb.mxu0 %v7389_v46  ;;  %v7420_v46 = vld [vmem:[%s9920_s5 + $0x220] sm:$0xff] }
 0x8a4   : > { %v1980_v60 = vadd.f32 %v7794_v49, %v1973_v59 }
 0x8a6   : > { %v1982_v63 = vmax.f32 %v1980_v60, 0.0 }
 0x8a7   : > { %v2012_v0 = vld [vmem:[#allocation2] sm:$0xff]  ;;  %2328 = vmatpush.bf16.msrb.mxu0 %v7388_v55 }
 0x8a8   : > { %2011 = vst.msk [vmem:[#allocation2 + $0x9] sm:$0xff] %vm634_vm1, %v1982_v63  ;;  %v2014_v2 = vld [vmem:[#allocation2 + $0x1] sm:$0xff]  ;;  %v7411_v63 = vld [vmem:[%s9878_s8 + $0x1d8] sm:$0xff] }
 0x8a9   : > { %2224 = vst.msk [vmem:[#allocation2] sm:$0x1] %vm631_vm0, %v8013_v1  ;;  %2505 = vmatpush.bf16.msrb.mxu1 %v7411_v63  ;;  %v7800_v55 = vld [vmem:[%s9923_s4 + $0x5] ss:$0 sm:$0xff] }
 0x8ad   : > { %2506 = vmatpush.bf16.msrb.mxu1 %v7410_v40  ;;  %v7415_v40 = vld [vmem:[%s9920_s5 + $0x1f8] sm:$0xff] }
 0x8af   : > { %v2016_v3 = vld [vmem:[#allocation2 + $0x2] sm:$0xff]  ;;  %v2017_v4 = vld [vmem:[#allocation2 + $0xa] sm:$0xff] }
 0x8b0   : > { %v2015_v5 = vld [vmem:[#allocation2 + $0x9] sm:$0xff]  ;;  %v2029_v26 = vpack.c.bf16 %v2017_v4, %v2016_v3  ;;  %2225 = vst.msk [vmem:[#allocation2 + $0x11] sm:$0x1] %vm631_vm0, %v8013_v1  ;;  %v7407_v3 = vld [vmem:[%s9878_s8 + $0x1b8] sm:$0xff] }
 0x8b1   : > { %v7693_v6 = vpack.i.bf16 %v2015_v5, %v2014_v2  ;;  %v2013_v50 = vld [vmem:[#allocation2 + $0x8] sm:$0xff]  ;;  %v7408_v2 = vld [vmem:[%s9878_s8 + $0x1c0] sm:$0xff]  ;;  %2487 = vmatpush.bf16.msra.mxu3 %v7407_v3  ;;  %v7406_v4 = vld [vmem:[%s9878_s8 + $0x1b0] sm:$0xff] }
 0x8b2   : > { %5991 = vmatmul.msk.bf16.vlgmr.msrb.gmra.mxu3 %vm634_vm1, %v2029_v26  ;;  %v7797_v26 = vld [vmem:[%s9924_s6 + $0x4] ss:$0 sm:$0xff]  ;;  %v7414_v3 = vld [vmem:[%s9920_s5 + $0x1f0] sm:$0xff] }
 0x8b3   : > { %7694 = vrot.lane.b32.xlu2 %v7693_v6, %s8014_s20 }
 0x8b5   : > { %2488 = vmatpush.bf16.msra.mxu3 %v7406_v4 }
 0x90d   : > { %v7695_v9 = vpop.permute.xlu2 %7694 }
 0x90e   : > { %v7697_v10 = vunpack.i.h.bf16 %v7695_v9  ;;  %v7696_v11 = vunpack.i.l.bf16 %v7695_v9  ;;  %v7798_v9 = vld [vmem:[%s9925_s7 + $0x4] ss:$0 sm:$0xff] }
 0x910   : > { %v2026_v12 = vsel %vm634_vm1, %v2012_v0, %v7696_v11  ;;  %v2027_v13 = vsel %vm634_vm1, %v2013_v50, %v7697_v10  ;;  %v7409_v0 = vld [vmem:[%s9878_s8 + $0x1c8] sm:$0xff] }
 0x911   : > { %v2028_v14 = vpack.c.bf16 %v2027_v13, %v2026_v12  ;;  %2507 = vmatpush.bf16.msrb.mxu1 %v7409_v0  ;;  %v7405_v10 = vld [vmem:[%s9878_s8 + $0x1a8] sm:$0xff]  ;;  %v7404_v12 = vld [vmem:[%s9878_s8 + $0x1a0] sm:$0xff] }
 0x912   : > { %2489 = vmatpush.bf16.msra.mxu3 %v7405_v10 }
 0x913   : > { %2163 = vmatmul.bf16.vlgmr.msra.gmra.mxu1 %v2028_v14 }
 0x915   : > { %2508 = vmatpush.bf16.msrb.mxu1 %v7408_v2 }
 0x916   : > { %2490 = vmatpush.bf16.msra.mxu3 %v7404_v12 }
 0x91a   : > { %2491 = vmatpush.bf16.msra.mxu3 %v7403_v19 }
 0x935   : > { %v2178_v23 = vpop.f32.mrf.mxu3 }
 0x93d   : > { %v2180_v38 = vpop.f32.mrf.mxu3 }
 0x990   : > { %v2164_v24 = vpop.f32.mrf.mxu1 }
 0x991   : > { %v2165_v25 = vadd.f32 %v2164_v24, %v2075_v21  ;;  %v7402_v21 = vld [vmem:[%s9878_s8 + $0x190] sm:$0xff] }
 0x992   : > { %2492 = vmatpush.bf16.msra.mxu3 %v7402_v21  ;;  %v7434_v21 = vld [vmem:[%s9878_s8 + $0x230] sm:$0xff] }
 0x993   : > { %v8739_v28 = vadd.f32 %v2178_v23, %v2165_v25  ;;  %v7401_v23 = vld [vmem:[%s9878_s8 + $0x188] sm:$0xff] }
 0x995   : > { %v2188_v7 = vmul.f32 %v7795_v27, %v8739_v28 }
 0x996   : > { %2493 = vmatpush.bf16.msra.mxu3 %v7401_v23  ;;  %v7432_v23 = vld [vmem:[%s9878_s8 + $0x220] sm:$0xff] }
 0x997   : > { %v2195_v31 = vadd.f32 %v7796_v29, %v2188_v7 }
 0x998   : > { %v2166_v34 = vpop.f32.mrf.mxu1 }
 0x999   : > { %v2197_v35 = vmax.f32 %v2195_v31, 0.0  ;;  %v2167_v36 = vadd.f32 %v2166_v34, %v2077_v33 }
 0x99a   : > { %2494 = vmatpush.bf16.msra.mxu3 %v7400_v32  ;;  %v7429_v32 = vld [vmem:[%s9878_s8 + $0x208] sm:$0xff] }
 0x99b   : > { %2226 = vst.msk [vmem:[#allocation2 + $0x1] sm:$0xff] %vm634_vm1, %v2197_v35  ;;  %v8752_v39 = vadd.f32 %v2180_v38, %v2167_v36 }
 0x99d   : > { %v2189_v42 = vmul.f32 %v7795_v27, %v8752_v39 }
 0x99f   : > { %v2196_v43 = vadd.f32 %v7796_v29, %v2189_v42 }
 0x9a1   : > { %v2198_v45 = vmax.f32 %v2196_v43, 0.0  ;;  %v7423_v43 = vld [vmem:[%s9920_s5 + $0x238] sm:$0xff] }
 0x9a2   : > { %v2228_v47 = vld [vmem:[#allocation2] sm:$0xff]  ;;  %2671 = vmatpush.bf16.msra.mxu0 %v7423_v43  ;;  %v7427_v43 = vld [vmem:[%s9878_s8 + $0x1f8] sm:$0xff] }
 0x9a3   : > { %2227 = vst.msk [vmem:[#allocation2 + $0x9] sm:$0xff] %vm634_vm1, %v2198_v45  ;;  %v2230_v48 = vld [vmem:[#allocation2 + $0x1] sm:$0xff] }
 0x9a4   : > { %2390 = vst.msk [vmem:[#allocation2] sm:$0x1] %vm631_vm0, %v8013_v1  ;;  %v7421_v45 = vld [vmem:[%s9920_s5 + $0x228] sm:$0xff] }
 0x9a6   : > { %2672 = vmatpush.bf16.msra.mxu0 %v7422_v44 }
 0x9aa   : > { %v2232_v49 = vld [vmem:[#allocation2 + $0x2] sm:$0xff]  ;;  %v2233_v51 = vld [vmem:[#allocation2 + $0xa] sm:$0xff]  ;;  %2673 = vmatpush.bf16.msra.mxu0 %v7421_v45 }
 0x9ab   : > { %v2231_v52 = vld [vmem:[#allocation2 + $0x9] sm:$0xff]  ;;  %v2245_v53 = vpack.c.bf16 %v2233_v51, %v2232_v49  ;;  %2391 = vst.msk [vmem:[#allocation2 + $0x11] sm:$0x1] %vm631_vm0, %v8013_v1 }
 0x9ac   : > { %v7698_v54 = vpack.i.bf16 %v2231_v52, %v2230_v48  ;;  %v2229_v58 = vld [vmem:[#allocation2 + $0x8] sm:$0xff]  ;;  %v7418_v48 = vld [vmem:[%s9920_s5 + $0x210] sm:$0xff] }
 0x9ad   : > { %6066 = vmatmul.msk.bf16.vlgmr.msra.gmra.mxu2 %vm634_vm1, %v2245_v53  ;;  %v7799_v53 = vld [vmem:[%s9922_s3 + $0x5] ss:$0 sm:$0xff] }
 0x9ae   : > { %7699 = vrot.lane.b32.xlu0 %v7698_v54, %s8014_s20  ;;  %2674 = vmatpush.bf16.msra.mxu0 %v7420_v46  ;;  %v7426_v46 = vld [vmem:[%s9878_s8 + $0x1f0] sm:$0xff] }
 0xa20   : > { %v7700_v17 = vpop.permute.xlu0 %7699 }
 0xa21   : > { %v7702_v56 = vunpack.i.h.bf16 %v7700_v17  ;;  %v7701_v57 = vunpack.i.l.bf16 %v7700_v17  ;;  %v7417_v17 = vld [vmem:[%s9920_s5 + $0x208] sm:$0xff] }
 0xa23   : > { %v2242_v59 = vsel %vm634_vm1, %v2228_v47, %v7701_v57  ;;  %v2243_v60 = vsel %vm634_vm1, %v2229_v58, %v7702_v56  ;;  %v7419_v47 = vld [vmem:[%s9920_s5 + $0x218] sm:$0xff] }
 0xa24   : > { %v2244_v62 = vpack.c.bf16 %v2243_v60, %v2242_v59  ;;  %2653 = vmatpush.bf16.msrb.mxu2 %v7419_v47 }
 0xa26   : > { %2329 = vmatmul.bf16.vlgmr.msrb.gmra.mxu0 %v2244_v62 }
 0xa28   : > { %2654 = vmatpush.bf16.msrb.mxu2 %v7418_v48  ;;  %v7425_v48 = vld [vmem:[%s9878_s8 + $0x1e8] sm:$0xff] }
 0xa2c   : > { %2655 = vmatpush.bf16.msrb.mxu2 %v7417_v17 }
 0xa30   : > { %v2344_v5 = vpop.f32.mrf.mxu2 }
 0xa38   : > { %v2346_v14 = vpop.f32.mrf.mxu2 }
 0xaa3   : > { %v2330_v6 = vpop.f32.mrf.mxu0 }
 0xaa4   : > { %v2345_v8 = vadd.f32 %v2344_v5, %v2330_v6 }
 0xaa6   : > { %v2354_v11 = vmul.f32 %v7797_v26, %v2345_v8 }
 0xaa8   : > { %v2361_v50 = vadd.f32 %v7798_v9, %v2354_v11 }
 0xaaa   : > { %v2363_v13 = vmax.f32 %v2361_v50, 0.0  ;;  %v7412_v50 = vld [vmem:[%s9920_s5 + $0x1e0] sm:$0xff] }
 0xaab   : > { %v2332_v15 = vpop.f32.mrf.mxu0 }
 0xaac   : > { %2392 = vst.msk [vmem:[#allocation2 + $0x1] sm:$0xff] %vm634_vm1, %v2363_v13  ;;  %v2347_v16 = vadd.f32 %v2346_v14, %v2332_v15 }
 0xaae   : > { %v2355_v61 = vmul.f32 %v7797_v26, %v2347_v16 }
 0xab0   : > { %v2362_v20 = vadd.f32 %v7798_v9, %v2355_v61 }
 0xab2   : > { %v2364_v22 = vmax.f32 %v2362_v20, 0.0  ;;  %v7435_v20 = vld [vmem:[%s9878_s8 + $0x238] sm:$0xff] }
 0xab3   : > { %v2394_v24 = vld [vmem:[#allocation2] sm:$0xff]  ;;  %2837 = vmatpush.bf16.msrb.mxu3 %v7435_v20 }
 0xab4   : > { %2393 = vst.msk [vmem:[#allocation2 + $0x9] sm:$0xff] %vm634_vm1, %v2364_v22  ;;  %v2396_v25 = vld [vmem:[#allocation2 + $0x1] sm:$0xff] }
 0xab5   : > { %2556 = vst.msk [vmem:[#allocation2] sm:$0x1] %vm631_vm0, %v8013_v1  ;;  %v7433_v22 = vld [vmem:[%s9878_s8 + $0x228] sm:$0xff]  ;;  %v7803_v20 = vld [vmem:[%s9922_s3 + $0x6] ss:$0 sm:$0xff] }
 0xab7   : > { %2838 = vmatpush.bf16.msrb.mxu3 %v7434_v21 }
 0xabb   : > { %v2398_v27 = vld [vmem:[#allocation2 + $0x2] sm:$0xff]  ;;  %v2399_v29 = vld [vmem:[#allocation2 + $0xa] sm:$0xff]  ;;  %2839 = vmatpush.bf16.msrb.mxu3 %v7433_v22 }
 0xabc   : > { %v2397_v30 = vld [vmem:[#allocation2 + $0x9] sm:$0xff]  ;;  %v2411_v7 = vpack.c.bf16 %v2399_v29, %v2398_v27  ;;  %2557 = vst.msk [vmem:[#allocation2 + $0x11] sm:$0x1] %vm631_vm0, %v8013_v1  ;;  %v7801_v29 = vld [vmem:[%s9924_s6 + $0x5] ss:$0 sm:$0xff] }
 0xabd   : > { %v7703_v31 = vpack.i.bf16 %v2397_v30, %v2396_v25  ;;  %v2395_v36 = vld [vmem:[#allocation2 + $0x8] sm:$0xff]  ;;  %v7430_v25 = vld [vmem:[%s9878_s8 + $0x210] sm:$0xff]  ;;  %v7804_v22 = vld [vmem:[%s9923_s4 + $0x6] ss:$0 sm:$0xff] }
 0xabe   : > { %6141 = vmatmul.msk.bf16.vlgmr.msrb.gmra.mxu1 %vm634_vm1, %v2411_v7 }
 0xabf   : > { %7704 = vrot.lane.b32.xlu1 %v7703_v31, %s8014_s20  ;;  %2840 = vmatpush.bf16.msrb.mxu3 %v7432_v23  ;;  %v7802_v31 = vld [vmem:[%s9925_s7 + $0x5] ss:$0 sm:$0xff] }
 0xb31   : > { %v7705_v33 = vpop.permute.xlu1 %7704 }
 0xb32   : > { %v7707_v34 = vunpack.i.h.bf16 %v7705_v33  ;;  %v7706_v35 = vunpack.i.l.bf16 %v7705_v33 }
 0xb34   : > { %v2408_v38 = vsel %vm634_vm1, %v2394_v24, %v7706_v35  ;;  %v2409_v41 = vsel %vm634_vm1, %v2395_v36, %v7707_v34  ;;  %v7431_v24 = vld [vmem:[%s9878_s8 + $0x218] sm:$0xff]  ;;  %v7428_v35 = vld [vmem:[%s9878_s8 + $0x200] sm:$0xff] }
 0xb35   : > { %v2410_v42 = vpack.c.bf16 %v2409_v41, %v2408_v38  ;;  %2819 = vmatpush.bf16.msra.mxu1 %v7431_v24  ;;  %v7443_v24 = vld [vmem:[%s9920_s5 + $0x278] sm:$0xff] }
 0xb37   : > { %2495 = vmatmul.bf16.vlgmr.msra.gmra.mxu3 %v2410_v42 }
 0xb39   : > { %2820 = vmatpush.bf16.msra.mxu1 %v7430_v25 }
 0xb3b   : > { %v2510_v49 = vpop.f32.mrf.mxu1 }
 0xb3d   : > { %2821 = vmatpush.bf16.msra.mxu1 %v7429_v32  ;;  %v7441_v32 = vld [vmem:[%s9920_s5 + $0x268] sm:$0xff] }
 0xb41   : > { %2822 = vmatpush.bf16.msra.mxu1 %v7428_v35 }
 0xb43   : > { %v2512_v62 = vpop.f32.mrf.mxu1 }
 0xb45   : > { %2823 = vmatpush.bf16.msra.mxu1 %v7427_v43 }
 0xb49   : > { %2824 = vmatpush.bf16.msra.mxu1 %v7426_v46  ;;  %v7439_v46 = vld [vmem:[%s9920_s5 + $0x258] sm:$0xff] }
 0xb4d   : > { %2825 = vmatpush.bf16.msra.mxu1 %v7425_v48 }
 0xbba   : > { %v2496_v51 = vpop.f32.mrf.mxu3 }
 0xbbb   : > { %v2497_v52 = vadd.f32 %v2496_v51, %v8739_v28  ;;  %v7416_v28 = vld [vmem:[%s9920_s5 + $0x200] sm:$0xff] }
 0xbbc   : > { %2656 = vmatpush.bf16.msrb.mxu2 %v7416_v28 }
 0xbbd   : > { %v8850_v54 = vadd.f32 %v2510_v49, %v2497_v52 }
 0xbbf   : > { %v2520_v56 = vmul.f32 %v7799_v53, %v8850_v54 }
 0xbc0   : > { %2657 = vmatpush.bf16.msrb.mxu2 %v7415_v40 }
 0xbc1   : > { %v2527_v57 = vadd.f32 %v7800_v55, %v2520_v56 }
 0xbc2   : > { %v2498_v58 = vpop.f32.mrf.mxu3 }
 0xbc3   : > { %v2529_v59 = vmax.f32 %v2527_v57, 0.0  ;;  %v2499_v60 = vadd.f32 %v2498_v58, %v8752_v39  ;;  %v7413_v39 = vld [vmem:[%s9920_s5 + $0x1e8] sm:$0xff]  ;;  %v7424_v57 = vld [vmem:[%s9878_s8 + $0x1e0] sm:$0xff] }
 0xbc4   : > { %2658 = vmatpush.bf16.msrb.mxu2 %v7414_v3  ;;  %2826 = vmatpush.bf16.msra.mxu1 %v7424_v57  ;;  %v6298_v3 = vld [vmem:[%s9880_s10 + $0x70] sm:$0xff] }
 0xbc5   : > { %2558 = vst.msk [vmem:[#allocation2 + $0x1] sm:$0xff] %vm634_vm1, %v2529_v59  ;;  %v8864_v63 = vadd.f32 %v2512_v62, %v2499_v60 }
 0xbc7   : > { %v2521_v0 = vmul.f32 %v7799_v53, %v8864_v63 }
 0xbc8   : > { %2659 = vmatpush.bf16.msrb.mxu2 %v7413_v39  ;;  %v7447_v39 = vld [vmem:[%s9920_s5 + $0x298] sm:$0xff] }
 0xbc9   : > { %v2528_v2 = vadd.f32 %v7800_v55, %v2521_v0  ;;  %3047 = vmatpush.bf16.msra.mxu3 %v7447_v39 }
 0xbcb   : > { %v2530_v4 = vmax.f32 %v2528_v2, 0.0  ;;  %v6299_v2 = vld [vmem:[%s9880_s10 + $0x78] sm:$0xff] }
 0xbcc   : > { %v2560_v5 = vld [vmem:[#allocation2] sm:$0xff]  ;;  %2660 = vmatpush.bf16.msrb.mxu2 %v7412_v50  ;;  %2879 = vmatpush.msrb.mxu0 %v6299_v2  ;;  %v7463_v50 = vld [vmem:[%s9879_s9 + $0x38] sm:$0xff] }
 0xbcd   : > { %2559 = vst.msk [vmem:[#allocation2 + $0x9] sm:$0xff] %vm634_vm1, %v2530_v4  ;;  %v2562_v26 = vld [vmem:[#allocation2 + $0x1] sm:$0xff] }
 0xbce   : > { %2722 = vst.msk [vmem:[#allocation2] sm:$0x1] %vm631_vm0, %v8013_v1  ;;  %2880 = vmatpush.msrb.mxu0 %v6298_v3  ;;  %v6297_v4 = vld [vmem:[%s9880_s10 + $0x68] sm:$0xff] }
 0xbd0   : > { %2881 = vmatpush.msrb.mxu0 %v6297_v4  ;;  %3029 = vmatpush.bf16.msra.mxu2 %v7443_v24 }
 0xbd4   : > { %v2564_v6 = vld [vmem:[#allocation2 + $0x2] sm:$0xff]  ;;  %v2565_v8 = vld [vmem:[#allocation2 + $0xa] sm:$0xff] }
 0xbd5   : > { %v2563_v9 = vld [vmem:[#allocation2 + $0x9] sm:$0xff]  ;;  %v2577_v10 = vpack.c.bf16 %v2565_v8, %v2564_v6  ;;  %2723 = vst.msk [vmem:[#allocation2 + $0x11] sm:$0x1] %vm631_vm0, %v8013_v1 }
 0xbd6   : > { %v7708_v11 = vpack.i.bf16 %v2563_v9, %v2562_v26  ;;  %v2561_v15 = vld [vmem:[#allocation2 + $0x8] sm:$0xff]  ;;  %v6295_v26 = vld [vmem:[%s9880_s10 + $0x58] sm:$0xff]  ;;  %v7446_v6 = vld [vmem:[%s9920_s5 + $0x290] sm:$0xff] }
 0xbd7   : > { %6216 = vmatmul.msk.bf16.vlgmr.msra.gmra.mxu0 %vm634_vm1, %v2577_v10  ;;  %v6294_v8 = vld [vmem:[%s9880_s10 + $0x50] sm:$0xff]  ;;  %3048 = vmatpush.bf16.msra.mxu3 %v7446_v6  ;;  %v6293_v9 = vld [vmem:[%s9880_s10 + $0x48] sm:$0xff] }
 0xbd8   : > { %7709 = vrot.lane.b32.xlu2 %v7708_v11, %s8014_s20  ;;  %v7445_v10 = vld [vmem:[%s9920_s5 + $0x288] sm:$0xff]  ;;  %v6292_v11 = vld [vmem:[%s9880_s10 + $0x40] sm:$0xff] }
 0xbdb   : > { %3049 = vmatpush.bf16.msra.mxu3 %v7445_v10  ;;  %v7457_v10 = vld [vmem:[%s9878_s8 + $0x288] sm:$0xff] }
 0xc32   : > { %v7710_v12 = vpop.permute.xlu2 %7709 }
 0xc33   : > { %v7712_v13 = vunpack.i.h.bf16 %v7710_v12  ;;  %v7711_v14 = vunpack.i.l.bf16 %v7710_v12  ;;  %v7444_v12 = vld [vmem:[%s9920_s5 + $0x280] sm:$0xff] }
 0xc34   : > { %3050 = vmatpush.bf16.msra.mxu3 %v7444_v12  ;;  %v7454_v12 = vld [vmem:[%s9878_s8 + $0x270] sm:$0xff] }
 0xc35   : > { %v2574_v16 = vsel %vm634_vm1, %v2560_v5, %v7711_v14  ;;  %v2575_v19 = vsel %vm634_vm1, %v2561_v15, %v7712_v13  ;;  %v6296_v5 = vld [vmem:[%s9880_s10 + $0x60] sm:$0xff]  ;;  %v7462_v13 = vld [vmem:[%s9879_s9 + $0x30] sm:$0xff]  ;;  %v7461_v14 = vld [vmem:[%s9879_s9 + $0x28] sm:$0xff] }
 0xc36   : > { %v2576_v61 = vpack.c.bf16 %v2575_v19, %v2574_v16  ;;  %2882 = vmatpush.msrb.mxu0 %v6296_v5  ;;  %v7460_v19 = vld [vmem:[%s9879_s9 + $0x20] sm:$0xff] }
 0xc37   : > { %v6300_v5 = vld [vmem:[%s9881_s11 + $0x1] sm:$0x1] }
 0xc38   : > { %2661 = vmatmul.bf16.vlgmr.msrb.gmra.mxu2 %v2576_v61  ;;  %2883 = vmatpush.msrb.mxu0 %v6295_v26 }
 0xc3a   : > { %2884 = vmatpush.msrb.mxu0 %v6294_v8  ;;  %v7459_v8 = vld [vmem:[%s9878_s8 + $0x298] sm:$0xff] }
 0xc3c   : > { %2885 = vmatpush.msrb.mxu0 %v6293_v9  ;;  %v7458_v9 = vld [vmem:[%s9878_s8 + $0x290] sm:$0xff] }
 0xc3e   : > { %2886 = vmatpush.msrb.mxu0 %v6292_v11  ;;  %v7456_v11 = vld [vmem:[%s9878_s8 + $0x280] sm:$0xff] }
 0xc40   : > { %3161 = vmatpush.bf16.msra.mxu0 %v7463_v50  ;;  %v7455_v50 = vld [vmem:[%s9878_s8 + $0x278] sm:$0xff] }
 0xc41   : > { %3246 = vmatpush.bf16.msrb.mxu1 %v7455_v50 }
 0xc44   : > { %3162 = vmatpush.bf16.msra.mxu0 %v7462_v13 }
 0xc45   : > { %3247 = vmatpush.bf16.msrb.mxu1 %v7454_v12 }
 0xc48   : > { %3163 = vmatpush.bf16.msra.mxu0 %v7461_v14  ;;  %v7805_v14 = vld [vmem:[%s9924_s6 + $0x6] ss:$0 sm:$0xff] }
 0xc4c   : > { %3164 = vmatpush.bf16.msra.mxu0 %v7460_v19  ;;  %v7806_v19 = vld [vmem:[%s9925_s7 + $0x6] ss:$0 sm:$0xff] }
 0xc54   : > { %v2676_v27 = vpop.f32.mrf.mxu0 }
 0xc5c   : > { %v2678_v38 = vpop.f32.mrf.mxu0 }
 0xcbb   : > { %v2662_v30 = vpop.f32.mrf.mxu2 }
 0xcbc   : > { %v2677_v7 = vadd.f32 %v2676_v27, %v2662_v30 }
 0xcbe   : > { %v2686_v33 = vmul.f32 %v7801_v29, %v2677_v7 }
 0xcc0   : > { %v2693_v34 = vadd.f32 %v7802_v31, %v2686_v33 }
 0xcc2   : > { %v2695_v36 = vmax.f32 %v2693_v34, 0.0 }
 0xcc3   : > { %v2664_v41 = vpop.f32.mrf.mxu2 }
 0xcc4   : > { %2724 = vst.msk [vmem:[#allocation2 + $0x1] sm:$0xff] %vm634_vm1, %v2695_v36  ;;  %v2679_v42 = vadd.f32 %v2678_v38, %v2664_v41 }
 0xcc6   : > { %v2687_v44 = vmul.f32 %v7801_v29, %v2679_v42 }
 0xcc8   : > { %v2694_v45 = vadd.f32 %v7802_v31, %v2687_v44 }
 0xcca   : > { %v2696_v47 = vmax.f32 %v2694_v45, 0.0 }
 0xccb   : > { %v2726_v49 = vld [vmem:[#allocation2] sm:$0xff] }
 0xccc   : > { %2725 = vst.msk [vmem:[#allocation2 + $0x9] sm:$0xff] %vm634_vm1, %v2696_v47  ;;  %v2728_v51 = vld [vmem:[#allocation2 + $0x1] sm:$0xff] }
 0xccd   : > { %2932 = vst.msk [vmem:[#allocation2] sm:$0x1] %vm631_vm0, %v8013_v1 }
 0xcd3   : > { %v2730_v52 = vld [vmem:[#allocation2 + $0x2] sm:$0xff]  ;;  %v2731_v53 = vld [vmem:[#allocation2 + $0xa] sm:$0xff] }
 0xcd4   : > { %v2729_v55 = vld [vmem:[#allocation2 + $0x9] sm:$0xff]  ;;  %v2743_v17 = vpack.c.bf16 %v2731_v53, %v2730_v52  ;;  %2933 = vst.msk [vmem:[#allocation2 + $0x11] sm:$0x1] %vm631_vm0, %v8013_v1 }
 0xcd5   : > { %v7713_v56 = vpack.i.bf16 %v2729_v55, %v2728_v51  ;;  %v2727_v60 = vld [vmem:[#allocation2 + $0x8] sm:$0xff] }
 0xcd6   : > { %6291 = vmatmul.msk.bf16.vlgmr.msrb.gmra.mxu3 %vm634_vm1, %v2743_v17 }
 0xcd7   : > { %7714 = vrot.lane.b32.xlu0 %v7713_v56, %s8014_s20  ;;  %3264 = vmatpush.bf16.msrb.mxu3 %v7459_v8 }
 0xcdb   : > { %3265 = vmatpush.bf16.msrb.mxu3 %v7458_v9 }
 0xcdf   : > { %3266 = vmatpush.bf16.msrb.mxu3 %v7457_v10 }
 0xce3   : > { %3267 = vmatpush.bf16.msrb.mxu3 %v7456_v11  ;;  %v7467_v11 = vld [vmem:[%s9920_s5 + $0x2b8] sm:$0xff] }
 0xd49   : > { %v7715_v28 = vpop.permute.xlu0 %7714 }
 0xd4a   : > { %v7717_v58 = vunpack.i.h.bf16 %v7715_v28  ;;  %v7716_v59 = vunpack.i.l.bf16 %v7715_v28 }
 0xd4c   : > { %v2740_v62 = vsel %vm634_vm1, %v2726_v49, %v7716_v59  ;;  %v2741_v40 = vsel %vm634_vm1, %v2727_v60, %v7717_v58  ;;  %v7438_v49 = vld [vmem:[%s9920_s5 + $0x250] sm:$0xff]  ;;  %v7437_v58 = vld [vmem:[%s9920_s5 + $0x248] sm:$0xff]  ;;  %v7436_v60 = vld [vmem:[%s9920_s5 + $0x240] sm:$0xff] }
 0xd4d   : > { %v2742_v0 = vpack.c.bf16 %v2741_v40, %v2740_v62 }
 0xd4f   : > { %2827 = vmatmul.bf16.vlgmr.msra.gmra.mxu1 %v2742_v0 }
 0xd59   : > { %v2842_v15 = vpop.f32.mrf.mxu3 }
 0xd61   : > { %v2844_v7 = vpop.f32.mrf.mxu3 }
 0xdcc   : > { %v2828_v16 = vpop.f32.mrf.mxu1 }
 0xdcd   : > { %v2829_v61 = vadd.f32 %v2828_v16, %v8850_v54  ;;  %v7442_v54 = vld [vmem:[%s9920_s5 + $0x270] sm:$0xff] }
 0xdce   : > { %3030 = vmatpush.bf16.msra.mxu2 %v7442_v54  ;;  %v7451_v54 = vld [vmem:[%s9878_s8 + $0x258] sm:$0xff] }
 0xdcf   : > { %v2843_v21 = vadd.f32 %v2842_v15, %v2829_v61  ;;  %v7453_v61 = vld [vmem:[%s9878_s8 + $0x268] sm:$0xff] }
 0xdd0   : > { %3248 = vmatpush.bf16.msrb.mxu1 %v7453_v61 }
 0xdd1   : > { %v2896_v23 = vmul.f32 %v7803_v20, %v2843_v21  ;;  %v2847_v33 = vsel %vm634_vm1, %v2843_v21, 0.0 }
 0xdd2   : > { %3031 = vmatpush.bf16.msra.mxu2 %v7441_v32  ;;  %v7449_v32 = vld [vmem:[%s9878_s8 + $0x248] sm:$0xff] }
 0xdd3   : > { %v2903_v25 = vadd.f32 %v7804_v22, %v2896_v23 }
 0xdd4   : > { %v2830_v27 = vpop.f32.mrf.mxu1 }
 0xdd5   : > { %v2905_v29 = vmax.f32 %v2903_v25, 0.0  ;;  %v2831_v30 = vadd.f32 %v2830_v27, %v8864_v63  ;;  %v7440_v63 = vld [vmem:[%s9920_s5 + $0x260] sm:$0xff] }
 0xdd6   : > { %3032 = vmatpush.bf16.msra.mxu2 %v7440_v63 }
 0xdd7   : > { %2934 = vst.msk [vmem:[#allocation2 + $0x1] sm:$0xff] %vm634_vm1, %v2905_v29  ;;  %v2845_v31 = vadd.f32 %v2844_v7, %v2831_v30  ;;  %v7450_v7 = vld [vmem:[%s9878_s8 + $0x250] sm:$0xff] }
 0xdd9   : > { %v2848_v34 = vsel %vm634_vm1, %v2845_v31, 0.0  ;;  %v2897_v35 = vmul.f32 %v7803_v20, %v2845_v31  ;;  %v3120_v59 = vpack.c.bf16 %v2845_v31, %v2843_v21 }
 0xdda   : > { %v2849_v36 = vadd.f32 %v2848_v34, %v2847_v33  ;;  %3033 = vmatpush.bf16.msra.mxu2 %v7439_v46 }
 0xddb   : > { %v2904_v38 = vadd.f32 %v7804_v22, %v2897_v35  ;;  %v7452_v22 = vld [vmem:[%s9878_s8 + $0x260] sm:$0xff] }
 0xddc   : > { %v2850_v41 = vrot.slane %v2849_v36, 4  ;;  %3249 = vmatpush.bf16.msrb.mxu1 %v7452_v22 }
 0xddd   : > { %v2906_v42 = vmax.f32 %v2904_v38, 0.0 }
 0xdde   : > { %v2851_v43 = vadd.f32 %v2850_v41, %v2849_v36  ;;  %v2936_v44 = vld [vmem:[#allocation2] sm:$0xff]  ;;  %3034 = vmatpush.bf16.msra.mxu2 %v7438_v49 }
 0xddf   : > { %2935 = vst.msk [vmem:[#allocation2 + $0x9] sm:$0xff] %vm634_vm1, %v2906_v42  ;;  %v2938_v51 = vld [vmem:[#allocation2 + $0x1] sm:$0xff] }
 0xde0   : > { %v2852_v45 = vrot.slane %v2851_v43, 2  ;;  %3098 = vst.msk [vmem:[#allocation2] sm:$0x1] %vm631_vm0, %v8013_v1  ;;  %3250 = vmatpush.bf16.msrb.mxu1 %v7451_v54  ;;  %v7448_v42 = vld [vmem:[%s9878_s8 + $0x240] sm:$0xff] }
 0xde2   : > { %v2853_v47 = vadd.f32 %v2852_v45, %v2851_v43  ;;  %3035 = vmatpush.bf16.msra.mxu2 %v7437_v58 }
 0xde4   : > { %v2854_v48 = vrot.slane %v2853_v47, 1  ;;  %3251 = vmatpush.bf16.msrb.mxu1 %v7450_v7 }
 0xde6   : > { %v2940_v52 = vld [vmem:[#allocation2 + $0x2] sm:$0xff]  ;;  %v2941_v53 = vld [vmem:[#allocation2 + $0xa] sm:$0xff]  ;;  %v2855_v17 = vadd.f32 %v2854_v48, %v2853_v47  ;;  %3036 = vmatpush.bf16.msra.mxu2 %v7436_v60 }
 0xde7   : > { %v2939_v55 = vld [vmem:[#allocation2 + $0x9] sm:$0xff]  ;;  %v2953_v56 = vpack.c.bf16 %v2941_v53, %v2940_v52  ;;  %3099 = vst.msk [vmem:[#allocation2 + $0x11] sm:$0x1] %vm631_vm0, %v8013_v1  ;;  %v7807_v60 = vld [vmem:[%s9922_s3 + $0x7] ss:$0 sm:$0xff] }
 0xde8   : > { %v7718_v57 = vpack.i.bf16 %v2939_v55, %v2938_v51  ;;  %v2856_v28 = vmul.f32 %v2855_v17, %v8636_v18  ;;  %v2937_v2 = vld [vmem:[#allocation2 + $0x8] sm:$0xff]  ;;  %3252 = vmatpush.bf16.msrb.mxu1 %v7449_v32  ;;  %v7475_v51 = vld [vmem:[%s9920_s5 + $0x2f8] sm:$0xff]  ;;  %v7474_v52 = vld [vmem:[%s9920_s5 + $0x2f0] sm:$0xff] }
 0xde9   : > { %6376 = vmatmul.msk.bf16.vlgmr.msra.gmra.mxu3 %vm634_vm1, %v2953_v56  ;;  %v7473_v53 = vld [vmem:[%s9920_s5 + $0x2e8] sm:$0xff]  ;;  %v7472_v55 = vld [vmem:[%s9920_s5 + $0x2e0] sm:$0xff]  ;;  %v7471_v17 = vld [vmem:[%s9920_s5 + $0x2d8] sm:$0xff] }
 0xdea   : > { %7719 = vrot.lane.b32.xlu1 %v7718_v57, %s8014_s20  ;;  %6301 = vmatmul.msk.f32.vlgmr.msrb.gmra.mxu0 %vm634_vm1, %v2856_v28  ;;  %v7470_v57 = vld [vmem:[%s9920_s5 + $0x2d0] sm:$0xff]  ;;  %v7487_v32 = vld [vmem:[%s9878_s8 + $0x2f8] sm:$0xff] }
 0xdeb   : > { %3430 = vmatpush.bf16.msrb.mxu2 %v7475_v51  ;;  %3412 = vmatpush.bf16.msrb.mxu0 %v7471_v17 }
 0xdec   : > { %3253 = vmatpush.bf16.msrb.mxu1 %v7448_v42 }
 0xdef   : > { %3431 = vmatpush.bf16.msrb.mxu2 %v7474_v52  ;;  %3413 = vmatpush.bf16.msrb.mxu0 %v7470_v57  ;;  %v7478_v57 = vld [vmem:[%s9878_s8 + $0x2b0] sm:$0xff] }
 0xdf0   : > { %3596 = vmatpush.bf16.msra.mxu1 %v7487_v32 }
 0xdf2   : > { %6427 = vmatmul.msk.bf16.vlgmr.msra.gmra.mxu0 %vm634_vm1, %v3120_v59 }
 0xdf3   : > { %3432 = vmatpush.bf16.msrb.mxu2 %v7473_v53 }
 0xdf7   : > { %3433 = vmatpush.bf16.msrb.mxu2 %v7472_v55  ;;  %v7479_v55 = vld [vmem:[%s9878_s8 + $0x2b8] sm:$0xff] }
 0xe5c   : > { %v7720_v62 = vpop.permute.xlu1 %7719 }
 0xe5d   : > { %v7722_v40 = vunpack.i.h.bf16 %v7720_v62  ;;  %v7721_v0 = vunpack.i.l.bf16 %v7720_v62 }
 0xe5f   : > { %v2950_v3 = vsel %vm634_vm1, %v2936_v44, %v7721_v0  ;;  %v2951_v4 = vsel %vm634_vm1, %v2937_v2, %v7722_v40  ;;  %v7808_v40 = vld [vmem:[%s9923_s4 + $0x7] ss:$0 sm:$0xff]  ;;  %v7469_v0 = vld [vmem:[%s9920_s5 + $0x2c8] sm:$0xff] }
 0xe60   : > { %v2952_v39 = vpack.c.bf16 %v2951_v4, %v2950_v3  ;;  %3414 = vmatpush.bf16.msrb.mxu0 %v7469_v0  ;;  %v7468_v4 = vld [vmem:[%s9920_s5 + $0x2c0] sm:$0xff] }
 0xe62   : > { %3037 = vmatmul.bf16.vlgmr.msra.gmra.mxu2 %v2952_v39 }
 0xe64   : > { %3415 = vmatpush.bf16.msrb.mxu0 %v7468_v4 }
 0xe67   : > { %v2888_v26 = vpop.f32.mrf.mxu0 }
 0xe68   : > { %v9038_v6 = vadd.f32 %v6300_v5, %v2888_v26  ;;  %3416 = vmatpush.bf16.msrb.mxu0 %v7467_v11 }
 0xe6a   : > { %5125 = vst.msk [vmem:[%s9899_s24] sm:$0x1] %vm5123_vm3, %v9038_v6  ;;  %s8016_s24 = smov 16  }
 0xe6c   : > { %v3052_v13 = vpop.f32.mrf.mxu3 }
 0xe6f   : > { %v3166_v56 = vpop.f32.mrf.mxu0 }
 0xe74   : > { %v3054_v24 = vpop.f32.mrf.mxu3 }
 0xe77   : > { %v3168_v39 = vpop.f32.mrf.mxu0 }
 0xee5   : > { %v3038_v15 = vpop.f32.mrf.mxu2 }
 0xee6   : > { %v3053_v16 = vadd.f32 %v3052_v13, %v3038_v15  ;;  %v7466_v13 = vld [vmem:[%s9920_s5 + $0x2b0] sm:$0xff]  ;;  %v7465_v15 = vld [vmem:[%s9920_s5 + $0x2a8] sm:$0xff] }
 0xee7   : > { %3417 = vmatpush.bf16.msrb.mxu0 %v7466_v13  ;;  %v7499_v13 = vld [vmem:[%s9920_s5 + $0x358] sm:$0xff] }
 0xee8   : > { %v3062_v20 = vmul.f32 %v7805_v14, %v3053_v16 }
 0xeea   : > { %v3069_v21 = vadd.f32 %v7806_v19, %v3062_v20 }
 0xeeb   : > { %3418 = vmatpush.bf16.msrb.mxu0 %v7465_v15  ;;  %v7497_v15 = vld [vmem:[%s9920_s5 + $0x348] sm:$0xff] }
 0xeec   : > { %v3071_v23 = vmax.f32 %v3069_v21, 0.0 }
 0xeed   : > { %v3040_v25 = vpop.f32.mrf.mxu2 }
 0xeee   : > { %3100 = vst.msk [vmem:[#allocation2 + $0x1] sm:$0xff] %vm634_vm1, %v3071_v23  ;;  %v3055_v27 = vadd.f32 %v3054_v24, %v3040_v25  ;;  %v7464_v24 = vld [vmem:[%s9920_s5 + $0x2a0] sm:$0xff] }
 0xeef   : > { %3419 = vmatpush.bf16.msrb.mxu0 %v7464_v24 }
 0xef0   : > { %v3063_v29 = vmul.f32 %v7805_v14, %v3055_v27 }
 0xef2   : > { %v3070_v30 = vadd.f32 %v7806_v19, %v3063_v29 }
 0xef3   : > { %3762 = vmatpush.bf16.msra.mxu0 %v7499_v13 }
 0xef4   : > { %v3072_v31 = vmax.f32 %v3070_v30, 0.0 }
 0xef5   : > { %v3102_v33 = vld [vmem:[#allocation2] sm:$0xff] }
 0xef6   : > { %3101 = vst.msk [vmem:[#allocation2 + $0x9] sm:$0xff] %vm634_vm1, %v3072_v31  ;;  %v3104_v34 = vld [vmem:[#allocation2 + $0x1] sm:$0xff] }
 0xef7   : > { %3315 = vst.msk [vmem:[#allocation2] sm:$0x1] %vm631_vm0, %v8013_v1 }
 0xefd   : > { %v3106_v35 = vld [vmem:[#allocation2 + $0x2] sm:$0xff]  ;;  %v3107_v36 = vld [vmem:[#allocation2 + $0xa] sm:$0xff] }
 0xefe   : > { %v3105_v38 = vld [vmem:[#allocation2 + $0x9] sm:$0xff]  ;;  %v3119_v41 = vpack.c.bf16 %v3107_v36, %v3106_v35  ;;  %3316 = vst.msk [vmem:[#allocation2 + $0x11] sm:$0x1] %vm631_vm0, %v8013_v1  ;;  %v7484_v35 = vld [vmem:[%s9878_s8 + $0x2e0] sm:$0xff]  ;;  %v7483_v36 = vld [vmem:[%s9878_s8 + $0x2d8] sm:$0xff] }
 0xeff   : > { %v7723_v63 = vpack.i.bf16 %v3105_v38, %v3104_v34  ;;  %v3103_v46 = vld [vmem:[#allocation2 + $0x8] sm:$0xff]  ;;  %3578 = vmatpush.bf16.msra.mxu3 %v7483_v36  ;;  %v7482_v38 = vld [vmem:[%s9878_s8 + $0x2d0] sm:$0xff] }
 0xf00   : > { %6476 = vmatmul.msk.bf16.vlgmr.msrb.gmra.mxu3 %vm634_vm1, %v3119_v41  ;;  %v7485_v34 = vld [vmem:[%s9878_s8 + $0x2e8] sm:$0xff] }
 0xf01   : > { %7724 = vrot.lane.b32.xlu2 %v7723_v63, %s8014_s20  ;;  %v7809_v63 = vld [vmem:[%s9924_s6 + $0x7] ss:$0 sm:$0xff] }
 0xf03   : > { %3579 = vmatpush.bf16.msra.mxu3 %v7482_v38  ;;  %v7490_v38 = vld [vmem:[%s9920_s5 + $0x310] sm:$0xff] }
 0xf5b   : > { %v7725_v43 = vpop.permute.xlu2 %7724 }
 0xf5c   : > { %v7727_v44 = vunpack.i.h.bf16 %v7725_v43  ;;  %v7726_v45 = vunpack.i.l.bf16 %v7725_v43 }
 0xf5e   : > { %v3116_v47 = vsel %vm634_vm1, %v3102_v33, %v7726_v45  ;;  %v3117_v48 = vsel %vm634_vm1, %v3103_v46, %v7727_v44  ;;  %v7486_v33 = vld [vmem:[%s9878_s8 + $0x2f0] sm:$0xff]  ;;  %v7810_v44 = vld [vmem:[%s9925_s7 + $0x7] ss:$0 sm:$0xff]  ;;  %v7481_v45 = vld [vmem:[%s9878_s8 + $0x2c8] sm:$0xff] }
 0xf5f   : > { %v3118_v49 = vpack.c.bf16 %v3117_v48, %v3116_v47  ;;  %3597 = vmatpush.bf16.msra.mxu1 %v7486_v33  ;;  %3580 = vmatpush.bf16.msra.mxu3 %v7481_v45  ;;  %v7480_v48 = vld [vmem:[%s9878_s8 + $0x2c0] sm:$0xff] }
 0xf61   : > { %3254 = vmatmul.bf16.vlgmr.msrb.gmra.mxu1 %v3118_v49 }
 0xf63   : > { %3598 = vmatpush.bf16.msra.mxu1 %v7485_v34  ;;  %3581 = vmatpush.bf16.msra.mxu3 %v7480_v48  ;;  %v7491_v34 = vld [vmem:[%s9920_s5 + $0x318] sm:$0xff]  ;;  %v7488_v48 = vld [vmem:[%s9920_s5 + $0x300] sm:$0xff] }
 0xf67   : > { %3599 = vmatpush.bf16.msra.mxu1 %v7484_v35  ;;  %3582 = vmatpush.bf16.msra.mxu3 %v7479_v55 }
 0xf6b   : > { %3583 = vmatpush.bf16.msra.mxu3 %v7478_v57  ;;  %v7511_v57 = vld [vmem:[%s9878_s8 + $0x358] sm:$0xff] }
 0xf83   : > { %v3269_v28 = vpop.f32.mrf.mxu3 }
 0xf8b   : > { %v3271_v9 = vpop.f32.mrf.mxu3 }
 0xfde   : > { %v3255_v58 = vpop.f32.mrf.mxu1 }
 0xfdf   : > { %v3256_v59 = vadd.f32 %v3255_v58, %v3166_v56  ;;  %v7477_v58 = vld [vmem:[%s9878_s8 + $0x2a8] sm:$0xff] }
 0xfe0   : > { %3584 = vmatpush.bf16.msra.mxu3 %v7477_v58  ;;  %v7509_v58 = vld [vmem:[%s9878_s8 + $0x348] sm:$0xff] }
 0xfe1   : > { %v9118_v62 = vadd.f32 %v3269_v28, %v3256_v59 }
 0xfe3   : > { %v3279_v2 = vmul.f32 %v7807_v60, %v9118_v62 }
 0xfe5   : > { %v3286_v3 = vadd.f32 %v7808_v40, %v3279_v2 }
 0xfe6   : > { %v3257_v5 = vpop.f32.mrf.mxu1 }
 0xfe7   : > { %v3288_v26 = vmax.f32 %v3286_v3, 0.0  ;;  %v3258_v8 = vadd.f32 %v3257_v5, %v3168_v39  ;;  %v7476_v39 = vld [vmem:[%s9878_s8 + $0x2a0] sm:$0xff] }
 0xfe8   : > { %3585 = vmatpush.bf16.msra.mxu3 %v7476_v39  ;;  %v7814_v39 = vld [vmem:[%s9925_s7 + $0x8] ss:$0 sm:$0xff] }
 0xfe9   : > { %3317 = vst.msk [vmem:[#allocation2 + $0x1] sm:$0xff] %vm634_vm1, %v3288_v26  ;;  %v9131_v10 = vadd.f32 %v3271_v9, %v3258_v8 }
 0xfeb   : > { %v3280_v50 = vmul.f32 %v7807_v60, %v9131_v10 }
 0xfec   : > { %3928 = vmatpush.bf16.msrb.mxu3 %v7511_v57 }
 0xfed   : > { %v3287_v12 = vadd.f32 %v7808_v40, %v3280_v50 }
 0xfef   : > { %v3289_v14 = vmax.f32 %v3287_v12, 0.0 }
 0xff0   : > { %v3319_v16 = vld [vmem:[#allocation2] sm:$0xff] }
 0xff1   : > { %3318 = vst.msk [vmem:[#allocation2 + $0x9] sm:$0xff] %vm634_vm1, %v3289_v14  ;;  %v3321_v19 = vld [vmem:[#allocation2 + $0x1] sm:$0xff]  ;;  %v7498_v14 = vld [vmem:[%s9920_s5 + $0x350] sm:$0xff] }
 0xff2   : > { %3481 = vst.msk [vmem:[#allocation2] sm:$0x1] %vm631_vm0, %v8013_v1  ;;  %3763 = vmatpush.bf16.msra.mxu0 %v7498_v14  ;;  %v7503_v14 = vld [vmem:[%s9878_s8 + $0x318] sm:$0xff] }
 0xff6   : > { %3764 = vmatpush.bf16.msra.mxu0 %v7497_v15 }
 0xff8   : > { %v3323_v61 = vld [vmem:[#allocation2 + $0x2] sm:$0xff]  ;;  %v3324_v20 = vld [vmem:[#allocation2 + $0xa] sm:$0xff] }
 0xff9   : > { %v3322_v21 = vld [vmem:[#allocation2 + $0x9] sm:$0xff]  ;;  %v3336_v22 = vpack.c.bf16 %v3324_v20, %v3323_v61  ;;  %3482 = vst.msk [vmem:[#allocation2 + $0x11] sm:$0x1] %vm631_vm0, %v8013_v1 }
 0xffa   : > { %v7728_v23 = vpack.i.bf16 %v3322_v21, %v3321_v19  ;;  %v3320_v29 = vld [vmem:[#allocation2 + $0x8] sm:$0xff]  ;;  %v7495_v19 = vld [vmem:[%s9920_s5 + $0x338] sm:$0xff]  ;;  %v7494_v61 = vld [vmem:[%s9920_s5 + $0x330] sm:$0xff] }
 0xffb   : > { %6551 = vmatmul.msk.bf16.vlgmr.msrb.gmra.mxu2 %vm634_vm1, %v3336_v22 }
 0xffc   : > { %7729 = vrot.lane.b32.xlu0 %v7728_v23, %s8014_s20  ;;  %3744 = vmatpush.bf16.msra.mxu2 %v7495_v19  ;;  %v7811_v23 = vld [vmem:[%s9922_s3 + $0x8] ss:$0 sm:$0xff]  ;;  %v7502_v19 = vld [vmem:[%s9878_s8 + $0x310] sm:$0xff] }
0x1000   : > { %3745 = vmatpush.bf16.msra.mxu2 %v7494_v61 }
0x106e   : > { %v7730_v25 = vpop.permute.xlu0 %7729 }
0x106f   : > { %v7732_v27 = vunpack.i.h.bf16 %v7730_v25  ;;  %v7731_v54 = vunpack.i.l.bf16 %v7730_v25  ;;  %v7812_v25 = vld [vmem:[%s9923_s4 + $0x8] ss:$0 sm:$0xff] }
0x1071   : > { %v3333_v30 = vsel %vm634_vm1, %v3319_v16, %v7731_v54  ;;  %v3334_v7 = vsel %vm634_vm1, %v3320_v29, %v7732_v27  ;;  %v7496_v16 = vld [vmem:[%s9920_s5 + $0x340] sm:$0xff]  ;;  %v7493_v27 = vld [vmem:[%s9920_s5 + $0x328] sm:$0xff] }
0x1072   : > { %v3335_v31 = vpack.c.bf16 %v3334_v7, %v3333_v30  ;;  %3765 = vmatpush.bf16.msra.mxu0 %v7496_v16  ;;  %3746 = vmatpush.bf16.msra.mxu2 %v7493_v27 }
0x1074   : > { %3420 = vmatmul.bf16.vlgmr.msrb.gmra.mxu0 %v3335_v31 }
0x107e   : > { %v3435_v41 = vpop.f32.mrf.mxu2 }
0x1086   : > { %v3437_v51 = vpop.f32.mrf.mxu2 }
0x10f1   : > { %v3421_v42 = vpop.f32.mrf.mxu0 }
0x10f2   : > { %v3436_v43 = vadd.f32 %v3435_v41, %v3421_v42 }
0x10f4   : > { %v3445_v46 = vmul.f32 %v7809_v63, %v3436_v43 }
0x10f6   : > { %v3452_v47 = vadd.f32 %v7810_v44, %v3445_v46 }
0x10f8   : > { %v3454_v49 = vmax.f32 %v3452_v47, 0.0 }
0x10f9   : > { %v3423_v52 = vpop.f32.mrf.mxu0 }
0x10fa   : > { %3483 = vst.msk [vmem:[#allocation2 + $0x1] sm:$0xff] %vm634_vm1, %v3454_v49  ;;  %v3438_v53 = vadd.f32 %v3437_v51, %v3423_v52 }
0x10fc   : > { %v3446_v17 = vmul.f32 %v7809_v63, %v3438_v53 }
0x10fe   : > { %v3453_v56 = vadd.f32 %v7810_v44, %v3446_v17 }
0x1100   : > { %v3455_v28 = vmax.f32 %v3453_v56, 0.0 }
0x1101   : > { %v3485_v59 = vld [vmem:[#allocation2] sm:$0xff] }
0x1102   : > { %3484 = vst.msk [vmem:[#allocation2 + $0x9] sm:$0xff] %vm634_vm1, %v3455_v28  ;;  %v3487_v60 = vld [vmem:[#allocation2 + $0x1] sm:$0xff]  ;;  %v7510_v28 = vld [vmem:[%s9878_s8 + $0x350] sm:$0xff] }
0x1103   : > { %3647 = vst.msk [vmem:[#allocation2] sm:$0x1] %vm631_vm0, %v8013_v1  ;;  %3929 = vmatpush.bf16.msrb.mxu3 %v7510_v28  ;;  %v7815_v28 = vld [vmem:[%s9922_s3 + $0x9] ss:$0 sm:$0xff] }
0x1107   : > { %3930 = vmatpush.bf16.msrb.mxu3 %v7509_v58 }
0x1109   : > { %v3489_v40 = vld [vmem:[#allocation2 + $0x2] sm:$0xff]  ;;  %v3490_v0 = vld [vmem:[#allocation2 + $0xa] sm:$0xff] }
0x110a   : > { %v3488_v2 = vld [vmem:[#allocation2 + $0x9] sm:$0xff]  ;;  %v3502_v3 = vpack.c.bf16 %v3490_v0, %v3489_v40  ;;  %3648 = vst.msk [vmem:[#allocation2 + $0x11] sm:$0x1] %vm631_vm0, %v8013_v1 }
0x110b   : > { %v7733_v4 = vpack.i.bf16 %v3488_v2, %v3487_v60  ;;  %v3486_v9 = vld [vmem:[#allocation2 + $0x8] sm:$0xff]  ;;  %v7507_v60 = vld [vmem:[%s9878_s8 + $0x338] sm:$0xff]  ;;  %v7506_v40 = vld [vmem:[%s9878_s8 + $0x330] sm:$0xff] }
0x110c   : > { %6626 = vmatmul.msk.bf16.vlgmr.msra.gmra.mxu1 %vm634_vm1, %v3502_v3  ;;  %v7813_v2 = vld [vmem:[%s9924_s6 + $0x8] ss:$0 sm:$0xff] }
0x110d   : > { %7734 = vrot.lane.b32.xlu1 %v7733_v4, %s8014_s20  ;;  %3910 = vmatpush.bf16.msrb.mxu1 %v7507_v60 }
0x1111   : > { %3911 = vmatpush.bf16.msrb.mxu1 %v7506_v40  ;;  %v7519_v40 = vld [vmem:[%s9920_s5 + $0x398] sm:$0xff] }
0x117f   : > { %v7735_v5 = vpop.permute.xlu1 %7734 }
0x1180   : > { %v7737_v26 = vunpack.i.h.bf16 %v7735_v5  ;;  %v7736_v8 = vunpack.i.l.bf16 %v7735_v5  ;;  %v7505_v5 = vld [vmem:[%s9878_s8 + $0x328] sm:$0xff] }
0x1181   : > { %3912 = vmatpush.bf16.msrb.mxu1 %v7505_v5 }
0x1182   : > { %v3499_v11 = vsel %vm634_vm1, %v3485_v59, %v7736_v8  ;;  %v3500_v50 = vsel %vm634_vm1, %v3486_v9, %v7737_v26  ;;  %v7508_v59 = vld [vmem:[%s9878_s8 + $0x340] sm:$0xff] }
0x1183   : > { %v3501_v12 = vpack.c.bf16 %v3500_v50, %v3499_v11  ;;  %3931 = vmatpush.bf16.msrb.mxu3 %v7508_v59  ;;  %v7504_v9 = vld [vmem:[%s9878_s8 + $0x320] sm:$0xff]  ;;  %v7816_v59 = vld [vmem:[%s9923_s4 + $0x9] ss:$0 sm:$0xff] }
0x1185   : > { %3586 = vmatmul.bf16.vlgmr.msra.gmra.mxu3 %v3501_v12  ;;  %3913 = vmatpush.bf16.msrb.mxu1 %v7504_v9 }
0x1189   : > { %v3601_v20 = vpop.f32.mrf.mxu1  ;;  %3914 = vmatpush.bf16.msrb.mxu1 %v7503_v14 }
0x118d   : > { %3915 = vmatpush.bf16.msrb.mxu1 %v7502_v19 }
0x1191   : > { %v3603_v32 = vpop.f32.mrf.mxu1 }
0x1208   : > { %v3587_v21 = vpop.f32.mrf.mxu3 }
0x1209   : > { %v3588_v22 = vadd.f32 %v3587_v21, %v9118_v62  ;;  %v7492_v62 = vld [vmem:[%s9920_s5 + $0x320] sm:$0xff] }
0x120a   : > { %3747 = vmatpush.bf16.msra.mxu2 %v7492_v62  ;;  %v7500_v62 = vld [vmem:[%s9878_s8 + $0x300] sm:$0xff] }
0x120b   : > { %v9229_v24 = vadd.f32 %v3601_v20, %v3588_v22  ;;  %v7501_v20 = vld [vmem:[%s9878_s8 + $0x308] sm:$0xff] }
0x120c   : > { %3916 = vmatpush.bf16.msrb.mxu1 %v7501_v20 }
0x120d   : > { %v3611_v54 = vmul.f32 %v7811_v23, %v9229_v24 }
0x120e   : > { %3748 = vmatpush.bf16.msra.mxu2 %v7491_v34 }
0x120f   : > { %v3618_v29 = vadd.f32 %v7812_v25, %v3611_v54 }
0x1210   : > { %v3589_v30 = vpop.f32.mrf.mxu3  ;;  %3917 = vmatpush.bf16.msrb.mxu1 %v7500_v62 }
0x1211   : > { %v3620_v7 = vmax.f32 %v3618_v29, 0.0  ;;  %v3590_v31 = vadd.f32 %v3589_v30, %v9131_v10  ;;  %v7489_v10 = vld [vmem:[%s9920_s5 + $0x308] sm:$0xff] }
0x1212   : > { %3749 = vmatpush.bf16.msra.mxu2 %v7490_v38  ;;  %v6784_v38 = vld [vmem:[%s9880_s10 + $0xb8] sm:$0xff] }
0x1213   : > { %3649 = vst.msk [vmem:[#allocation2 + $0x1] sm:$0xff] %vm634_vm1, %v3620_v7  ;;  %v9243_v33 = vadd.f32 %v3603_v32, %v3590_v31  ;;  %3970 = vmatpush.msrb.mxu0 %v6784_v38 }
0x1215   : > { %v3612_v35 = vmul.f32 %v7811_v23, %v9243_v33 }
0x1216   : > { %3750 = vmatpush.bf16.msra.mxu2 %v7489_v10  ;;  %v6782_v10 = vld [vmem:[%s9880_s10 + $0xa8] sm:$0xff] }
0x1217   : > { %v3619_v36 = vadd.f32 %v7812_v25, %v3612_v35 }
0x1219   : > { %v3621_v41 = vmax.f32 %v3619_v36, 0.0 }
0x121a   : > { %v3651_v63 = vld [vmem:[#allocation2] sm:$0xff]  ;;  %3751 = vmatpush.bf16.msra.mxu2 %v7488_v48 }
0x121b   : > { %3650 = vst.msk [vmem:[#allocation2 + $0x9] sm:$0xff] %vm634_vm1, %v3621_v41  ;;  %v3653_v42 = vld [vmem:[#allocation2 + $0x1] sm:$0xff]  ;;  %v6783_v41 = vld [vmem:[%s9880_s10 + $0xb0] sm:$0xff] }
0x121c   : > { %3813 = vst.msk [vmem:[#allocation2] sm:$0x1] %vm631_vm0, %v8013_v1  ;;  %3971 = vmatpush.msrb.mxu0 %v6783_v41  ;;  %v6777_v48 = vld [vmem:[%s9880_s10 + $0x80] sm:$0xff] }
0x121e   : > { %3972 = vmatpush.msrb.mxu0 %v6782_v10  ;;  %4120 = vmatpush.bf16.msrb.mxu2 %v7519_v40 }
0x1222   : > { %v3655_v43 = vld [vmem:[#allocation2 + $0x2] sm:$0xff]  ;;  %v3656_v44 = vld [vmem:[#allocation2 + $0xa] sm:$0xff] }
0x1223   : > { %v3654_v45 = vld [vmem:[#allocation2 + $0x9] sm:$0xff]  ;;  %v3668_v46 = vpack.c.bf16 %v3656_v44, %v3655_v43  ;;  %3814 = vst.msk [vmem:[#allocation2 + $0x11] sm:$0x1] %vm631_vm0, %v8013_v1  ;;  %v6780_v43 = vld [vmem:[%s9880_s10 + $0x98] sm:$0xff] }
0x1224   : > { %v7738_v47 = vpack.i.bf16 %v3654_v45, %v3653_v42  ;;  %v3652_v53 = vld [vmem:[#allocation2 + $0x8] sm:$0xff]  ;;  %v6781_v42 = vld [vmem:[%s9880_s10 + $0xa0] sm:$0xff]  ;;  %v7522_v44 = vld [vmem:[%s9920_s5 + $0x3b0] sm:$0xff] }
0x1225   : > { %6701 = vmatmul.msk.bf16.vlgmr.msra.gmra.mxu0 %vm634_vm1, %v3668_v46  ;;  %v6779_v45 = vld [vmem:[%s9880_s10 + $0x90] sm:$0xff]  ;;  %v6778_v46 = vld [vmem:[%s9880_s10 + $0x88] sm:$0xff] }
0x1226   : > { %7739 = vrot.lane.b32.xlu2 %v7738_v47, %s8014_s20  ;;  %3973 = vmatpush.msrb.mxu0 %v6781_v42  ;;  %v7521_v47 = vld [vmem:[%s9920_s5 + $0x3a8] sm:$0xff] }
0x1228   : > { %3974 = vmatpush.msrb.mxu0 %v6780_v43  ;;  %v6785_v43 = vld [vmem:[%s9881_s11 + $0x2] sm:$0x1] }
0x122a   : > { %3975 = vmatpush.msrb.mxu0 %v6779_v45 }
0x122c   : > { %3976 = vmatpush.msrb.mxu0 %v6778_v46  ;;  %v7535_v46 = vld [vmem:[%s9878_s8 + $0x3b8] sm:$0xff] }
0x122e   : > { %3977 = vmatpush.msrb.mxu0 %v6777_v48  ;;  %v7533_v48 = vld [vmem:[%s9878_s8 + $0x3a8] sm:$0xff] }
0x1280   : > { %v7740_v49 = vpop.permute.xlu2 %7739 }
0x1281   : > { %v7742_v51 = vunpack.i.h.bf16 %v7740_v49  ;;  %v7741_v52 = vunpack.i.l.bf16 %v7740_v49  ;;  %v7539_v49 = vld [vmem:[%s9879_s9 + $0x58] sm:$0xff] }
0x1282   : > { %4252 = vmatpush.bf16.msra.mxu0 %v7539_v49  ;;  %v7532_v49 = vld [vmem:[%s9878_s8 + $0x3a0] sm:$0xff] }
0x1283   : > { %v3665_v55 = vsel %vm634_vm1, %v3651_v63, %v7741_v52  ;;  %v3666_v17 = vsel %vm634_vm1, %v3652_v53, %v7742_v51  ;;  %v7523_v63 = vld [vmem:[%s9920_s5 + $0x3b8] sm:$0xff]  ;;  %v7520_v51 = vld [vmem:[%s9920_s5 + $0x3a0] sm:$0xff]  ;;  %v7538_v52 = vld [vmem:[%s9879_s9 + $0x50] sm:$0xff] }
0x1284   : > { %v3667_v56 = vpack.c.bf16 %v3666_v17, %v3665_v55  ;;  %4138 = vmatpush.bf16.msra.mxu3 %v7523_v63  ;;  %v7537_v53 = vld [vmem:[%s9879_s9 + $0x48] sm:$0xff] }
0x1286   : > { %3752 = vmatmul.bf16.vlgmr.msra.gmra.mxu2 %v3667_v56  ;;  %4253 = vmatpush.bf16.msra.mxu0 %v7538_v52  ;;  %v7536_v56 = vld [vmem:[%s9879_s9 + $0x40] sm:$0xff]  ;;  %v7530_v52 = vld [vmem:[%s9878_s8 + $0x390] sm:$0xff] }
0x1288   : > { %4139 = vmatpush.bf16.msra.mxu3 %v7522_v44 }
0x128a   : > { %4254 = vmatpush.bf16.msra.mxu0 %v7537_v53 }
0x128c   : > { %4140 = vmatpush.bf16.msra.mxu3 %v7521_v47  ;;  %v7534_v47 = vld [vmem:[%s9878_s8 + $0x3b0] sm:$0xff] }
0x128e   : > { %4255 = vmatpush.bf16.msra.mxu0 %v7536_v56 }
0x1290   : > { %4141 = vmatpush.bf16.msra.mxu3 %v7520_v51  ;;  %v7531_v51 = vld [vmem:[%s9878_s8 + $0x398] sm:$0xff] }
0x1291   : > { %4337 = vmatpush.bf16.msra.mxu1 %v7531_v51  ;;  %v7543_v51 = vld [vmem:[%s9920_s5 + $0x3d8] sm:$0xff] }
0x1295   : > { %4338 = vmatpush.bf16.msra.mxu1 %v7530_v52 }
0x12a2   : > { %v3767_v0 = vpop.f32.mrf.mxu0 }
0x12aa   : > { %v3769_v50 = vpop.f32.mrf.mxu0 }
0x1309   : > { %v3753_v3 = vpop.f32.mrf.mxu2 }
0x130a   : > { %v3768_v4 = vadd.f32 %v3767_v0, %v3753_v3 }
0x130c   : > { %v3777_v26 = vmul.f32 %v7813_v2, %v3768_v4 }
0x130e   : > { %v3784_v8 = vadd.f32 %v7814_v39, %v3777_v26  ;;  %v7517_v26 = vld [vmem:[%s9920_s5 + $0x388] sm:$0xff] }
0x1310   : > { %v3786_v11 = vmax.f32 %v3784_v8, 0.0 }
0x1311   : > { %v3755_v12 = vpop.f32.mrf.mxu2 }
0x1312   : > { %3815 = vst.msk [vmem:[#allocation2 + $0x1] sm:$0xff] %vm634_vm1, %v3786_v11  ;;  %v3770_v13 = vadd.f32 %v3769_v50, %v3755_v12 }
0x1314   : > { %v3778_v15 = vmul.f32 %v7813_v2, %v3770_v13 }
0x1316   : > { %v3785_v16 = vadd.f32 %v7814_v39, %v3778_v15 }
0x1318   : > { %v3787_v61 = vmax.f32 %v3785_v16, 0.0 }
0x1319   : > { %v3817_v21 = vld [vmem:[#allocation2] sm:$0xff] }
0x131a   : > { %3816 = vst.msk [vmem:[#allocation2 + $0x9] sm:$0xff] %vm634_vm1, %v3787_v61  ;;  %v3819_v22 = vld [vmem:[#allocation2 + $0x1] sm:$0xff]  ;;  %v7515_v61 = vld [vmem:[%s9920_s5 + $0x378] sm:$0xff] }
0x131b   : > { %4023 = vst.msk [vmem:[#allocation2] sm:$0x1] %vm631_vm0, %v8013_v1 }
0x1321   : > { %v3821_v23 = vld [vmem:[#allocation2 + $0x2] sm:$0xff]  ;;  %v3822_v25 = vld [vmem:[#allocation2 + $0xa] sm:$0xff] }
0x1322   : > { %v3820_v27 = vld [vmem:[#allocation2 + $0x9] sm:$0xff]  ;;  %v3834_v54 = vpack.c.bf16 %v3822_v25, %v3821_v23  ;;  %4024 = vst.msk [vmem:[#allocation2 + $0x11] sm:$0x1] %vm631_vm0, %v8013_v1 }
0x1323   : > { %v7743_v29 = vpack.i.bf16 %v3820_v27, %v3819_v22  ;;  %v3818_v32 = vld [vmem:[#allocation2 + $0x8] sm:$0xff]  ;;  %v7514_v22 = vld [vmem:[%s9920_s5 + $0x370] sm:$0xff] }
0x1324   : > { %6776 = vmatmul.msk.bf16.vlgmr.msrb.gmra.mxu3 %vm634_vm1, %v3834_v54 }
0x1325   : > { %7744 = vrot.lane.b32.xlu0 %v7743_v29, %s8014_s20  ;;  %4355 = vmatpush.bf16.msrb.mxu3 %v7535_v46 }
0x1329   : > { %4356 = vmatpush.bf16.msrb.mxu3 %v7534_v47 }
0x132d   : > { %4357 = vmatpush.bf16.msrb.mxu3 %v7533_v48 }
0x1331   : > { %4358 = vmatpush.bf16.msrb.mxu3 %v7532_v49 }
0x1397   : > { %v7745_v30 = vpop.permute.xlu0 %7744 }
0x1398   : > { %v7747_v7 = vunpack.i.h.bf16 %v7745_v30  ;;  %v7746_v31 = vunpack.i.l.bf16 %v7745_v30 }
0x139a   : > { %v3831_v34 = vsel %vm634_vm1, %v3817_v21, %v7746_v31  ;;  %v3832_v35 = vsel %vm634_vm1, %v3818_v32, %v7747_v7  ;;  %v7513_v31 = vld [vmem:[%s9920_s5 + $0x368] sm:$0xff] }
0x139b   : > { %v3833_v36 = vpack.c.bf16 %v3832_v35, %v3831_v34  ;;  %v7512_v34 = vld [vmem:[%s9920_s5 + $0x360] sm:$0xff] }
0x139d   : > { %3918 = vmatmul.bf16.vlgmr.msrb.gmra.mxu1 %v3833_v36 }
0x13a7   : > { %v3933_v55 = vpop.f32.mrf.mxu3 }
0x13af   : > { %v3935_v39 = vpop.f32.mrf.mxu3 }
0x141a   : > { %v3919_v17 = vpop.f32.mrf.mxu1 }
0x141b   : > { %v3920_v57 = vadd.f32 %v3919_v17, %v9229_v24  ;;  %v7518_v24 = vld [vmem:[%s9920_s5 + $0x390] sm:$0xff] }
0x141c   : > { %4121 = vmatpush.bf16.msrb.mxu2 %v7518_v24 }
0x141d   : > { %v3934_v58 = vadd.f32 %v3933_v55, %v3920_v57  ;;  %v7817_v55 = vld [vmem:[%s9924_s6 + $0x9] ss:$0 sm:$0xff] }
0x141e   : > { %v7818_v57 = vld [vmem:[%s9925_s7 + $0x9] ss:$0 sm:$0xff] }
0x141f   : > { %v3987_v60 = vmul.f32 %v7815_v28, %v3934_v58  ;;  %v3938_v8 = vsel %vm634_vm1, %v3934_v58, 0.0 }
0x1420   : > { %4122 = vmatpush.bf16.msrb.mxu2 %v7517_v26 }
0x1421   : > { %v3994_v0 = vadd.f32 %v7816_v59, %v3987_v60  ;;  %v7528_v60 = vld [vmem:[%s9878_s8 + $0x380] sm:$0xff] }
0x1422   : > { %v3921_v2 = vpop.f32.mrf.mxu1 }
0x1423   : > { %v3996_v3 = vmax.f32 %v3994_v0, 0.0  ;;  %v3922_v4 = vadd.f32 %v3921_v2, %v9243_v33  ;;  %v7516_v33 = vld [vmem:[%s9920_s5 + $0x380] sm:$0xff] }
0x1424   : > { %4123 = vmatpush.bf16.msrb.mxu2 %v7516_v33 }
0x1425   : > { %4025 = vst.msk [vmem:[#allocation2 + $0x1] sm:$0xff] %vm634_vm1, %v3996_v3  ;;  %v3936_v5 = vadd.f32 %v3935_v39, %v3922_v4  ;;  %v7527_v3 = vld [vmem:[%s9878_s8 + $0x378] sm:$0xff] }
0x1427   : > { %v3939_v9 = vsel %vm634_vm1, %v3936_v5, 0.0  ;;  %v3988_v11 = vmul.f32 %v7815_v28, %v3936_v5  ;;  %v4211_v32 = vpack.c.bf16 %v3936_v5, %v3934_v58  ;;  %v7529_v28 = vld [vmem:[%s9878_s8 + $0x388] sm:$0xff]  ;;  %v7526_v5 = vld [vmem:[%s9878_s8 + $0x370] sm:$0xff] }
0x1428   : > { %v3940_v50 = vadd.f32 %v3939_v9, %v3938_v8  ;;  %4124 = vmatpush.bf16.msrb.mxu2 %v7515_v61  ;;  %4339 = vmatpush.bf16.msra.mxu1 %v7529_v28  ;;  %v7525_v8 = vld [vmem:[%s9878_s8 + $0x368] sm:$0xff] }
0x1429   : > { %v3995_v12 = vadd.f32 %v7816_v59, %v3988_v11 }
0x142a   : > { %v3941_v13 = vrot.slane %v3940_v50, 4 }
0x142b   : > { %v3997_v14 = vmax.f32 %v3995_v12, 0.0 }
0x142c   : > { %v3942_v15 = vadd.f32 %v3941_v13, %v3940_v50  ;;  %v4027_v16 = vld [vmem:[#allocation2] sm:$0xff]  ;;  %4125 = vmatpush.bf16.msrb.mxu2 %v7514_v22  ;;  %4340 = vmatpush.bf16.msra.mxu1 %v7528_v60 }
0x142d   : > { %4026 = vst.msk [vmem:[#allocation2 + $0x9] sm:$0xff] %vm634_vm1, %v3997_v14  ;;  %v4029_v23 = vld [vmem:[#allocation2 + $0x1] sm:$0xff] }
0x142e   : > { %v3943_v19 = vrot.slane %v3942_v15, 2  ;;  %4189 = vst.msk [vmem:[#allocation2] sm:$0x1] %vm631_vm0, %v8013_v1 }
0x1430   : > { %v3944_v20 = vadd.f32 %v3943_v19, %v3942_v15  ;;  %4126 = vmatpush.bf16.msrb.mxu2 %v7513_v31  ;;  %4341 = vmatpush.bf16.msra.mxu1 %v7527_v3  ;;  %v7524_v15 = vld [vmem:[%s9878_s8 + $0x360] sm:$0xff] }
0x1432   : > { %v3945_v21 = vrot.slane %v3944_v20, 1 }
0x1434   : > { %v4031_v25 = vld [vmem:[#allocation2 + $0x2] sm:$0xff]  ;;  %v4032_v27 = vld [vmem:[#allocation2 + $0xa] sm:$0xff]  ;;  %v3946_v29 = vadd.f32 %v3945_v21, %v3944_v20  ;;  %4127 = vmatpush.bf16.msrb.mxu2 %v7512_v34  ;;  %4342 = vmatpush.bf16.msra.mxu1 %v7526_v5 }
0x1435   : > { %v4030_v54 = vld [vmem:[#allocation2 + $0x9] sm:$0xff]  ;;  %v4044_v62 = vpack.c.bf16 %v4032_v27, %v4031_v25  ;;  %4190 = vst.msk [vmem:[#allocation2 + $0x11] sm:$0x1] %vm631_vm0, %v8013_v1  ;;  %v7551_v25 = vld [vmem:[%s9920_s5 + $0x418] sm:$0xff] }
0x1436   : > { %v7748_v30 = vpack.i.bf16 %v4030_v54, %v4029_v23  ;;  %v3947_v7 = vmul.f32 %v3946_v29, %v8636_v18  ;;  %v4028_v41 = vld [vmem:[#allocation2 + $0x8] sm:$0xff]  ;;  %v7550_v27 = vld [vmem:[%s9920_s5 + $0x410] sm:$0xff]  ;;  %v7548_v29 = vld [vmem:[%s9920_s5 + $0x400] sm:$0xff] }
0x1437   : > { %6861 = vmatmul.msk.bf16.vlgmr.msra.gmra.mxu3 %vm634_vm1, %v4044_v62  ;;  %v7549_v54 = vld [vmem:[%s9920_s5 + $0x408] sm:$0xff]  ;;  %v7547_v62 = vld [vmem:[%s9920_s5 + $0x3f8] sm:$0xff] }
0x1438   : > { %7749 = vrot.lane.b32.xlu1 %v7748_v30, %s8014_s20  ;;  %6786 = vmatmul.msk.f32.vlgmr.msrb.gmra.mxu0 %vm634_vm1, %v3947_v7  ;;  %v7546_v7 = vld [vmem:[%s9920_s5 + $0x3f0] sm:$0xff] }
0x1439   : > { %4343 = vmatpush.bf16.msra.mxu1 %v7525_v8  ;;  %4521 = vmatpush.bf16.msra.mxu2 %v7551_v25 }
0x143a   : > { %4503 = vmatpush.bf16.msrb.mxu0 %v7547_v62 }
0x143d   : > { %4344 = vmatpush.bf16.msra.mxu1 %v7524_v15  ;;  %4522 = vmatpush.bf16.msra.mxu2 %v7550_v27 }
0x143e   : > { %4504 = vmatpush.bf16.msrb.mxu0 %v7546_v7 }
0x1440   : > { %6912 = vmatmul.msk.bf16.vlgmr.msra.gmra.mxu0 %vm634_vm1, %v4211_v32 }
0x1441   : > { %4523 = vmatpush.bf16.msra.mxu2 %v7549_v54  ;;  %v7557_v54 = vld [vmem:[%s9878_s8 + $0x3e8] sm:$0xff] }
0x1445   : > { %4524 = vmatpush.bf16.msra.mxu2 %v7548_v29 }
0x14aa   : > { %v7750_v35 = vpop.permute.xlu1 %7749 }
0x14ab   : > { %v7752_v36 = vunpack.i.h.bf16 %v7750_v35  ;;  %v7751_v38 = vunpack.i.l.bf16 %v7750_v35  ;;  %v7819_v35 = vld [vmem:[%s9922_s3 + $0xa] ss:$0 sm:$0xff] }
0x14ad   : > { %v4041_v10 = vsel %vm634_vm1, %v4027_v16, %v7751_v38  ;;  %v4042_v63 = vsel %vm634_vm1, %v4028_v41, %v7752_v36  ;;  %v7820_v38 = vld [vmem:[%s9923_s4 + $0xa] ss:$0 sm:$0xff] }
0x14ae   : > { %v4043_v42 = vpack.c.bf16 %v4042_v63, %v4041_v10  ;;  %v7545_v41 = vld [vmem:[%s9920_s5 + $0x3e8] sm:$0xff] }
0x14af   : > { %4505 = vmatpush.bf16.msrb.mxu0 %v7545_v41 }
0x14b0   : > { %4128 = vmatmul.bf16.vlgmr.msrb.gmra.mxu2 %v4043_v42  ;;  %v7544_v42 = vld [vmem:[%s9920_s5 + $0x3e0] sm:$0xff] }
0x14b3   : > { %4506 = vmatpush.bf16.msrb.mxu0 %v7544_v42 }
0x14b5   : > { %v3979_v44 = vpop.f32.mrf.mxu0 }
0x14b6   : > { %v9417_v45 = vadd.f32 %v6785_v43, %v3979_v44 }
0x14b7   : > { %4507 = vmatpush.bf16.msrb.mxu0 %v7543_v51 }
0x14b8   : > { %5126 = vst.msk [vmem:[%s9900_s1] sm:$0x1] %vm5123_vm3, %v9417_v45  ;;  %s7849_s1 = scalar_lea.hbm %s9885_s15, 2 }
0x14ba   : > { %v4143_v53 = vpop.f32.mrf.mxu3 }
0x14bd   : > { %v4257_v30 = vpop.f32.mrf.mxu0 }
0x14c2   : > { %v4145_v0 = vpop.f32.mrf.mxu3 }
0x14c5   : > { %v4259_v43 = vpop.f32.mrf.mxu0 }
0x1533   : > { %v4129_v17 = vpop.f32.mrf.mxu2 }
0x1534   : > { %v4144_v56 = vadd.f32 %v4143_v53, %v4129_v17 }
0x1536   : > { %v4153_v58 = vmul.f32 %v7817_v55, %v4144_v56  ;;  %v7541_v56 = vld [vmem:[%s9920_s5 + $0x3c8] sm:$0xff] }
0x1538   : > { %v4160_v59 = vadd.f32 %v7818_v57, %v4153_v58 }
0x153a   : > { %v4162_v40 = vmax.f32 %v4160_v59, 0.0 }
0x153b   : > { %v4131_v2 = vpop.f32.mrf.mxu2 }
0x153c   : > { %4191 = vst.msk [vmem:[#allocation2 + $0x1] sm:$0xff] %vm634_vm1, %v4162_v40  ;;  %v4146_v24 = vadd.f32 %v4145_v0, %v4131_v2  ;;  %v7540_v2 = vld [vmem:[%s9920_s5 + $0x3c0] sm:$0xff] }
0x153e   : > { %v4154_v4 = vmul.f32 %v7817_v55, %v4146_v24  ;;  %v7542_v55 = vld [vmem:[%s9920_s5 + $0x3d0] sm:$0xff] }
0x153f   : > { %4508 = vmatpush.bf16.msrb.mxu0 %v7542_v55 }
0x1540   : > { %v4161_v39 = vadd.f32 %v7818_v57, %v4154_v4 }
0x1542   : > { %v4163_v26 = vmax.f32 %v4161_v39, 0.0 }
0x1543   : > { %v4193_v9 = vld [vmem:[#allocation2] sm:$0xff]  ;;  %4509 = vmatpush.bf16.msrb.mxu0 %v7541_v56  ;;  %v7573_v56 = vld [vmem:[%s9920_s5 + $0x468] sm:$0xff] }
0x1544   : > { %4192 = vst.msk [vmem:[#allocation2 + $0x9] sm:$0xff] %vm634_vm1, %v4163_v26  ;;  %v4195_v11 = vld [vmem:[#allocation2 + $0x1] sm:$0xff] }
0x1545   : > { %4406 = vst.msk [vmem:[#allocation2] sm:$0x1] %vm631_vm0, %v8013_v1 }
0x1547   : > { %4510 = vmatpush.bf16.msrb.mxu0 %v7540_v2 }
0x154b   : > { %v4197_v50 = vld [vmem:[#allocation2 + $0x2] sm:$0xff]  ;;  %v4198_v12 = vld [vmem:[#allocation2 + $0xa] sm:$0xff] }
0x154c   : > { %v4196_v13 = vld [vmem:[#allocation2 + $0x9] sm:$0xff]  ;;  %v4210_v33 = vpack.c.bf16 %v4198_v12, %v4197_v50  ;;  %4407 = vst.msk [vmem:[#allocation2 + $0x11] sm:$0x1] %vm631_vm0, %v8013_v1  ;;  %v7560_v12 = vld [vmem:[%s9878_s8 + $0x400] sm:$0xff] }
0x154d   : > { %v7753_v14 = vpack.i.bf16 %v4196_v13, %v4195_v11  ;;  %v4194_v20 = vld [vmem:[#allocation2 + $0x8] sm:$0xff]  ;;  %v7562_v11 = vld [vmem:[%s9878_s8 + $0x410] sm:$0xff] }
0x154e   : > { %6961 = vmatmul.msk.bf16.vlgmr.msrb.gmra.mxu3 %vm634_vm1, %v4210_v33  ;;  %v7561_v50 = vld [vmem:[%s9878_s8 + $0x408] sm:$0xff] }
0x154f   : > { %7754 = vrot.lane.b32.xlu2 %v7753_v14, %s8014_s20  ;;  %v7821_v33 = vld [vmem:[%s9924_s6 + $0xa] ss:$0 sm:$0xff] }
0x15a9   : > { %v7755_v16 = vpop.permute.xlu2 %7754 }
0x15aa   : > { %v7757_v19 = vunpack.i.h.bf16 %v7755_v16  ;;  %v7756_v61 = vunpack.i.l.bf16 %v7755_v16  ;;  %v7822_v16 = vld [vmem:[%s9925_s7 + $0xa] ss:$0 sm:$0xff] }
0x15ac   : > { %v4207_v21 = vsel %vm634_vm1, %v4193_v9, %v7756_v61  ;;  %v4208_v22 = vsel %vm634_vm1, %v4194_v20, %v7757_v19  ;;  %v7563_v9 = vld [vmem:[%s9878_s8 + $0x418] sm:$0xff] }
0x15ad   : > { %v4209_v23 = vpack.c.bf16 %v4208_v22, %v4207_v21  ;;  %4687 = vmatpush.bf16.msrb.mxu1 %v7563_v9  ;;  %v7559_v61 = vld [vmem:[%s9878_s8 + $0x3f8] sm:$0xff]  ;;  %v7558_v21 = vld [vmem:[%s9878_s8 + $0x3f0] sm:$0xff]  ;;  %v7569_v9 = vld [vmem:[%s9920_s5 + $0x448] sm:$0xff] }
0x15ae   : > { %4669 = vmatpush.bf16.msra.mxu3 %v7559_v61 }
0x15af   : > { %4345 = vmatmul.bf16.vlgmr.msra.gmra.mxu1 %v4209_v23 }
0x15b1   : > { %4688 = vmatpush.bf16.msrb.mxu1 %v7562_v11 }
0x15b2   : > { %4670 = vmatpush.bf16.msra.mxu3 %v7558_v21 }
0x15b5   : > { %4689 = vmatpush.bf16.msrb.mxu1 %v7561_v50 }
0x15b6   : > { %4671 = vmatpush.bf16.msra.mxu3 %v7557_v54 }
0x15b9   : > { %4690 = vmatpush.bf16.msrb.mxu1 %v7560_v12  ;;  %v7568_v12 = vld [vmem:[%s9920_s5 + $0x440] sm:$0xff] }
0x15d1   : > { %v4360_v31 = vpop.f32.mrf.mxu3 }
0x15d9   : > { %v4362_v48 = vpop.f32.mrf.mxu3 }
0x162c   : > { %v4346_v32 = vpop.f32.mrf.mxu1 }
0x162d   : > { %v4347_v34 = vadd.f32 %v4346_v32, %v4257_v30  ;;  %v7556_v30 = vld [vmem:[%s9878_s8 + $0x3e0] sm:$0xff] }
0x162e   : > { %4672 = vmatpush.bf16.msra.mxu3 %v7556_v30 }
0x162f   : > { %v9497_v36 = vadd.f32 %v4360_v31, %v4347_v34  ;;  %v7555_v31 = vld [vmem:[%s9878_s8 + $0x3d8] sm:$0xff]  ;;  %v7554_v34 = vld [vmem:[%s9878_s8 + $0x3d0] sm:$0xff] }
0x1631   : > { %v4370_v10 = vmul.f32 %v7819_v35, %v9497_v36 }
0x1632   : > { %4673 = vmatpush.bf16.msra.mxu3 %v7555_v31  ;;  %v7585_v31 = vld [vmem:[%s9878_s8 + $0x468] sm:$0xff] }
0x1633   : > { %v4377_v63 = vadd.f32 %v7820_v38, %v4370_v10 }
0x1634   : > { %v4348_v44 = vpop.f32.mrf.mxu1 }
0x1635   : > { %v4379_v46 = vmax.f32 %v4377_v63, 0.0  ;;  %v4349_v47 = vadd.f32 %v4348_v44, %v4259_v43  ;;  %v7553_v43 = vld [vmem:[%s9878_s8 + $0x3c8] sm:$0xff]  ;;  %v7552_v44 = vld [vmem:[%s9878_s8 + $0x3c0] sm:$0xff] }
0x1636   : > { %4674 = vmatpush.bf16.msra.mxu3 %v7554_v34  ;;  %v7583_v34 = vld [vmem:[%s9878_s8 + $0x458] sm:$0xff] }
0x1637   : > { %4408 = vst.msk [vmem:[#allocation2 + $0x1] sm:$0xff] %vm634_vm1, %v4379_v46  ;;  %v9510_v49 = vadd.f32 %v4362_v48, %v4349_v47  ;;  %5001 = vmatpush.bf16.msra.mxu1 %v7583_v34 }
0x1639   : > { %v4371_v52 = vmul.f32 %v7819_v35, %v9510_v49 }
0x163a   : > { %4675 = vmatpush.bf16.msra.mxu3 %v7553_v43  ;;  %v7581_v43 = vld [vmem:[%s9878_s8 + $0x448] sm:$0xff] }
0x163b   : > { %v4378_v53 = vadd.f32 %v7820_v38, %v4371_v52 }
0x163d   : > { %v4380_v17 = vmax.f32 %v4378_v53, 0.0 }
0x163e   : > { %v4410_v57 = vld [vmem:[#allocation2] sm:$0xff]  ;;  %4676 = vmatpush.bf16.msra.mxu3 %v7552_v44 }
0x163f   : > { %4409 = vst.msk [vmem:[#allocation2 + $0x9] sm:$0xff] %vm634_vm1, %v4380_v17  ;;  %v4412_v28 = vld [vmem:[#allocation2 + $0x1] sm:$0xff]  ;;  %v7575_v17 = vld [vmem:[%s9920_s5 + $0x478] sm:$0xff] }
0x1640   : > { %4572 = vst.msk [vmem:[#allocation2] sm:$0x1] %vm631_vm0, %v8013_v1  ;;  %4853 = vmatpush.bf16.msra.mxu0 %v7575_v17 }
0x1646   : > { %v4414_v58 = vld [vmem:[#allocation2 + $0x2] sm:$0xff]  ;;  %v4415_v59 = vld [vmem:[#allocation2 + $0xa] sm:$0xff] }
0x1647   : > { %v4413_v60 = vld [vmem:[#allocation2 + $0x9] sm:$0xff]  ;;  %v4427_v40 = vpack.c.bf16 %v4415_v59, %v4414_v58  ;;  %4573 = vst.msk [vmem:[#allocation2 + $0x11] sm:$0x1] %vm631_vm0, %v8013_v1 }
0x1648   : > { %v7758_v0 = vpack.i.bf16 %v4413_v60, %v4412_v28  ;;  %v4411_v39 = vld [vmem:[#allocation2 + $0x8] sm:$0xff] }
0x1649   : > { %7036 = vmatmul.msk.bf16.vlgmr.msra.gmra.mxu2 %vm634_vm1, %v4427_v40  ;;  %v7823_v60 = vld [vmem:[%s9922_s3 + $0xb] ss:$0 sm:$0xff] }
0x164a   : > { %7759 = vrot.lane.b32.xlu0 %v7758_v0, %s8014_s20  ;;  %v7824_v0 = vld [vmem:[%s9923_s4 + $0xb] ss:$0 sm:$0xff]  ;;  %s9770_s4 = scalar_lea.sflag [#allocation6], %s5133_s21 }
0x16bc   : > { %v7760_v24 = vpop.permute.xlu0 %7759 }
0x16bd   : > { %v7762_v3 = vunpack.i.h.bf16 %v7760_v24  ;;  %v7761_v4 = vunpack.i.l.bf16 %v7760_v24  ;;  %v7571_v24 = vld [vmem:[%s9920_s5 + $0x458] sm:$0xff] }
0x16be   : > { %4835 = vmatpush.bf16.msrb.mxu2 %v7571_v24 }
0x16bf   : > { %v4424_v5 = vsel %vm634_vm1, %v4410_v57, %v7761_v4  ;;  %v4425_v26 = vsel %vm634_vm1, %v4411_v39, %v7762_v3  ;;  %v7572_v57 = vld [vmem:[%s9920_s5 + $0x460] sm:$0xff] }
0x16c0   : > { %v4426_v8 = vpack.c.bf16 %v4425_v26, %v4424_v5 }
0x16c2   : > { %4511 = vmatmul.bf16.vlgmr.msrb.gmra.mxu0 %v4426_v8 }
0x16cc   : > { %v4526_v13 = vpop.f32.mrf.mxu2 }
0x16d4   : > { %v4528_v23 = vpop.f32.mrf.mxu2 }
0x173f   : > { %v4512_v14 = vpop.f32.mrf.mxu0 }
0x1740   : > { %v4527_v15 = vadd.f32 %v4526_v13, %v4512_v14  ;;  %v7566_v14 = vld [vmem:[%s9920_s5 + $0x430] sm:$0xff] }
0x1742   : > { %v4536_v19 = vmul.f32 %v7821_v33, %v4527_v15 }
0x1744   : > { %v4543_v20 = vadd.f32 %v7822_v16, %v4536_v19 }
0x1746   : > { %v4545_v22 = vmax.f32 %v4543_v20, 0.0 }
0x1747   : > { %v4514_v25 = vpop.f32.mrf.mxu0 }
0x1748   : > { %4574 = vst.msk [vmem:[#allocation2 + $0x1] sm:$0xff] %vm634_vm1, %v4545_v22  ;;  %v4529_v27 = vadd.f32 %v4528_v23, %v4514_v25  ;;  %v7565_v22 = vld [vmem:[%s9920_s5 + $0x428] sm:$0xff]  ;;  %v7564_v23 = vld [vmem:[%s9920_s5 + $0x420] sm:$0xff] }
0x174a   : > { %v4537_v29 = vmul.f32 %v7821_v33, %v4529_v27 }
0x174c   : > { %v4544_v62 = vadd.f32 %v7822_v16, %v4537_v29 }
0x174e   : > { %v4546_v7 = vmax.f32 %v4544_v62, 0.0 }
0x174f   : > { %v4576_v32 = vld [vmem:[#allocation2] sm:$0xff] }
0x1750   : > { %4575 = vst.msk [vmem:[#allocation2 + $0x9] sm:$0xff] %vm634_vm1, %v4546_v7  ;;  %v4578_v35 = vld [vmem:[#allocation2 + $0x1] sm:$0xff]  ;;  %v7587_v7 = vld [vmem:[%s9878_s8 + $0x478] sm:$0xff] }
0x1751   : > { %4738 = vst.msk [vmem:[#allocation2] sm:$0x1] %vm631_vm0, %v8013_v1  ;;  %5019 = vmatpush.bf16.msrb.mxu3 %v7587_v7 }
0x1757   : > { %v4580_v38 = vld [vmem:[#allocation2 + $0x2] sm:$0xff]  ;;  %v4581_v41 = vld [vmem:[#allocation2 + $0xa] sm:$0xff] }
0x1758   : > { %v4579_v10 = vld [vmem:[#allocation2 + $0x9] sm:$0xff]  ;;  %v4593_v63 = vpack.c.bf16 %v4581_v41, %v4580_v38  ;;  %4739 = vst.msk [vmem:[#allocation2 + $0x11] sm:$0x1] %vm631_vm0, %v8013_v1 }
0x1759   : > { %v7763_v42 = vpack.i.bf16 %v4579_v10, %v4578_v35  ;;  %v4577_v51 = vld [vmem:[#allocation2 + $0x8] sm:$0xff]  ;;  %v7582_v35 = vld [vmem:[%s9878_s8 + $0x450] sm:$0xff] }
0x175a   : > { %7111 = vmatmul.msk.bf16.vlgmr.msrb.gmra.mxu1 %vm634_vm1, %v4593_v63  ;;  %v7825_v41 = vld [vmem:[%s9924_s6 + $0xb] ss:$0 sm:$0xff] }
0x175b   : > { %7764 = vrot.lane.b32.xlu1 %v7763_v42, %s8014_s20  ;;  %v7826_v42 = vld [vmem:[%s9925_s7 + $0xb] ss:$0 sm:$0xff]  ;;  %5002 = vmatpush.bf16.msra.mxu1 %v7582_v35 }
0x175f   : > { %5003 = vmatpush.bf16.msra.mxu1 %v7581_v43  ;;  %v7270_v43 = vld [vmem:[%s9881_s11 + $0x3] sm:$0x1] }
0x1763   : > { %5074 = vrot.lane.b32.xlu1 %v9038_v6, %s8016_s24  ;;  %v7574_v6 = vld [vmem:[%s9920_s5 + $0x470] sm:$0xff] }
0x1764   : > { %4854 = vmatpush.bf16.msra.mxu0 %v7574_v6 }
0x1768   : > { %4855 = vmatpush.bf16.msra.mxu0 %v7573_v56  ;;  %v7578_v56 = vld [vmem:[%s9878_s8 + $0x430] sm:$0xff] }
0x176c   : > { %4856 = vmatpush.bf16.msra.mxu0 %v7572_v57 }
0x17cd   : > { %v7765_v46 = vpop.permute.xlu1 %7764 }
0x17ce   : > { %v7767_v47 = vunpack.i.h.bf16 %v7765_v46  ;;  %v7766_v48 = vunpack.i.l.bf16 %v7765_v46 }
0x17d0   : > { %v4590_v52 = vsel %vm634_vm1, %v4576_v32, %v7766_v48  ;;  %v4591_v53 = vsel %vm634_vm1, %v4577_v51, %v7767_v47  ;;  %v7584_v32 = vld [vmem:[%s9878_s8 + $0x460] sm:$0xff] }
0x17d1   : > { %v4592_v55 = vpack.c.bf16 %v4591_v53, %v4590_v52  ;;  %v7580_v47 = vld [vmem:[%s9878_s8 + $0x440] sm:$0xff] }
0x17d2   : > { %5004 = vmatpush.bf16.msra.mxu1 %v7580_v47 }
0x17d3   : > { %4677 = vmatmul.bf16.vlgmr.msra.gmra.mxu3 %v4592_v55  ;;  %v7579_v55 = vld [vmem:[%s9878_s8 + $0x438] sm:$0xff] }
0x17d5   : > { %v5075_v47 = vpop.permute.xlu1 %5074 }
0x17d6   : > { %5005 = vmatpush.bf16.msra.mxu1 %v7579_v55 }
0x17d7   : > { %v4692_v28 = vpop.f32.mrf.mxu1 }
0x17da   : > { %5006 = vmatpush.bf16.msra.mxu1 %v7578_v56 }
0x17df   : > { %v4694_v26 = vpop.f32.mrf.mxu1 }
0x1856   : > { %v4678_v58 = vpop.f32.mrf.mxu3 }
0x1857   : > { %v4679_v59 = vadd.f32 %v4678_v58, %v9497_v36  ;;  %v7570_v36 = vld [vmem:[%s9920_s5 + $0x450] sm:$0xff] }
0x1858   : > { %4836 = vmatpush.bf16.msrb.mxu2 %v7570_v36 }
0x1859   : > { %v9603_v40 = vadd.f32 %v4692_v28, %v4679_v59  ;;  %v7577_v28 = vld [vmem:[%s9878_s8 + $0x428] sm:$0xff] }
0x185a   : > { %5007 = vmatpush.bf16.msra.mxu1 %v7577_v28 }
0x185b   : > { %v4702_v2 = vmul.f32 %v7823_v60, %v9603_v40 }
0x185c   : > { %4837 = vmatpush.bf16.msrb.mxu2 %v7569_v9 }
0x185d   : > { %v4709_v3 = vadd.f32 %v7824_v0, %v4702_v2 }
0x185e   : > { %v4680_v4 = vpop.f32.mrf.mxu3 }
0x185f   : > { %v4711_v39 = vmax.f32 %v4709_v3, 0.0  ;;  %v4681_v5 = vadd.f32 %v4680_v4, %v9510_v49  ;;  %v7567_v49 = vld [vmem:[%s9920_s5 + $0x438] sm:$0xff]  ;;  %v7576_v3 = vld [vmem:[%s9878_s8 + $0x420] sm:$0xff] }
0x1860   : > { %4838 = vmatpush.bf16.msrb.mxu2 %v7568_v12  ;;  %5008 = vmatpush.bf16.msra.mxu1 %v7576_v3  ;;  %v7269_v12 = vld [vmem:[%s9880_s10 + $0xf8] sm:$0xff] }
0x1861   : > { %4740 = vst.msk [vmem:[#allocation2 + $0x1] sm:$0xff] %vm634_vm1, %v4711_v39  ;;  %v9617_v8 = vadd.f32 %v4694_v26, %v4681_v5  ;;  %5061 = vmatpush.msrb.mxu0 %v7269_v12 }
0x1863   : > { %v4703_v11 = vmul.f32 %v7823_v60, %v9617_v8 }
0x1864   : > { %4839 = vmatpush.bf16.msrb.mxu2 %v7567_v49  ;;  %v7267_v49 = vld [vmem:[%s9880_s10 + $0xe8] sm:$0xff] }
0x1865   : > { %v4710_v50 = vadd.f32 %v7824_v0, %v4703_v11 }
0x1867   : > { %v4712_v13 = vmax.f32 %v4710_v50, 0.0 }
0x1868   : > { %v4742_v33 = vld [vmem:[#allocation2] sm:$0xff]  ;;  %4840 = vmatpush.bf16.msrb.mxu2 %v7566_v14  ;;  %v7265_v14 = vld [vmem:[%s9880_s10 + $0xd8] sm:$0xff] }
0x1869   : > { %4741 = vst.msk [vmem:[#allocation2 + $0x9] sm:$0xff] %vm634_vm1, %v4712_v13  ;;  %v4744_v15 = vld [vmem:[#allocation2 + $0x1] sm:$0xff]  ;;  %v7268_v13 = vld [vmem:[%s9880_s10 + $0xf0] sm:$0xff] }
0x186a   : > { %4904 = vst.msk [vmem:[#allocation2] sm:$0x1] %vm631_vm0, %v8013_v1  ;;  %5062 = vmatpush.msrb.mxu0 %v7268_v13 }
0x186c   : > { %4841 = vmatpush.bf16.msrb.mxu2 %v7565_v22  ;;  %5063 = vmatpush.msrb.mxu0 %v7267_v49 }
0x1870   : > { %v4746_v16 = vld [vmem:[#allocation2 + $0x2] sm:$0xff]  ;;  %v4747_v19 = vld [vmem:[#allocation2 + $0xa] sm:$0xff]  ;;  %4842 = vmatpush.bf16.msrb.mxu2 %v7564_v23 }
0x1871   : > { %v4745_v61 = vld [vmem:[#allocation2 + $0x9] sm:$0xff]  ;;  %v4759_v20 = vpack.c.bf16 %v4747_v19, %v4746_v16  ;;  %4905 = vst.msk [vmem:[#allocation2 + $0x11] sm:$0x1] %vm631_vm0, %v8013_v1  ;;  %v7262_v19 = vld [vmem:[%s9880_s10 + $0xc0] sm:$0xff] }
0x1872   : > { %v7768_v21 = vpack.i.bf16 %v4745_v61, %v4744_v15  ;;  %v4743_v54 = vld [vmem:[#allocation2 + $0x8] sm:$0xff]  ;;  %v7264_v15 = vld [vmem:[%s9880_s10 + $0xd0] sm:$0xff] }
0x1873   : > { %7186 = vmatmul.msk.bf16.vlgmr.msra.gmra.mxu0 %vm634_vm1, %v4759_v20  ;;  %v7263_v16 = vld [vmem:[%s9880_s10 + $0xc8] sm:$0xff] }
0x1874   : > { %7769 = vrot.lane.b32.xlu2 %v7768_v21, %s8014_s20 }
0x187c   : > { %5078 = vrot.lane.b32.xlu2 %v9417_v45, %s8017_s29  ;;  %v7586_v45 = vld [vmem:[%s9878_s8 + $0x470] sm:$0xff]  ;;  %s9926_s29 = scalar_lea.vmem [#allocation5], %s8654_s13 }
0x187d   : > { %5020 = vmatpush.bf16.msrb.mxu3 %v7586_v45  ;;  %s5169_s24 = sshll.u32 %s9926_s29, 4  ;;  %s5170_s24 = int_to_ptr.vmem [resolvable:$true] %s5169_s24 }
0x1881   : > { %5021 = vmatpush.bf16.msrb.mxu3 %v7585_v31 }
0x1885   : > { %5022 = vmatpush.bf16.msrb.mxu3 %v7584_v32 }
0x18ce   : > { %v7770_v1 = vpop.permute.xlu2 %7769 }
0x18cf   : > { %v7772_v25 = vunpack.i.h.bf16 %v7770_v1  ;;  %v7771_v27 = vunpack.i.l.bf16 %v7770_v1 }
0x18d1   : > { %v4756_v29 = vsel %vm634_vm1, %v4742_v33, %v7771_v27  ;;  %v4757_v62 = vsel %vm634_vm1, %v4743_v54, %v7772_v25  ;;  %v7266_v33 = vld [vmem:[%s9880_s10 + $0xe0] sm:$0xff] }
0x18d2   : > { %v4758_v30 = vpack.c.bf16 %v4757_v62, %v4756_v29  ;;  %5064 = vmatpush.msrb.mxu0 %v7266_v33 }
0x18d4   : > { %4843 = vmatmul.bf16.vlgmr.msrb.gmra.mxu2 %v4758_v30  ;;  %5065 = vmatpush.msrb.mxu0 %v7265_v14 }
0x18d6   : > { %5066 = vmatpush.msrb.mxu0 %v7264_v15 }
0x18d8   : > { %5067 = vmatpush.msrb.mxu0 %v7263_v16 }
0x18da   : > { %5068 = vmatpush.msrb.mxu0 %v7262_v19 }
0x18f0   : > { %v4858_v38 = vpop.f32.mrf.mxu0 }
0x18f8   : > { %v4860_v51 = vpop.f32.mrf.mxu0 }
0x1957   : > { %v4844_v10 = vpop.f32.mrf.mxu2 }
0x1958   : > { %v4859_v63 = vadd.f32 %v4858_v38, %v4844_v10  ;;  %v5096_v38 = vld [vmem:[%s9882_s12 + $0x28] sm:$0xff]  ;;  %v5093_v10 = vld [vmem:[%s9882_s12 + $0x10] sm:$0xff] }
0x195a   : > { %v4868_v44 = vmul.f32 %v7825_v41, %v4859_v63  ;;  %v5092_v63 = vld [vmem:[%s9882_s12 + $0x8] sm:$0xff] }
0x195c   : > { %v4875_v46 = vadd.f32 %v7826_v42, %v4868_v44 }
0x195e   : > { %v4877_v48 = vmax.f32 %v4875_v46, 0.0 }
0x195f   : > { %v4846_v52 = vpop.f32.mrf.mxu2 }
0x1960   : > { %4906 = vst.msk [vmem:[#allocation2 + $0x1] sm:$0xff] %vm634_vm1, %v4877_v48  ;;  %v4861_v53 = vadd.f32 %v4860_v51, %v4846_v52  ;;  %v5079_v48 = vpop.permute.xlu2 %5078  ;;  %v5086_v51 = vsel %vm5085_vm4, %v8659_v37, %v5075_v47 }
0x1961   : > { %v5088_v52 = vsel %vm5087_vm5, %v5086_v51, %v5079_v48 }
0x1962   : > { %v4869_v17 = vmul.f32 %v7825_v41, %v4861_v53  ;;  %v5094_v41 = vld [vmem:[%s9882_s12 + $0x18] sm:$0xff] }
0x1964   : > { %v4876_v6 = vadd.f32 %v7826_v42, %v4869_v17  ;;  %v5091_v42 = vld [vmem:[%s9882_s12] sm:$0xff] }
0x1966   : > { %v4878_v57 = vmax.f32 %v4876_v6, 0.0 }
0x1967   : > { %v4910_v58 = vld [vmem:[#allocation2 + $0x1] sm:$0xff] }
0x1968   : > { %4907 = vst.msk [vmem:[#allocation2 + $0x9] sm:$0xff] %vm634_vm1, %v4878_v57  ;;  %v4908_v5 = vld [vmem:[#allocation2] sm:$0xff] }
0x196f   : > { %v4912_v59 = vld [vmem:[#allocation2 + $0x2] sm:$0xff]  ;;  %v4913_v60 = vld [vmem:[#allocation2 + $0xa] sm:$0xff] }
0x1970   : > { %v4911_v0 = vld [vmem:[#allocation2 + $0x9] sm:$0xff]  ;;  %v4925_v2 = vpack.c.bf16 %v4913_v60, %v4912_v59 }
0x1971   : > { %v7773_v24 = vpack.i.bf16 %v4911_v0, %v4910_v58  ;;  %v4909_v26 = vld [vmem:[#allocation2 + $0x8] sm:$0xff] }
0x1972   : > { %7261 = vmatmul.msk.bf16.vlgmr.msrb.gmra.mxu3 %vm634_vm1, %v4925_v2 }
0x1973   : > { %7774 = vrot.lane.b32.xlu0 %v7773_v24, %s8014_s20  ;;  %s592_s20 = scalar_lea.vmem [#allocation8], %s8654_s13 }
0x1974   : > { %s9768_s3 = sshll.u32 %s592_s20, 4  ;;  %s5196_s3 = int_to_ptr.vmem [resolvable:$true] %s9768_s3 }
0x19e5   : > { %v7775_v36 = vpop.permute.xlu0 %7774 }
0x19e6   : > { %v7777_v4 = vunpack.i.h.bf16 %v7775_v36  ;;  %v7776_v39 = vunpack.i.l.bf16 %v7775_v36 }
0x19e8   : > { %v4922_v9 = vsel %vm634_vm1, %v4908_v5, %v7776_v39  ;;  %v4923_v11 = vsel %vm634_vm1, %v4909_v26, %v7777_v4 }
0x19e9   : > { %v4924_v50 = vpack.c.bf16 %v4923_v11, %v4922_v9 }
0x19eb   : > { %5009 = vmatmul.bf16.vlgmr.msra.gmra.mxu1 %v4924_v50 }
0x19f5   : > { %v5024_v61 = vpop.f32.mrf.mxu3 }
0x19fd   : > { %v5026_v25 = vpop.f32.mrf.mxu3 }
0x1a68   : > { %v5010_v20 = vpop.f32.mrf.mxu1 }
0x1a69   : > { %v5011_v21 = vadd.f32 %v5010_v20, %v9603_v40  ;;  %v5098_v40 = vld [vmem:[%s9882_s12 + $0x38] sm:$0xff] }
0x1a6a   : > { %5111 = vmatpush.msra.mxu2 %v5098_v40 }
0x1a6b   : > { %v5025_v23 = vadd.f32 %v5024_v61, %v5011_v21 }
0x1a6d   : > { %v5029_v54 = vsel %vm634_vm1, %v5025_v23, 0.0 }
0x1a70   : > { %v5012_v22 = vpop.f32.mrf.mxu1 }
0x1a71   : > { %v5013_v1 = vadd.f32 %v5012_v22, %v9617_v8  ;;  %v5097_v8 = vld [vmem:[%s9882_s12 + $0x30] sm:$0xff] }
0x1a72   : > { %5112 = vmatpush.msra.mxu2 %v5097_v8 }
0x1a73   : > { %v5027_v27 = vadd.f32 %v5026_v25, %v5013_v1 }
0x1a74   : > { %5113 = vmatpush.msra.mxu2 %v5096_v38 }
0x1a75   : > { %v5030_v29 = vsel %vm634_vm1, %v5027_v27, 0.0 }
0x1a76   : > { %v5031_v62 = vadd.f32 %v5030_v29, %v5029_v54 }
0x1a78   : > { %v5032_v30 = vrot.slane %v5031_v62, 4 }
0x1a7a   : > { %v5033_v7 = vadd.f32 %v5032_v30, %v5031_v62 }
0x1a7c   : > { %v5034_v45 = vrot.slane %v5033_v7, 2 }
0x1a7e   : > { %v5035_v31 = vadd.f32 %v5034_v45, %v5033_v7 }
0x1a80   : > { %v5036_v32 = vrot.slane %v5035_v31, 1 }
0x1a82   : > { %v5037_v34 = vadd.f32 %v5036_v32, %v5035_v31 }
0x1a84   : > { %v5038_v35 = vmul.f32 %v5037_v34, %v8636_v18  ;;  %v5095_v18 = vld [vmem:[%s9882_s12 + $0x20] sm:$0xff] }
0x1a85   : > { %5114 = vmatpush.msra.mxu2 %v5095_v18 }
0x1a86   : > { %7271 = vmatmul.msk.f32.vlgmr.msrb.gmra.mxu0 %vm634_vm1, %v5038_v35 }
0x1a87   : > { %5115 = vmatpush.msra.mxu2 %v5094_v41 }
0x1a89   : > { %5116 = vmatpush.msra.mxu2 %v5093_v10 }
0x1a8b   : > { %5117 = vmatpush.msra.mxu2 %v5092_v63 }
0x1a8d   : > { %5118 = vmatpush.msra.mxu2 %v5091_v42 }
0x1b03   : > { %v5070_v44 = vpop.f32.mrf.mxu0 }
0x1b04   : > { %v5071_v46 = vadd.f32 %v7270_v43, %v5070_v44 }
0x1b06   : > { %5082 = vrot.lane.b32.xlu0 %v5071_v46, %s8018_s22  ;;  %5127 = vst.msk [vmem:[%s592_s20] sm:$0x1] %vm5123_vm3, %v5071_v46  ;;  %s5171_s22 = sshll.u32 %s5167_s23, 4  ;;  %s5172_s22 = int_to_ptr.hbm [resolvable:$true] %s5171_s22 }
0x1b07   : > { %s7843_s5 = sshra.s32 %s5172_s22, 4  ;;  %s7844_s5 = int_to_ptr.hbm [resolvable:$true] %s7843_s5 }
0x1b08   : > { %s7845_s6 = scalar_lea.hbm %s7844_s5, 1  ;;  %p7850_p0 = scmp.lt.s32.totalorder %s7844_s5, %s9885_s15 }
0x1b09   : > { %p7846_p11 = scmp.ne.s32.totalorder %s7844_s5, %s7845_s6  ;;  %p7851_p1 = scmp.lt.s32.totalorder %s7849_s1, %s7845_s6 }
0x1b0b   : > { %p7847_p12 = pnand %p7846_p11, %p8154_p5  ;;  %p7852_p2 = por %p7851_p1, %p7850_p0 }
0x1b0d   : > { %p7848_p13 = pneg %p7847_p12 }
0x1b0f   : > { %p7853_p3 = pnand %p7852_p2, %p7848_p13 }
0x1b78   : > { %v5083_v53 = vpop.permute.xlu0 %5082 }
0x1b79   : > { %v5090_v55 = vsel %vm5089_vm6, %v5088_v52, %v5083_v53 }
0x1b7a   : > { %7272 = vmatmul.msk.f32.vlgmr.msra.gmra.mxu2 %vm634_vm1, %v5090_v55 }
0x1b7b   : > { %7856 = shalt.err (!%p7853_p3)
}
0x1b7c   : > { %7589 = dma.vmem_to_hbm [thread:$0]  (%p8154_p5), %s5170_s24, 16, %s5172_s22, %s9770_s4  }
0x1b7d   : > { %s5197_s20 = sshll.u32 %s5193_s30, 4  ;;  %s9784_s23 = scalar_lea.sflag [#allocation9], %s5133_s21  ;;  %s5198_s20 = int_to_ptr.hbm [resolvable:$true] %s5197_s20 }
0x1b7e   : > { %s7871_s19 = sshra.s32 %s5198_s20, 4  ;;  %s7877_s1 = scalar_lea.hbm %s9887_s17, 2  ;;  %s7872_s19 = int_to_ptr.hbm [resolvable:$true] %s7871_s19 }
0x1b7f   : > { %s7873_s27 = scalar_lea.hbm %s7872_s19, 1  ;;  %p7878_p9 = scmp.lt.s32.totalorder %s7872_s19, %s9887_s17 }
0x1b80   : > { %p7874_p4 = scmp.ne.s32.totalorder %s7872_s19, %s7873_s27  ;;  %p7879_p10 = scmp.lt.s32.totalorder %s7877_s1, %s7873_s27 }
0x1b82   : > { %p7875_p7 = pnand %p7874_p4, %p8154_p5  ;;  %p7880_p11 = por %p7879_p10, %p7878_p9 }
0x1b84   : > { %p7876_p8 = pneg %p7875_p7 }
0x1b86   : > { %p7881_p12 = pnand %p7880_p11, %p7876_p8 }
0x1b88   : > { %7884 = shalt.err (!%p7881_p12)
}
0x1b89   : > { %7591 = dma.vmem_to_hbm [thread:$0]  (%p8154_p5), %s5196_s3, 16, %s5198_s20, %s9784_s23  }
0x1b8a   : > { %s5154_s24 = scalar_lea.hbm %s9884_s14, %s8135_s0  ;;  %s9927_s22 = scalar_lea.vmem [#allocation3], %s8654_s13 }
0x1b8b   : > { %s5156_s5 = sshll.u32 %s9927_s22, 4  ;;  %s5158_s19 = sshll.u32 %s5154_s24, 4  ;;  %s5157_s5 = int_to_ptr.vmem [resolvable:$true] %s5156_s5  ;;  %s5159_s19 = int_to_ptr.hbm [resolvable:$true] %s5158_s19 }
0x1b8c   : > { %s5180_s1 = scalar_lea.hbm %s9886_s16, %s8135_s0  ;;  %s5130_s25 = scalar_lea.sflag [#allocation4], %s8654_s13 }
0x1b8d   : > { %s7899_s29 = sshra.s32 %s5159_s19, 4  ;;  %s7905_s30 = scalar_lea.hbm %s9884_s14, 2  ;;  %s7900_s29 = int_to_ptr.hbm [resolvable:$true] %s7899_s29 }
0x1b8e   : > { %s7901_s7 = scalar_lea.hbm %s7900_s29, 1  ;;  %p7906_p2 = scmp.lt.s32.totalorder %s7900_s29, %s9884_s14 }
0x1b8f   : > { %p7902_p13 = scmp.ne.s32.totalorder %s7900_s29, %s7901_s7  ;;  %p7907_p3 = scmp.lt.s32.totalorder %s7905_s30, %s7901_s7 }
0x1b91   : > { %p7903_p0 = pnand %p7902_p13, %p8154_p5  ;;  %p7908_p4 = por %p7907_p3, %p7906_p2 }
0x1b93   : > { %p7904_p1 = pneg %p7903_p0 }
0x1b95   : > { %p7909_p7 = pnand %p7908_p4, %p7904_p1 }
0x1b97   : > { %7912 = shalt.err (!%p7909_p7)
}
0x1b98   : > { %7588 = dma.vmem_to_hbm [thread:$0]  (%p8154_p5), %s5157_s5, 16, %s5159_s19, %s5130_s25  }
0x1b99   : > { %s9928_s24 = scalar_lea.vmem [#allocation7], %s8654_s13  ;;  %s5184_s6 = sshll.u32 %s5180_s1, 4  ;;  %s5185_s6 = int_to_ptr.hbm [resolvable:$true] %s5184_s6 }
0x1b9a   : > { %s5182_s27 = sshll.u32 %s9928_s24, 4  ;;  %s7927_s3 = sshra.s32 %s5185_s6, 4  ;;  %s5183_s27 = int_to_ptr.vmem [resolvable:$true] %s5182_s27  ;;  %s7928_s3 = int_to_ptr.hbm [resolvable:$true] %s7927_s3 }
0x1b9b   : > { %s7929_s20 = scalar_lea.hbm %s7928_s3, 1  ;;  %s7933_s30 = scalar_lea.hbm %s9886_s16, 2 }
0x1b9c   : > { %p7930_p8 = scmp.ne.s32.totalorder %s7928_s3, %s7929_s20  ;;  %p7934_p11 = scmp.lt.s32.totalorder %s7928_s3, %s9886_s16 }
0x1b9d   : > { %p7935_p12 = scmp.lt.s32.totalorder %s7933_s30, %s7929_s20 }
0x1b9e   : > { %p7931_p9 = pnand %p7930_p8, %p8154_p5 }
0x1b9f   : > { %p7936_p13 = por %p7935_p12, %p7934_p11 }
0x1ba0   : > { %p7932_p10 = pneg %p7931_p9 }
0x1ba2   : > { %p7937_p0 = pnand %p7936_p13, %p7932_p10 }
0x1ba4   : > { %7940 = shalt.err (!%p7937_p0)
}
0x1ba5   : > { %7590 = dma.vmem_to_hbm [thread:$0]  (%p8154_p5), %s5183_s27, 16, %s5185_s6, %s9770_s4  }
0x1ba6   : > { %s5206_s1 = scalar_lea.hbm %s9888_s18, %s8135_s0  ;;  %s9929_s7 = sld [smem:[#allocation28_spill]] }
0x1ba7   : > { %s598_s3 = scalar_lea.vmem [#allocation10], %s8654_s13  ;;  %s5210_s29 = sshll.u32 %s5206_s1, 4  ;;  %s5211_s29 = int_to_ptr.hbm [resolvable:$true] %s5210_s29 }
0x1ba8   : > { %s5208_s20 = sshll.u32 %s598_s3, 4  ;;  %s7955_s30 = sshra.s32 %s5211_s29, 4  ;;  %s5209_s20 = int_to_ptr.vmem [resolvable:$true] %s5208_s20  ;;  %s7956_s30 = int_to_ptr.hbm [resolvable:$true] %s7955_s30 }
0x1ba9   : > { %s7957_s4 = scalar_lea.hbm %s7956_s30, 1  ;;  %s7961_s6 = scalar_lea.hbm %s9888_s18, 2 }
0x1baa   : > { %p7958_p1 = scmp.ne.s32.totalorder %s7956_s30, %s7957_s4  ;;  %p7962_p4 = scmp.lt.s32.totalorder %s7956_s30, %s9888_s18 }
0x1bab   : > { %p7963_p7 = scmp.lt.s32.totalorder %s7961_s6, %s7957_s4 }
0x1bac   : > { %v5099_v37 = vld [vmem:[%s9929_s7] sm:$0x1]  ;;  %p7959_p2 = pnand %p7958_p1, %p8154_p5 }
0x1bad   : > { %p7964_p8 = por %p7963_p7, %p7962_p4 }
0x1bae   : > { %p7960_p3 = pneg %p7959_p2 }
0x1bb0   : > { %p7965_p9 = pnand %p7964_p8, %p7960_p3 }
0x1bfd   : > { %v5120_v17 = vpop.f32.mrf.mxu2 }
0x1bfe   : > { %v5121_v6 = vadd.f32 %v5120_v17, %v5099_v37 }
0x1c00   : > { %5128 = vst.msk [vmem:[%s598_s3] sm:$0x1] %vm5123_vm3, %v5121_v6 }
0x1c01   : > { %7968 = shalt.err (!%p7965_p9)
}
0x1c02   : > { %7592 = dma.vmem_to_hbm [thread:$0]  (%p8154_p5), %s5209_s20, 16, %s5211_s29, %s9784_s23  }
0x1c03 PF: > { %s9930_s22 = sld [smem:[#allocation16_spill]] }
0x1c04   : > { %s9931_s5 = sld [smem:[#allocation14_spill]] }
0x1c09   : > { %p7614_p10 = scmp.ge.s32.totalorder %s9930_s22, 2 }
0x1c0a   : > { %s5222_s1 = sand.u32 1, %s9931_s5  }
0x1c0b   : > { %p7599_p11 = pnand %p7614_p10, %p8158_p6  ;;  %s5223_s25 = scalar_lea.sflag [#allocation4], %s5222_s1 }
0x1c0d   : > { %p7600_p12 = pneg %p7599_p11 }
0x1c0f   : > { %7986 = dma.done.wait (%p7600_p12), %s5223_s25, 16  }
0x1c10   : > { %7988 = vsyncadd (%p7600_p12), %s5223_s25, 4294967280  ;;  %s9933_s24 = sadd.s32 4294967294, %s9930_s22  }
0x1c11   : > { %s5231_s7 = sand.u32 1, %s9933_s24  }
0x1c12   : > { %s5232_s3 = scalar_lea.sflag [#allocation6], %s5231_s7 }
0x1c13   : > { %7990 = dma.done.wait (%p7600_p12), %s5232_s3, 32  }
0x1c14   : > { %7992 = vsyncadd (%p7600_p12), %s5232_s3, 4294967264  ;;  %s5250_s2 = scalar_lea.sflag [#allocation9], %s5231_s7 }
0x1c15   : > { %7994 = dma.done.wait (%p7600_p12), %s5250_s2, 32  }
0x1c16   : > { %7996 = vsyncadd (%p7600_p12), %s5250_s2, 4294967264  ;;  %s9934_s30 = sld [smem:[#allocation17_spill]]  ;;  %s9937_s27 = smov %s8003_s28 }
0x1c17   : > { %s9935_s23 = sld [smem:[#allocation15_spill]] }
0x1c18   : > { %s9936_s29 = sld [smem:[#allocation18_spill]] }
0x1c1c   : > { %p35_p5 = scmp.ge.s32.totalorder %s9934_s30, 4  }
0x1c1d   : > { %s9938_s28 = smov %s9935_s23 }
0x1c1e   :  { %37 = sbr.rel (!%p35_p5) target bundleno = 17 (0x11), region = 249 }
0x1c23   :  { %5264 = vsyncpa [#allocation4], 1 }
0x1c24   :  { %5266 = vsyncpa [#allocation4 + $0x1], 1 }
0x1c25   :  { %5267 = vsyncpa [#allocation6], 1 }
0x1c26   :  { %5269 = vsyncpa [#allocation6 + $0x1], 1 }
0x1c27   :  { %5270 = vsyncpa [#allocation9], 1 }
0x1c28   :  { %5272 = vsyncpa [#allocation9 + $0x1], 1 }

</bundles_post_ra>
